<compile_context>
chip_gen: v7x
topology: tpu7x:2x2x1
jax: 0.10.0
libtpu: 0.0.40
codegen_flags: <defaults>
</compile_context>

<pallas_src>
import math

import jax
import jax.numpy as jnp
from jax.experimental import pallas as pl
from jax.experimental.pallas import tpu as pltpu

# ----- model dimensions (small synthetic config) -----
B, S, V, H, NH, NL, NLAB = 2, 8, 64, 32, 4, 2, 5
HD = H // NH
F = 4 * H
BS = B * S
L = NLAB
LN_EPS = 1e-12


def _layer_norm(x, g, b):
    mu = jnp.mean(x, axis=-1, keepdims=True)
    var = jnp.mean((x - mu) ** 2, axis=-1, keepdims=True)
    return (x - mu) * jax.lax.rsqrt(var + LN_EPS) * g + b


# ----------------------------------------------------------------------------
# Fused kernel: embeddings -> transformer layers -> fc/log_softmax -> Viterbi
# ----------------------------------------------------------------------------
def bert_crf_kernel(ids_ref, mask_ref, bias_ref,
                    emb_ref, wqkv_ref, wo_ref, wf1_ref, wf2_ref,
                    bwide_ref, lvec_ref, fcw_ref, crf_ref,
                    tags_ref, emis_ref):
    f32 = jnp.float32
    bf16 = jnp.bfloat16

    # -------- embeddings (token lookup as one-hot matmul; V is tiny) --------
    tok_ids = ids_ref[:, 0:1]                                   # (BS, 1) int32
    seg_ids = ids_ref[:, 1:2]
    tok_oh = jnp.where(
        tok_ids == jax.lax.broadcasted_iota(jnp.int32, (BS, V), 1),
        1.0, 0.0).astype(bf16)
    x = jnp.dot(tok_oh, emb_ref[0:V, :], preferred_element_type=f32)   # (BS, H)
    e0 = emb_ref[V:V + 1, :].astype(f32)
    e1 = emb_ref[V + 1:V + 2, :].astype(f32)
    x = x + e0 + seg_ids.astype(f32) * (e1 - e0)                # segment lookup
    x = x + emb_ref[V + 2:V + 2 + BS, :].astype(f32)            # tiled positions
    x = _layer_norm(x, lvec_ref[NL * 6:NL * 6 + 1, :],
                    lvec_ref[NL * 6 + 1:NL * 6 + 2, :])

    bias64 = bias_ref[...]            # (NH*BS, BS): head-block x batch-block mask
    scale = 1.0 / math.sqrt(HD)

    # -------- transformer layers ---------------------------------------------
    for l in range(NL):
        r = l * 6
        wo_b = lvec_ref[r:r + 1, :]
        ffn_b2 = lvec_ref[r + 1:r + 2, :]
        ln1_g = lvec_ref[r + 2:r + 3, :]
        ln1_b = lvec_ref[r + 3:r + 4, :]
        ln2_g = lvec_ref[r + 4:r + 5, :]
        ln2_b = lvec_ref[r + 5:r + 6, :]
        qkv_b = bwide_ref[l, 0:1, 0:3 * H]                      # (1, 96)
        ffn_b1 = bwide_ref[l, 1:2, :]                           # (1, 128)

        # fused QKV projection: one lane-dense matmul
        qkv = jnp.dot(x.astype(bf16), wqkv_ref[l],
                      preferred_element_type=f32) + qkv_b        # (BS, 3H)

        # stack heads on the sublane axis: row index = head * BS + token
        q_stack = jnp.concatenate(
            [qkv[:, n * HD:(n + 1) * HD] for n in range(NH)], axis=0).astype(bf16)
        k_stack = jnp.concatenate(
            [qkv[:, H + n * HD:H + (n + 1) * HD] for n in range(NH)], axis=0).astype(bf16)
        v_stack = jnp.concatenate(
            [qkv[:, 2 * H + n * HD:2 * H + (n + 1) * HD] for n in range(NH)], axis=0).astype(bf16)

        # one score matmul for all heads; cross-head / cross-batch / padded keys
        # are killed by the precomputed additive mask
        s = jnp.einsum('qd,kd->qk', q_stack, k_stack,
                       preferred_element_type=f32)               # (NH*BS, BS)
        s = s * scale + bias64
        s = s - jnp.max(s, axis=-1, keepdims=True)
        e = jnp.exp(s)
        p = (e * pl.reciprocal(jnp.sum(e, axis=-1, keepdims=True),
                               approx=True)).astype(bf16)

        ctx_stack = jnp.dot(p, v_stack, preferred_element_type=f32)   # (NH*BS, HD)
        ctx = jnp.concatenate(
            [ctx_stack[n * BS:(n + 1) * BS, :] for n in range(NH)], axis=-1)  # (BS, H)

        attn_out = jnp.dot(ctx.astype(bf16), wo_ref[l],
                           preferred_element_type=f32) + wo_b
        x = _layer_norm(x + attn_out, ln1_g, ln1_b)

        h1 = jnp.dot(x.astype(bf16), wf1_ref[l], preferred_element_type=f32) + ffn_b1
        h1 = jax.nn.gelu(h1, approximate=True)   # TODO(synk): HF BERT uses exact erf GELU
        ffn = jnp.dot(h1.astype(bf16), wf2_ref[l], preferred_element_type=f32) + ffn_b2
        x = _layer_norm(x + ffn, ln2_g, ln2_b)

    # -------- FC head + log_softmax (dropout is identity in eval mode) ------
    logits = jnp.dot(x.astype(bf16), fcw_ref[...], preferred_element_type=f32)  # (BS, L)
    m = jnp.max(logits, axis=-1, keepdims=True)
    lse = m + jnp.log(jnp.sum(jnp.exp(logits - m), axis=-1, keepdims=True))
    emis = logits - lse

    # stage emissions into (B, S, L) pages so the Viterbi is batch-vectorized
    for b in range(B):
        emis_ref[b] = emis[b * S:(b + 1) * S, :]
    em3 = emis_ref[...]                                          # (B, S, L)

    # -------- CRF Viterbi decode + backtrace (batch-vectorized, unrolled) ---
    mask3 = mask_ref[...]                                        # (B, 1, S) int32
    start = crf_ref[0:1, :]                                      # (1, L)
    end = crf_ref[1:2, :]
    trans = crf_ref[2:2 + L, :]                                  # trans[i, j]: i -> j

    eye = (jax.lax.broadcasted_iota(jnp.int32, (L, L), 0) ==
           jax.lax.broadcasted_iota(jnp.int32, (L, L), 1)).astype(f32)
    prev_iota = jax.lax.broadcasted_iota(jnp.int32, (B, L, L), 1)    # prev tag i
    lane_iota_L = jax.lax.broadcasted_iota(jnp.int32, (B, 1, L), 2)
    lane_iota_S = jax.lax.broadcasted_iota(jnp.int32, (B, 1, S), 2)

    score = start + em3[:, 0:1, :]                               # (B, 1, L)
    hist = [None]
    for t in range(1, S):                                        # static, unrolled
        # row -> column relayout of the running score (one mul + lane reduce)
        score_col = jnp.sum(score * eye, axis=-1, keepdims=True)     # (B, L, 1)
        M = trans + score_col                                    # M[b,i,j] = score[b,i]+trans[i,j]
        mx = jnp.max(M, axis=1, keepdims=True)                   # (B, 1, L)
        bp = jnp.min(jnp.where(M == mx, prev_iota, L),
                     axis=1, keepdims=True)                      # (B, 1, L) backptrs
        nxt = mx + em3[:, t:t + 1, :]
        valid = mask3[:, :, t:t + 1] > 0                         # (B, 1, 1) prefix mask
        score = jnp.where(valid, nxt, score)
        hist.append(bp)

    final = score + end                                          # (B, 1, L)
    fmax = jnp.max(final, axis=-1, keepdims=True)
    cur = jnp.min(jnp.where(final == fmax, lane_iota_L, L),
                  axis=-1, keepdims=True)                        # (B, 1, 1) best last tag
    seq_end = (jnp.sum(mask3.astype(f32), axis=-1, keepdims=True)
               - 1.0).astype(jnp.int32)                          # (B, 1, 1)

    # zero-length sequences (seq_end = -1) leave tags all-zero (benign).
    tags = jnp.where(lane_iota_S == seq_end, cur, 0)             # (B, 1, S) int32
    for t in range(S - 1, 0, -1):                                # static backtrace
        prev = jnp.min(jnp.where(lane_iota_L == cur, hist[t], L),
                       axis=-1, keepdims=True)                   # hist[t][b, cur_b]
        active = t <= seq_end
        cur = jnp.where(active, prev, cur)
        tags = jnp.where(jnp.logical_and(active, lane_iota_S == (t - 1)),
                         prev, tags)

    tags_ref[...] = tags                                         # single store


# ----------------------------------------------------------------------------
# wrapper
# ----------------------------------------------------------------------------
def _vmem():
    return pl.BlockSpec(memory_space=pltpu.MemorySpace.VMEM)


def bert_crf_decode(params, token_ids, token_type_ids, attention_mask):
    ids = jnp.stack([token_ids.reshape(BS), token_type_ids.reshape(BS)],
                    axis=1).astype(jnp.int32)                    # (BS, 2)
    mask3 = attention_mask.reshape(B, 1, S).astype(jnp.int32)    # (B, 1, S)
    lens = attention_mask.astype(jnp.int32).sum(axis=-1)         # (B,)

    # (NH*BS, BS) additive mask: same head block AND same example AND valid key
    maskf = attention_mask.reshape(BS).astype(jnp.float32)
    batch_id = jnp.repeat(jnp.arange(B, dtype=jnp.int32), S)
    head_row = jnp.repeat(jnp.arange(NH, dtype=jnp.int32), BS)
    tok_batch = jnp.tile(batch_id, (NH,))
    tok_valid = jnp.tile(maskf, (NH,))
    allowed = ((head_row[:, None] == head_row[None, :]) &
               (tok_batch[:, None] == tok_batch[None, :]) &
               (tok_valid[None, :] > 0.5))
    attn_bias = jnp.where(allowed, 0.0, -1e9).astype(jnp.float32)    # (64, 64)

    aw, ab = params['attn_w'], params['attn_b']                  # (NL,4,H,H), (NL,4,H)
    w_qkv = jnp.concatenate([aw[:, 0], aw[:, 1], aw[:, 2]],
                            axis=-1).astype(jnp.bfloat16)        # (NL, H, 3H)
    w_o = aw[:, 3].astype(jnp.bfloat16)                          # (NL, H, H)
    w_f1 = params['ffn_w1'].astype(jnp.bfloat16)                 # (NL, H, F)
    w_f2 = params['ffn_w2'].astype(jnp.bfloat16)                 # (NL, F, H)

    qkv_b = jnp.concatenate([ab[:, 0], ab[:, 1], ab[:, 2]], axis=-1)   # (NL, 96)
    qkv_b = jnp.pad(qkv_b, ((0, 0), (0, F - 3 * H)))                   # (NL, 128)
    bwide = jnp.stack([qkv_b, params['ffn_b1'].reshape(NL, F)],
                      axis=1).astype(jnp.float32)                      # (NL, 2, 128)

    rows = []
    for l in range(NL):
        rows += [ab[l, 3], params['ffn_b2'][l].reshape(H),
                 params['ln_w'][l, 0], params['ln_w'][l, 1],
                 params['ln_w'][l, 2], params['ln_w'][l, 3]]
    rows += [params['emb_ln'][0], params['emb_ln'][1]]
    lvec = jnp.stack(rows, axis=0).astype(jnp.float32)                 # (NL*6+2, H)

    emb = jnp.concatenate([params['tok_emb'], params['seg_emb'],
                           jnp.tile(params['pos_emb'], (B, 1))],
                          axis=0).astype(jnp.bfloat16)                 # (V+2+BS, H)

    fc_w = params['fc_w'].astype(jnp.bfloat16)                         # (H, NLAB)
    crf = jnp.concatenate([params['crf_start'], params['crf_end'],
                           params['crf_trans']], axis=0).astype(jnp.float32)  # (2+L, L)

    operands = (ids, mask3, attn_bias, emb, w_qkv, w_o, w_f1, w_f2,
                bwide, lvec, fc_w, crf)

    tags = pl.pallas_call(
        bert_crf_kernel,
        out_shape=jax.ShapeDtypeStruct((B, 1, S), jnp.int32),
        in_specs=[_vmem() for _ in operands],
        out_specs=_vmem(),
        scratch_shapes=[pltpu.VMEM((B, S, NLAB), jnp.float32)],
    )(*operands)
    return tags.reshape(B, S), lens


def make_params(key):
    ks = jax.random.split(key, 12)

    def nrm(k, shape, scale=0.02):
        return jax.random.normal(k, shape, jnp.float32) * scale

    ln_layer = jnp.stack([jnp.ones(H), jnp.zeros(H), jnp.ones(H), jnp.zeros(H)])
    return dict(
        tok_emb=nrm(ks[0], (V, H)),
        seg_emb=nrm(ks[1], (2, H)),
        pos_emb=nrm(ks[2], (S, H)),
        emb_ln=jnp.stack([jnp.ones(H), jnp.zeros(H)]).astype(jnp.float32),
        attn_w=nrm(ks[3], (NL, 4, H, H)),
        attn_b=jnp.zeros((NL, 4, H), jnp.float32),
        ln_w=jnp.stack([ln_layer] * NL).astype(jnp.float32),
        ffn_w1=nrm(ks[4], (NL, H, F)),
        ffn_b1=jnp.zeros((NL, 1, F), jnp.float32),
        ffn_w2=nrm(ks[5], (NL, F, H)),
        ffn_b2=jnp.zeros((NL, 1, H), jnp.float32),
        fc_w=nrm(ks[6], (H, NLAB)),
        crf_start=jax.random.uniform(ks[7], (1, NLAB), jnp.float32, -0.1, 0.1),
        crf_end=jax.random.uniform(ks[8], (1, NLAB), jnp.float32, -0.1, 0.1),
        crf_trans=jax.random.uniform(ks[9], (NLAB, NLAB), jnp.float32, -0.1, 0.1),
    )


if __name__ == "__main__":
    key = jax.random.PRNGKey(0)
    pkey, dkey = jax.random.split(key)
    params = make_params(pkey)

    token_ids = jax.random.randint(dkey, (B, S), 0, V, dtype=jnp.int32)
    token_type_ids = jnp.zeros((B, S), jnp.int32)
    lengths = jnp.array([S, 5], jnp.int32)
    attention_mask = (jnp.arange(S)[None, :] < lengths[:, None]).astype(jnp.int32)

    decode = jax.jit(bert_crf_decode)
    tags, seq_len = decode(params, token_ids, token_type_ids, attention_mask)
    jax.block_until_ready((tags, seq_len))
    print("KERNEL_OK")
</pallas_src>

<mosaic_0001>
module attributes {stable_mosaic.version = 11 : i64} {
  func.func @bert_crf_kernel(%arg0: memref<16x2xi32, #tpu.memory_space<vmem>>, %arg1: memref<2x1x8xi32, #tpu.memory_space<vmem>>, %arg2: memref<64x64xf32, #tpu.memory_space<vmem>>, %arg3: memref<82x32xbf16, #tpu.memory_space<vmem>>, %arg4: memref<2x32x96xbf16, #tpu.memory_space<vmem>>, %arg5: memref<2x32x32xbf16, #tpu.memory_space<vmem>>, %arg6: memref<2x32x128xbf16, #tpu.memory_space<vmem>>, %arg7: memref<2x128x32xbf16, #tpu.memory_space<vmem>>, %arg8: memref<2x2x128xf32, #tpu.memory_space<vmem>>, %arg9: memref<14x32xf32, #tpu.memory_space<vmem>>, %arg10: memref<32x5xbf16, #tpu.memory_space<vmem>>, %arg11: memref<7x5xf32, #tpu.memory_space<vmem>>, %arg12: memref<2x1x8xi32, #tpu.memory_space<vmem>>, %arg13: memref<2x8x5xf32, #tpu.memory_space<vmem>>) attributes {dimension_semantics = [], scalar_prefetch = 0 : i64, scratch_operands = 1 : i64, tpu.core_type = #tpu.core_type<tc>} {
    %c0 = arith.constant 0 : index
    %c0_0 = arith.constant 0 : index
    %0 = vector.load %arg0[%c0, %c0_0] : memref<16x2xi32, #tpu.memory_space<vmem>>, vector<16x1xi32>
    %c0_1 = arith.constant 0 : index
    %c1 = arith.constant 1 : index
    %1 = vector.load %arg0[%c0_1, %c1] : memref<16x2xi32, #tpu.memory_space<vmem>>, vector<16x1xi32>
    %2 = tpu.iota {dimensions = array<i32: 1>} : vector<16x64xi32>
    %3 = vector.broadcast %0 : vector<16x1xi32> to vector<16x64xi32>
    %4 = arith.cmpi eq, %3, %2 : vector<16x64xi32>
    %cst = arith.constant 1.000000e+00 : f32
    %cst_2 = arith.constant 0.000000e+00 : f32
    %5 = vector.broadcast %cst : f32 to vector<16x64xf32>
    %6 = vector.broadcast %cst_2 : f32 to vector<16x64xf32>
    %7 = arith.select %4, %5, %6 : vector<16x64xi1>, vector<16x64xf32>
    %8 = arith.truncf %7 : vector<16x64xf32> to vector<16x64xbf16>
    %c0_3 = arith.constant 0 : index
    %c0_4 = arith.constant 0 : index
    %9 = vector.load %arg3[%c0_3, %c0_4] : memref<82x32xbf16, #tpu.memory_space<vmem>>, vector<64x32xbf16>
    %cst_5 = arith.constant dense<0.000000e+00> : vector<16x32xf32>
    %10 = tpu.matmul %8, %9, %cst_5 {dimension_numbers = #tpu.dot_dimension_numbers<[1], [0], [0], [1], [0, 0, 1, 1], [], []>} : vector<16x64xbf16>, vector<64x32xbf16>, vector<16x32xf32> -> vector<16x32xf32>
    %c64 = arith.constant 64 : index
    %c0_6 = arith.constant 0 : index
    %11 = vector.load %arg3[%c64, %c0_6] : memref<82x32xbf16, #tpu.memory_space<vmem>>, vector<1x32xbf16>
    %12 = arith.extf %11 : vector<1x32xbf16> to vector<1x32xf32>
    %c65 = arith.constant 65 : index
    %c0_7 = arith.constant 0 : index
    %13 = vector.load %arg3[%c65, %c0_7] : memref<82x32xbf16, #tpu.memory_space<vmem>>, vector<1x32xbf16>
    %14 = arith.extf %13 : vector<1x32xbf16> to vector<1x32xf32>
    %15 = vector.broadcast %12 : vector<1x32xf32> to vector<16x32xf32>
    %16 = arith.addf %10, %15 : vector<16x32xf32>
    %17 = arith.sitofp %1 : vector<16x1xi32> to vector<16x1xf32>
    %18 = arith.subf %14, %12 : vector<1x32xf32>
    %19 = vector.broadcast %17 : vector<16x1xf32> to vector<16x32xf32>
    %20 = vector.broadcast %18 : vector<1x32xf32> to vector<16x32xf32>
    %21 = arith.mulf %19, %20 : vector<16x32xf32>
    %22 = arith.addf %16, %21 : vector<16x32xf32>
    %c66 = arith.constant 66 : index
    %c0_8 = arith.constant 0 : index
    %23 = vector.load %arg3[%c66, %c0_8] : memref<82x32xbf16, #tpu.memory_space<vmem>>, vector<16x32xbf16>
    %24 = arith.extf %23 : vector<16x32xbf16> to vector<16x32xf32>
    %25 = arith.addf %22, %24 : vector<16x32xf32>
    %c12 = arith.constant 12 : index
    %c0_9 = arith.constant 0 : index
    %26 = vector.load %arg9[%c12, %c0_9] : memref<14x32xf32, #tpu.memory_space<vmem>>, vector<1x32xf32>
    %c13 = arith.constant 13 : index
    %c0_10 = arith.constant 0 : index
    %27 = vector.load %arg9[%c13, %c0_10] : memref<14x32xf32, #tpu.memory_space<vmem>>, vector<1x32xf32>
    %cst_11 = arith.constant dense<0.000000e+00> : vector<16xf32>
    %28 = vector.multi_reduction <add>, %25, %cst_11 [1] : vector<16x32xf32> to vector<16xf32>
    %29 = vector.shape_cast %28 : vector<16xf32> to vector<16x1xf32>
    %cst_12 = arith.constant 3.200000e+01 : f32
    %30 = vector.broadcast %cst_12 : f32 to vector<16x1xf32>
    %31 = arith.divf %29, %30 : vector<16x1xf32>
    %32 = vector.broadcast %31 : vector<16x1xf32> to vector<16x32xf32>
    %33 = arith.subf %25, %32 : vector<16x32xf32>
    %34 = arith.mulf %33, %33 : vector<16x32xf32>
    %cst_13 = arith.constant dense<0.000000e+00> : vector<16xf32>
    %35 = vector.multi_reduction <add>, %34, %cst_13 [1] : vector<16x32xf32> to vector<16xf32>
    %36 = vector.shape_cast %35 : vector<16xf32> to vector<16x1xf32>
    %cst_14 = arith.constant 3.200000e+01 : f32
    %37 = vector.broadcast %cst_14 : f32 to vector<16x1xf32>
    %38 = arith.divf %36, %37 : vector<16x1xf32>
    %39 = vector.broadcast %31 : vector<16x1xf32> to vector<16x32xf32>
    %40 = arith.subf %25, %39 : vector<16x32xf32>
    %cst_15 = arith.constant 9.99999996E-13 : f32
    %41 = vector.broadcast %cst_15 : f32 to vector<16x1xf32>
    %42 = arith.addf %38, %41 : vector<16x1xf32>
    %43 = math.rsqrt %42 : vector<16x1xf32>
    %44 = vector.broadcast %43 : vector<16x1xf32> to vector<16x32xf32>
    %45 = arith.mulf %40, %44 : vector<16x32xf32>
    %46 = vector.broadcast %26 : vector<1x32xf32> to vector<16x32xf32>
    %47 = arith.mulf %45, %46 : vector<16x32xf32>
    %48 = vector.broadcast %27 : vector<1x32xf32> to vector<16x32xf32>
    %49 = arith.addf %47, %48 : vector<16x32xf32>
    %c0_16 = arith.constant 0 : index
    %c0_17 = arith.constant 0 : index
    %50 = vector.load %arg2[%c0_16, %c0_17] : memref<64x64xf32, #tpu.memory_space<vmem>>, vector<64x64xf32>
    %c0_18 = arith.constant 0 : index
    %c0_19 = arith.constant 0 : index
    %51 = vector.load %arg9[%c0_18, %c0_19] : memref<14x32xf32, #tpu.memory_space<vmem>>, vector<1x32xf32>
    %c1_20 = arith.constant 1 : index
    %c0_21 = arith.constant 0 : index
    %52 = vector.load %arg9[%c1_20, %c0_21] : memref<14x32xf32, #tpu.memory_space<vmem>>, vector<1x32xf32>
    %c2 = arith.constant 2 : index
    %c0_22 = arith.constant 0 : index
    %53 = vector.load %arg9[%c2, %c0_22] : memref<14x32xf32, #tpu.memory_space<vmem>>, vector<1x32xf32>
    %c3 = arith.constant 3 : index
    %c0_23 = arith.constant 0 : index
    %54 = vector.load %arg9[%c3, %c0_23] : memref<14x32xf32, #tpu.memory_space<vmem>>, vector<1x32xf32>
    %c4 = arith.constant 4 : index
    %c0_24 = arith.constant 0 : index
    %55 = vector.load %arg9[%c4, %c0_24] : memref<14x32xf32, #tpu.memory_space<vmem>>, vector<1x32xf32>
    %c5 = arith.constant 5 : index
    %c0_25 = arith.constant 0 : index
    %56 = vector.load %arg9[%c5, %c0_25] : memref<14x32xf32, #tpu.memory_space<vmem>>, vector<1x32xf32>
    %c0_26 = arith.constant 0 : index
    %c0_27 = arith.constant 0 : index
    %c0_28 = arith.constant 0 : index
    %57 = vector.load %arg8[%c0_26, %c0_27, %c0_28] : memref<2x2x128xf32, #tpu.memory_space<vmem>>, vector<1x1x96xf32>
    %58 = vector.shape_cast %57 : vector<1x1x96xf32> to vector<1x96xf32>
    %c0_29 = arith.constant 0 : index
    %c1_30 = arith.constant 1 : index
    %c0_31 = arith.constant 0 : index
    %59 = vector.load %arg8[%c0_29, %c1_30, %c0_31] : memref<2x2x128xf32, #tpu.memory_space<vmem>>, vector<1x1x128xf32>
    %60 = vector.shape_cast %59 : vector<1x1x128xf32> to vector<1x128xf32>
    %61 = arith.truncf %49 : vector<16x32xf32> to vector<16x32xbf16>
    %c0_32 = arith.constant 0 : index
    %c0_33 = arith.constant 0 : index
    %c0_34 = arith.constant 0 : index
    %62 = vector.load %arg4[%c0_32, %c0_33, %c0_34] : memref<2x32x96xbf16, #tpu.memory_space<vmem>>, vector<1x32x96xbf16>
    %63 = vector.shape_cast %62 : vector<1x32x96xbf16> to vector<32x96xbf16>
    %cst_35 = arith.constant dense<0.000000e+00> : vector<16x96xf32>
    %64 = tpu.matmul %61, %63, %cst_35 {dimension_numbers = #tpu.dot_dimension_numbers<[1], [0], [0], [1], [0, 0, 1, 1], [], []>} : vector<16x32xbf16>, vector<32x96xbf16>, vector<16x96xf32> -> vector<16x96xf32>
    %65 = vector.broadcast %58 : vector<1x96xf32> to vector<16x96xf32>
    %66 = arith.addf %64, %65 : vector<16x96xf32>
    %67 = vector.extract_strided_slice %66 {offsets = [0, 0], sizes = [16, 8], strides = [1, 1]} : vector<16x96xf32> to vector<16x8xf32>
    %68 = vector.extract_strided_slice %66 {offsets = [0, 8], sizes = [16, 8], strides = [1, 1]} : vector<16x96xf32> to vector<16x8xf32>
    %69 = vector.extract_strided_slice %66 {offsets = [0, 16], sizes = [16, 8], strides = [1, 1]} : vector<16x96xf32> to vector<16x8xf32>
    %70 = vector.extract_strided_slice %66 {offsets = [0, 24], sizes = [16, 8], strides = [1, 1]} : vector<16x96xf32> to vector<16x8xf32>
    %71 = tpu.concatenate %67, %68, %69, %70 in 0 : vector<16x8xf32>, vector<16x8xf32>, vector<16x8xf32>, vector<16x8xf32> -> vector<64x8xf32>
    %72 = arith.truncf %71 : vector<64x8xf32> to vector<64x8xbf16>
    %73 = vector.extract_strided_slice %66 {offsets = [0, 32], sizes = [16, 8], strides = [1, 1]} : vector<16x96xf32> to vector<16x8xf32>
    %74 = vector.extract_strided_slice %66 {offsets = [0, 40], sizes = [16, 8], strides = [1, 1]} : vector<16x96xf32> to vector<16x8xf32>
    %75 = vector.extract_strided_slice %66 {offsets = [0, 48], sizes = [16, 8], strides = [1, 1]} : vector<16x96xf32> to vector<16x8xf32>
    %76 = vector.extract_strided_slice %66 {offsets = [0, 56], sizes = [16, 8], strides = [1, 1]} : vector<16x96xf32> to vector<16x8xf32>
    %77 = tpu.concatenate %73, %74, %75, %76 in 0 : vector<16x8xf32>, vector<16x8xf32>, vector<16x8xf32>, vector<16x8xf32> -> vector<64x8xf32>
    %78 = arith.truncf %77 : vector<64x8xf32> to vector<64x8xbf16>
    %79 = vector.extract_strided_slice %66 {offsets = [0, 64], sizes = [16, 8], strides = [1, 1]} : vector<16x96xf32> to vector<16x8xf32>
    %80 = vector.extract_strided_slice %66 {offsets = [0, 72], sizes = [16, 8], strides = [1, 1]} : vector<16x96xf32> to vector<16x8xf32>
    %81 = vector.extract_strided_slice %66 {offsets = [0, 80], sizes = [16, 8], strides = [1, 1]} : vector<16x96xf32> to vector<16x8xf32>
    %82 = vector.extract_strided_slice %66 {offsets = [0, 88], sizes = [16, 8], strides = [1, 1]} : vector<16x96xf32> to vector<16x8xf32>
    %83 = tpu.concatenate %79, %80, %81, %82 in 0 : vector<16x8xf32>, vector<16x8xf32>, vector<16x8xf32>, vector<16x8xf32> -> vector<64x8xf32>
    %84 = arith.truncf %83 : vector<64x8xf32> to vector<64x8xbf16>
    "tpu.trace_start"() <{level = 10 : i32, message = "qd,kd->qk"}> : () -> ()
    %cst_36 = arith.constant dense<0.000000e+00> : vector<64x64xf32>
    %85 = tpu.matmul %72, %78, %cst_36 {dimension_numbers = #tpu.dot_dimension_numbers<[1], [1], [0], [0], [0, 0, 1, 0], [], []>} : vector<64x8xbf16>, vector<64x8xbf16>, vector<64x64xf32> -> vector<64x64xf32>
    "tpu.trace_stop"() : () -> ()
    %cst_37 = arith.constant 0.353553385 : f32
    %86 = vector.broadcast %cst_37 : f32 to vector<64x64xf32>
    %87 = arith.mulf %85, %86 : vector<64x64xf32>
    %88 = arith.addf %87, %50 : vector<64x64xf32>
    %cst_38 = arith.constant dense<0xFF800000> : vector<64xf32>
    %89 = vector.multi_reduction <maximumf>, %88, %cst_38 [1] : vector<64x64xf32> to vector<64xf32>
    %90 = vector.shape_cast %89 : vector<64xf32> to vector<64x1xf32>
    %91 = vector.broadcast %90 : vector<64x1xf32> to vector<64x64xf32>
    %92 = arith.subf %88, %91 : vector<64x64xf32>
    %93 = math.exp %92 : vector<64x64xf32>
    %cst_39 = arith.constant dense<0.000000e+00> : vector<64xf32>
    %94 = vector.multi_reduction <add>, %93, %cst_39 [1] : vector<64x64xf32> to vector<64xf32>
    %95 = vector.shape_cast %94 : vector<64xf32> to vector<64x1xf32>
    %96 = tpu.reciprocal %95 {approx = true} : vector<64x1xf32> -> vector<64x1xf32>
    %97 = vector.broadcast %96 : vector<64x1xf32> to vector<64x64xf32>
    %98 = arith.mulf %93, %97 : vector<64x64xf32>
    %99 = arith.truncf %98 : vector<64x64xf32> to vector<64x64xbf16>
    %cst_40 = arith.constant dense<0.000000e+00> : vector<64x8xf32>
    %100 = tpu.matmul %99, %84, %cst_40 {dimension_numbers = #tpu.dot_dimension_numbers<[1], [0], [0], [1], [0, 0, 1, 1], [], []>} : vector<64x64xbf16>, vector<64x8xbf16>, vector<64x8xf32> -> vector<64x8xf32>
    %101 = vector.extract_strided_slice %100 {offsets = [0, 0], sizes = [16, 8], strides = [1, 1]} : vector<64x8xf32> to vector<16x8xf32>
    %102 = vector.extract_strided_slice %100 {offsets = [16, 0], sizes = [16, 8], strides = [1, 1]} : vector<64x8xf32> to vector<16x8xf32>
    %103 = vector.extract_strided_slice %100 {offsets = [32, 0], sizes = [16, 8], strides = [1, 1]} : vector<64x8xf32> to vector<16x8xf32>
    %104 = vector.extract_strided_slice %100 {offsets = [48, 0], sizes = [16, 8], strides = [1, 1]} : vector<64x8xf32> to vector<16x8xf32>
    %105 = tpu.concatenate %101, %102, %103, %104 in 1 : vector<16x8xf32>, vector<16x8xf32>, vector<16x8xf32>, vector<16x8xf32> -> vector<16x32xf32>
    %106 = arith.truncf %105 : vector<16x32xf32> to vector<16x32xbf16>
    %c0_41 = arith.constant 0 : index
    %c0_42 = arith.constant 0 : index
    %c0_43 = arith.constant 0 : index
    %107 = vector.load %arg5[%c0_41, %c0_42, %c0_43] : memref<2x32x32xbf16, #tpu.memory_space<vmem>>, vector<1x32x32xbf16>
    %108 = vector.shape_cast %107 : vector<1x32x32xbf16> to vector<32x32xbf16>
    %cst_44 = arith.constant dense<0.000000e+00> : vector<16x32xf32>
    %109 = tpu.matmul %106, %108, %cst_44 {dimension_numbers = #tpu.dot_dimension_numbers<[1], [0], [0], [1], [0, 0, 1, 1], [], []>} : vector<16x32xbf16>, vector<32x32xbf16>, vector<16x32xf32> -> vector<16x32xf32>
    %110 = vector.broadcast %51 : vector<1x32xf32> to vector<16x32xf32>
    %111 = arith.addf %109, %110 : vector<16x32xf32>
    %112 = arith.addf %49, %111 : vector<16x32xf32>
    %cst_45 = arith.constant dense<0.000000e+00> : vector<16xf32>
    %113 = vector.multi_reduction <add>, %112, %cst_45 [1] : vector<16x32xf32> to vector<16xf32>
    %114 = vector.shape_cast %113 : vector<16xf32> to vector<16x1xf32>
    %cst_46 = arith.constant 3.200000e+01 : f32
    %115 = vector.broadcast %cst_46 : f32 to vector<16x1xf32>
    %116 = arith.divf %114, %115 : vector<16x1xf32>
    %117 = vector.broadcast %116 : vector<16x1xf32> to vector<16x32xf32>
    %118 = arith.subf %112, %117 : vector<16x32xf32>
    %119 = arith.mulf %118, %118 : vector<16x32xf32>
    %cst_47 = arith.constant dense<0.000000e+00> : vector<16xf32>
    %120 = vector.multi_reduction <add>, %119, %cst_47 [1] : vector<16x32xf32> to vector<16xf32>
    %121 = vector.shape_cast %120 : vector<16xf32> to vector<16x1xf32>
    %cst_48 = arith.constant 3.200000e+01 : f32
    %122 = vector.broadcast %cst_48 : f32 to vector<16x1xf32>
    %123 = arith.divf %121, %122 : vector<16x1xf32>
    %124 = vector.broadcast %116 : vector<16x1xf32> to vector<16x32xf32>
    %125 = arith.subf %112, %124 : vector<16x32xf32>
    %cst_49 = arith.constant 9.99999996E-13 : f32
    %126 = vector.broadcast %cst_49 : f32 to vector<16x1xf32>
    %127 = arith.addf %123, %126 : vector<16x1xf32>
    %128 = math.rsqrt %127 : vector<16x1xf32>
    %129 = vector.broadcast %128 : vector<16x1xf32> to vector<16x32xf32>
    %130 = arith.mulf %125, %129 : vector<16x32xf32>
    %131 = vector.broadcast %53 : vector<1x32xf32> to vector<16x32xf32>
    %132 = arith.mulf %130, %131 : vector<16x32xf32>
    %133 = vector.broadcast %54 : vector<1x32xf32> to vector<16x32xf32>
    %134 = arith.addf %132, %133 : vector<16x32xf32>
    %135 = arith.truncf %134 : vector<16x32xf32> to vector<16x32xbf16>
    %c0_50 = arith.constant 0 : index
    %c0_51 = arith.constant 0 : index
    %c0_52 = arith.constant 0 : index
    %136 = vector.load %arg6[%c0_50, %c0_51, %c0_52] : memref<2x32x128xbf16, #tpu.memory_space<vmem>>, vector<1x32x128xbf16>
    %137 = vector.shape_cast %136 : vector<1x32x128xbf16> to vector<32x128xbf16>
    %cst_53 = arith.constant dense<0.000000e+00> : vector<16x128xf32>
    %138 = tpu.matmul %135, %137, %cst_53 {dimension_numbers = #tpu.dot_dimension_numbers<[1], [0], [0], [1], [0, 0, 1, 1], [], []>} : vector<16x32xbf16>, vector<32x128xbf16>, vector<16x128xf32> -> vector<16x128xf32>
    %139 = vector.broadcast %60 : vector<1x128xf32> to vector<16x128xf32>
    %140 = arith.addf %138, %139 : vector<16x128xf32>
    %141 = arith.mulf %140, %140 : vector<16x128xf32>
    %142 = arith.mulf %140, %141 : vector<16x128xf32>
    %cst_54 = arith.constant 4.471500e-02 : f32
    %143 = vector.broadcast %cst_54 : f32 to vector<16x128xf32>
    %144 = arith.mulf %143, %142 : vector<16x128xf32>
    %145 = arith.addf %140, %144 : vector<16x128xf32>
    %cst_55 = arith.constant 0.797884583 : f32
    %146 = vector.broadcast %cst_55 : f32 to vector<16x128xf32>
    %147 = arith.mulf %146, %145 : vector<16x128xf32>
    %148 = math.tanh %147 : vector<16x128xf32>
    %cst_56 = arith.constant 1.000000e+00 : f32
    %149 = vector.broadcast %cst_56 : f32 to vector<16x128xf32>
    %150 = arith.addf %149, %148 : vector<16x128xf32>
    %cst_57 = arith.constant 5.000000e-01 : f32
    %151 = vector.broadcast %cst_57 : f32 to vector<16x128xf32>
    %152 = arith.mulf %151, %150 : vector<16x128xf32>
    %153 = arith.mulf %140, %152 : vector<16x128xf32>
    %154 = arith.truncf %153 : vector<16x128xf32> to vector<16x128xbf16>
    %c0_58 = arith.constant 0 : index
    %c0_59 = arith.constant 0 : index
    %c0_60 = arith.constant 0 : index
    %155 = vector.load %arg7[%c0_58, %c0_59, %c0_60] : memref<2x128x32xbf16, #tpu.memory_space<vmem>>, vector<1x128x32xbf16>
    %156 = vector.shape_cast %155 : vector<1x128x32xbf16> to vector<128x32xbf16>
    %cst_61 = arith.constant dense<0.000000e+00> : vector<16x32xf32>
    %157 = tpu.matmul %154, %156, %cst_61 {dimension_numbers = #tpu.dot_dimension_numbers<[1], [0], [0], [1], [0, 0, 1, 1], [], []>} : vector<16x128xbf16>, vector<128x32xbf16>, vector<16x32xf32> -> vector<16x32xf32>
    %158 = vector.broadcast %52 : vector<1x32xf32> to vector<16x32xf32>
    %159 = arith.addf %157, %158 : vector<16x32xf32>
    %160 = arith.addf %134, %159 : vector<16x32xf32>
    %cst_62 = arith.constant dense<0.000000e+00> : vector<16xf32>
    %161 = vector.multi_reduction <add>, %160, %cst_62 [1] : vector<16x32xf32> to vector<16xf32>
    %162 = vector.shape_cast %161 : vector<16xf32> to vector<16x1xf32>
    %cst_63 = arith.constant 3.200000e+01 : f32
    %163 = vector.broadcast %cst_63 : f32 to vector<16x1xf32>
    %164 = arith.divf %162, %163 : vector<16x1xf32>
    %165 = vector.broadcast %164 : vector<16x1xf32> to vector<16x32xf32>
    %166 = arith.subf %160, %165 : vector<16x32xf32>
    %167 = arith.mulf %166, %166 : vector<16x32xf32>
    %cst_64 = arith.constant dense<0.000000e+00> : vector<16xf32>
    %168 = vector.multi_reduction <add>, %167, %cst_64 [1] : vector<16x32xf32> to vector<16xf32>
    %169 = vector.shape_cast %168 : vector<16xf32> to vector<16x1xf32>
    %cst_65 = arith.constant 3.200000e+01 : f32
    %170 = vector.broadcast %cst_65 : f32 to vector<16x1xf32>
    %171 = arith.divf %169, %170 : vector<16x1xf32>
    %172 = vector.broadcast %164 : vector<16x1xf32> to vector<16x32xf32>
    %173 = arith.subf %160, %172 : vector<16x32xf32>
    %cst_66 = arith.constant 9.99999996E-13 : f32
    %174 = vector.broadcast %cst_66 : f32 to vector<16x1xf32>
    %175 = arith.addf %171, %174 : vector<16x1xf32>
    %176 = math.rsqrt %175 : vector<16x1xf32>
    %177 = vector.broadcast %176 : vector<16x1xf32> to vector<16x32xf32>
    %178 = arith.mulf %173, %177 : vector<16x32xf32>
    %179 = vector.broadcast %55 : vector<1x32xf32> to vector<16x32xf32>
    %180 = arith.mulf %178, %179 : vector<16x32xf32>
    %181 = vector.broadcast %56 : vector<1x32xf32> to vector<16x32xf32>
    %182 = arith.addf %180, %181 : vector<16x32xf32>
    %c6 = arith.constant 6 : index
    %c0_67 = arith.constant 0 : index
    %183 = vector.load %arg9[%c6, %c0_67] : memref<14x32xf32, #tpu.memory_space<vmem>>, vector<1x32xf32>
    %c7 = arith.constant 7 : index
    %c0_68 = arith.constant 0 : index
    %184 = vector.load %arg9[%c7, %c0_68] : memref<14x32xf32, #tpu.memory_space<vmem>>, vector<1x32xf32>
    %c8 = arith.constant 8 : index
    %c0_69 = arith.constant 0 : index
    %185 = vector.load %arg9[%c8, %c0_69] : memref<14x32xf32, #tpu.memory_space<vmem>>, vector<1x32xf32>
    %c9 = arith.constant 9 : index
    %c0_70 = arith.constant 0 : index
    %186 = vector.load %arg9[%c9, %c0_70] : memref<14x32xf32, #tpu.memory_space<vmem>>, vector<1x32xf32>
    %c10 = arith.constant 10 : index
    %c0_71 = arith.constant 0 : index
    %187 = vector.load %arg9[%c10, %c0_71] : memref<14x32xf32, #tpu.memory_space<vmem>>, vector<1x32xf32>
    %c11 = arith.constant 11 : index
    %c0_72 = arith.constant 0 : index
    %188 = vector.load %arg9[%c11, %c0_72] : memref<14x32xf32, #tpu.memory_space<vmem>>, vector<1x32xf32>
    %c1_73 = arith.constant 1 : index
    %c0_74 = arith.constant 0 : index
    %c0_75 = arith.constant 0 : index
    %189 = vector.load %arg8[%c1_73, %c0_74, %c0_75] : memref<2x2x128xf32, #tpu.memory_space<vmem>>, vector<1x1x96xf32>
    %190 = vector.shape_cast %189 : vector<1x1x96xf32> to vector<1x96xf32>
    %c1_76 = arith.constant 1 : index
    %c1_77 = arith.constant 1 : index
    %c0_78 = arith.constant 0 : index
    %191 = vector.load %arg8[%c1_76, %c1_77, %c0_78] : memref<2x2x128xf32, #tpu.memory_space<vmem>>, vector<1x1x128xf32>
    %192 = vector.shape_cast %191 : vector<1x1x128xf32> to vector<1x128xf32>
    %193 = arith.truncf %182 : vector<16x32xf32> to vector<16x32xbf16>
    %c1_79 = arith.constant 1 : index
    %c0_80 = arith.constant 0 : index
    %c0_81 = arith.constant 0 : index
    %194 = vector.load %arg4[%c1_79, %c0_80, %c0_81] : memref<2x32x96xbf16, #tpu.memory_space<vmem>>, vector<1x32x96xbf16>
    %195 = vector.shape_cast %194 : vector<1x32x96xbf16> to vector<32x96xbf16>
    %cst_82 = arith.constant dense<0.000000e+00> : vector<16x96xf32>
    %196 = tpu.matmul %193, %195, %cst_82 {dimension_numbers = #tpu.dot_dimension_numbers<[1], [0], [0], [1], [0, 0, 1, 1], [], []>} : vector<16x32xbf16>, vector<32x96xbf16>, vector<16x96xf32> -> vector<16x96xf32>
    %197 = vector.broadcast %190 : vector<1x96xf32> to vector<16x96xf32>
    %198 = arith.addf %196, %197 : vector<16x96xf32>
    %199 = vector.extract_strided_slice %198 {offsets = [0, 0], sizes = [16, 8], strides = [1, 1]} : vector<16x96xf32> to vector<16x8xf32>
    %200 = vector.extract_strided_slice %198 {offsets = [0, 8], sizes = [16, 8], strides = [1, 1]} : vector<16x96xf32> to vector<16x8xf32>
    %201 = vector.extract_strided_slice %198 {offsets = [0, 16], sizes = [16, 8], strides = [1, 1]} : vector<16x96xf32> to vector<16x8xf32>
    %202 = vector.extract_strided_slice %198 {offsets = [0, 24], sizes = [16, 8], strides = [1, 1]} : vector<16x96xf32> to vector<16x8xf32>
    %203 = tpu.concatenate %199, %200, %201, %202 in 0 : vector<16x8xf32>, vector<16x8xf32>, vector<16x8xf32>, vector<16x8xf32> -> vector<64x8xf32>
    %204 = arith.truncf %203 : vector<64x8xf32> to vector<64x8xbf16>
    %205 = vector.extract_strided_slice %198 {offsets = [0, 32], sizes = [16, 8], strides = [1, 1]} : vector<16x96xf32> to vector<16x8xf32>
    %206 = vector.extract_strided_slice %198 {offsets = [0, 40], sizes = [16, 8], strides = [1, 1]} : vector<16x96xf32> to vector<16x8xf32>
    %207 = vector.extract_strided_slice %198 {offsets = [0, 48], sizes = [16, 8], strides = [1, 1]} : vector<16x96xf32> to vector<16x8xf32>
    %208 = vector.extract_strided_slice %198 {offsets = [0, 56], sizes = [16, 8], strides = [1, 1]} : vector<16x96xf32> to vector<16x8xf32>
    %209 = tpu.concatenate %205, %206, %207, %208 in 0 : vector<16x8xf32>, vector<16x8xf32>, vector<16x8xf32>, vector<16x8xf32> -> vector<64x8xf32>
    %210 = arith.truncf %209 : vector<64x8xf32> to vector<64x8xbf16>
    %211 = vector.extract_strided_slice %198 {offsets = [0, 64], sizes = [16, 8], strides = [1, 1]} : vector<16x96xf32> to vector<16x8xf32>
    %212 = vector.extract_strided_slice %198 {offsets = [0, 72], sizes = [16, 8], strides = [1, 1]} : vector<16x96xf32> to vector<16x8xf32>
    %213 = vector.extract_strided_slice %198 {offsets = [0, 80], sizes = [16, 8], strides = [1, 1]} : vector<16x96xf32> to vector<16x8xf32>
    %214 = vector.extract_strided_slice %198 {offsets = [0, 88], sizes = [16, 8], strides = [1, 1]} : vector<16x96xf32> to vector<16x8xf32>
    %215 = tpu.concatenate %211, %212, %213, %214 in 0 : vector<16x8xf32>, vector<16x8xf32>, vector<16x8xf32>, vector<16x8xf32> -> vector<64x8xf32>
    %216 = arith.truncf %215 : vector<64x8xf32> to vector<64x8xbf16>
    "tpu.trace_start"() <{level = 10 : i32, message = "qd,kd->qk"}> : () -> ()
    %cst_83 = arith.constant dense<0.000000e+00> : vector<64x64xf32>
    %217 = tpu.matmul %204, %210, %cst_83 {dimension_numbers = #tpu.dot_dimension_numbers<[1], [1], [0], [0], [0, 0, 1, 0], [], []>} : vector<64x8xbf16>, vector<64x8xbf16>, vector<64x64xf32> -> vector<64x64xf32>
    "tpu.trace_stop"() : () -> ()
    %cst_84 = arith.constant 0.353553385 : f32
    %218 = vector.broadcast %cst_84 : f32 to vector<64x64xf32>
    %219 = arith.mulf %217, %218 : vector<64x64xf32>
    %220 = arith.addf %219, %50 : vector<64x64xf32>
    %cst_85 = arith.constant dense<0xFF800000> : vector<64xf32>
    %221 = vector.multi_reduction <maximumf>, %220, %cst_85 [1] : vector<64x64xf32> to vector<64xf32>
    %222 = vector.shape_cast %221 : vector<64xf32> to vector<64x1xf32>
    %223 = vector.broadcast %222 : vector<64x1xf32> to vector<64x64xf32>
    %224 = arith.subf %220, %223 : vector<64x64xf32>
    %225 = math.exp %224 : vector<64x64xf32>
    %cst_86 = arith.constant dense<0.000000e+00> : vector<64xf32>
    %226 = vector.multi_reduction <add>, %225, %cst_86 [1] : vector<64x64xf32> to vector<64xf32>
    %227 = vector.shape_cast %226 : vector<64xf32> to vector<64x1xf32>
    %228 = tpu.reciprocal %227 {approx = true} : vector<64x1xf32> -> vector<64x1xf32>
    %229 = vector.broadcast %228 : vector<64x1xf32> to vector<64x64xf32>
    %230 = arith.mulf %225, %229 : vector<64x64xf32>
    %231 = arith.truncf %230 : vector<64x64xf32> to vector<64x64xbf16>
    %cst_87 = arith.constant dense<0.000000e+00> : vector<64x8xf32>
    %232 = tpu.matmul %231, %216, %cst_87 {dimension_numbers = #tpu.dot_dimension_numbers<[1], [0], [0], [1], [0, 0, 1, 1], [], []>} : vector<64x64xbf16>, vector<64x8xbf16>, vector<64x8xf32> -> vector<64x8xf32>
    %233 = vector.extract_strided_slice %232 {offsets = [0, 0], sizes = [16, 8], strides = [1, 1]} : vector<64x8xf32> to vector<16x8xf32>
    %234 = vector.extract_strided_slice %232 {offsets = [16, 0], sizes = [16, 8], strides = [1, 1]} : vector<64x8xf32> to vector<16x8xf32>
    %235 = vector.extract_strided_slice %232 {offsets = [32, 0], sizes = [16, 8], strides = [1, 1]} : vector<64x8xf32> to vector<16x8xf32>
    %236 = vector.extract_strided_slice %232 {offsets = [48, 0], sizes = [16, 8], strides = [1, 1]} : vector<64x8xf32> to vector<16x8xf32>
    %237 = tpu.concatenate %233, %234, %235, %236 in 1 : vector<16x8xf32>, vector<16x8xf32>, vector<16x8xf32>, vector<16x8xf32> -> vector<16x32xf32>
    %238 = arith.truncf %237 : vector<16x32xf32> to vector<16x32xbf16>
    %c1_88 = arith.constant 1 : index
    %c0_89 = arith.constant 0 : index
    %c0_90 = arith.constant 0 : index
    %239 = vector.load %arg5[%c1_88, %c0_89, %c0_90] : memref<2x32x32xbf16, #tpu.memory_space<vmem>>, vector<1x32x32xbf16>
    %240 = vector.shape_cast %239 : vector<1x32x32xbf16> to vector<32x32xbf16>
    %cst_91 = arith.constant dense<0.000000e+00> : vector<16x32xf32>
    %241 = tpu.matmul %238, %240, %cst_91 {dimension_numbers = #tpu.dot_dimension_numbers<[1], [0], [0], [1], [0, 0, 1, 1], [], []>} : vector<16x32xbf16>, vector<32x32xbf16>, vector<16x32xf32> -> vector<16x32xf32>
    %242 = vector.broadcast %183 : vector<1x32xf32> to vector<16x32xf32>
    %243 = arith.addf %241, %242 : vector<16x32xf32>
    %244 = arith.addf %182, %243 : vector<16x32xf32>
    %cst_92 = arith.constant dense<0.000000e+00> : vector<16xf32>
    %245 = vector.multi_reduction <add>, %244, %cst_92 [1] : vector<16x32xf32> to vector<16xf32>
    %246 = vector.shape_cast %245 : vector<16xf32> to vector<16x1xf32>
    %cst_93 = arith.constant 3.200000e+01 : f32
    %247 = vector.broadcast %cst_93 : f32 to vector<16x1xf32>
    %248 = arith.divf %246, %247 : vector<16x1xf32>
    %249 = vector.broadcast %248 : vector<16x1xf32> to vector<16x32xf32>
    %250 = arith.subf %244, %249 : vector<16x32xf32>
    %251 = arith.mulf %250, %250 : vector<16x32xf32>
    %cst_94 = arith.constant dense<0.000000e+00> : vector<16xf32>
    %252 = vector.multi_reduction <add>, %251, %cst_94 [1] : vector<16x32xf32> to vector<16xf32>
    %253 = vector.shape_cast %252 : vector<16xf32> to vector<16x1xf32>
    %cst_95 = arith.constant 3.200000e+01 : f32
    %254 = vector.broadcast %cst_95 : f32 to vector<16x1xf32>
    %255 = arith.divf %253, %254 : vector<16x1xf32>
    %256 = vector.broadcast %248 : vector<16x1xf32> to vector<16x32xf32>
    %257 = arith.subf %244, %256 : vector<16x32xf32>
    %cst_96 = arith.constant 9.99999996E-13 : f32
    %258 = vector.broadcast %cst_96 : f32 to vector<16x1xf32>
    %259 = arith.addf %255, %258 : vector<16x1xf32>
    %260 = math.rsqrt %259 : vector<16x1xf32>
    %261 = vector.broadcast %260 : vector<16x1xf32> to vector<16x32xf32>
    %262 = arith.mulf %257, %261 : vector<16x32xf32>
    %263 = vector.broadcast %185 : vector<1x32xf32> to vector<16x32xf32>
    %264 = arith.mulf %262, %263 : vector<16x32xf32>
    %265 = vector.broadcast %186 : vector<1x32xf32> to vector<16x32xf32>
    %266 = arith.addf %264, %265 : vector<16x32xf32>
    %267 = arith.truncf %266 : vector<16x32xf32> to vector<16x32xbf16>
    %c1_97 = arith.constant 1 : index
    %c0_98 = arith.constant 0 : index
    %c0_99 = arith.constant 0 : index
    %268 = vector.load %arg6[%c1_97, %c0_98, %c0_99] : memref<2x32x128xbf16, #tpu.memory_space<vmem>>, vector<1x32x128xbf16>
    %269 = vector.shape_cast %268 : vector<1x32x128xbf16> to vector<32x128xbf16>
    %cst_100 = arith.constant dense<0.000000e+00> : vector<16x128xf32>
    %270 = tpu.matmul %267, %269, %cst_100 {dimension_numbers = #tpu.dot_dimension_numbers<[1], [0], [0], [1], [0, 0, 1, 1], [], []>} : vector<16x32xbf16>, vector<32x128xbf16>, vector<16x128xf32> -> vector<16x128xf32>
    %271 = vector.broadcast %192 : vector<1x128xf32> to vector<16x128xf32>
    %272 = arith.addf %270, %271 : vector<16x128xf32>
    %273 = arith.mulf %272, %272 : vector<16x128xf32>
    %274 = arith.mulf %272, %273 : vector<16x128xf32>
    %cst_101 = arith.constant 4.471500e-02 : f32
    %275 = vector.broadcast %cst_101 : f32 to vector<16x128xf32>
    %276 = arith.mulf %275, %274 : vector<16x128xf32>
    %277 = arith.addf %272, %276 : vector<16x128xf32>
    %cst_102 = arith.constant 0.797884583 : f32
    %278 = vector.broadcast %cst_102 : f32 to vector<16x128xf32>
    %279 = arith.mulf %278, %277 : vector<16x128xf32>
    %280 = math.tanh %279 : vector<16x128xf32>
    %cst_103 = arith.constant 1.000000e+00 : f32
    %281 = vector.broadcast %cst_103 : f32 to vector<16x128xf32>
    %282 = arith.addf %281, %280 : vector<16x128xf32>
    %cst_104 = arith.constant 5.000000e-01 : f32
    %283 = vector.broadcast %cst_104 : f32 to vector<16x128xf32>
    %284 = arith.mulf %283, %282 : vector<16x128xf32>
    %285 = arith.mulf %272, %284 : vector<16x128xf32>
    %286 = arith.truncf %285 : vector<16x128xf32> to vector<16x128xbf16>
    %c1_105 = arith.constant 1 : index
    %c0_106 = arith.constant 0 : index
    %c0_107 = arith.constant 0 : index
    %287 = vector.load %arg7[%c1_105, %c0_106, %c0_107] : memref<2x128x32xbf16, #tpu.memory_space<vmem>>, vector<1x128x32xbf16>
    %288 = vector.shape_cast %287 : vector<1x128x32xbf16> to vector<128x32xbf16>
    %cst_108 = arith.constant dense<0.000000e+00> : vector<16x32xf32>
    %289 = tpu.matmul %286, %288, %cst_108 {dimension_numbers = #tpu.dot_dimension_numbers<[1], [0], [0], [1], [0, 0, 1, 1], [], []>} : vector<16x128xbf16>, vector<128x32xbf16>, vector<16x32xf32> -> vector<16x32xf32>
    %290 = vector.broadcast %184 : vector<1x32xf32> to vector<16x32xf32>
    %291 = arith.addf %289, %290 : vector<16x32xf32>
    %292 = arith.addf %266, %291 : vector<16x32xf32>
    %cst_109 = arith.constant dense<0.000000e+00> : vector<16xf32>
    %293 = vector.multi_reduction <add>, %292, %cst_109 [1] : vector<16x32xf32> to vector<16xf32>
    %294 = vector.shape_cast %293 : vector<16xf32> to vector<16x1xf32>
    %cst_110 = arith.constant 3.200000e+01 : f32
    %295 = vector.broadcast %cst_110 : f32 to vector<16x1xf32>
    %296 = arith.divf %294, %295 : vector<16x1xf32>
    %297 = vector.broadcast %296 : vector<16x1xf32> to vector<16x32xf32>
    %298 = arith.subf %292, %297 : vector<16x32xf32>
    %299 = arith.mulf %298, %298 : vector<16x32xf32>
    %cst_111 = arith.constant dense<0.000000e+00> : vector<16xf32>
    %300 = vector.multi_reduction <add>, %299, %cst_111 [1] : vector<16x32xf32> to vector<16xf32>
    %301 = vector.shape_cast %300 : vector<16xf32> to vector<16x1xf32>
    %cst_112 = arith.constant 3.200000e+01 : f32
    %302 = vector.broadcast %cst_112 : f32 to vector<16x1xf32>
    %303 = arith.divf %301, %302 : vector<16x1xf32>
    %304 = vector.broadcast %296 : vector<16x1xf32> to vector<16x32xf32>
    %305 = arith.subf %292, %304 : vector<16x32xf32>
    %cst_113 = arith.constant 9.99999996E-13 : f32
    %306 = vector.broadcast %cst_113 : f32 to vector<16x1xf32>
    %307 = arith.addf %303, %306 : vector<16x1xf32>
    %308 = math.rsqrt %307 : vector<16x1xf32>
    %309 = vector.broadcast %308 : vector<16x1xf32> to vector<16x32xf32>
    %310 = arith.mulf %305, %309 : vector<16x32xf32>
    %311 = vector.broadcast %187 : vector<1x32xf32> to vector<16x32xf32>
    %312 = arith.mulf %310, %311 : vector<16x32xf32>
    %313 = vector.broadcast %188 : vector<1x32xf32> to vector<16x32xf32>
    %314 = arith.addf %312, %313 : vector<16x32xf32>
    %315 = arith.truncf %314 : vector<16x32xf32> to vector<16x32xbf16>
    %c0_114 = arith.constant 0 : index
    %c0_115 = arith.constant 0 : index
    %316 = vector.load %arg10[%c0_114, %c0_115] : memref<32x5xbf16, #tpu.memory_space<vmem>>, vector<32x5xbf16>
    %cst_116 = arith.constant dense<0.000000e+00> : vector<16x5xf32>
    %317 = tpu.matmul %315, %316, %cst_116 {dimension_numbers = #tpu.dot_dimension_numbers<[1], [0], [0], [1], [0, 0, 1, 1], [], []>} : vector<16x32xbf16>, vector<32x5xbf16>, vector<16x5xf32> -> vector<16x5xf32>
    %cst_117 = arith.constant dense<0xFF800000> : vector<16xf32>
    %318 = vector.multi_reduction <maximumf>, %317, %cst_117 [1] : vector<16x5xf32> to vector<16xf32>
    %319 = vector.shape_cast %318 : vector<16xf32> to vector<16x1xf32>
    %320 = vector.broadcast %319 : vector<16x1xf32> to vector<16x5xf32>
    %321 = arith.subf %317, %320 : vector<16x5xf32>
    %322 = math.exp %321 : vector<16x5xf32>
    %cst_118 = arith.constant dense<0.000000e+00> : vector<16xf32>
    %323 = vector.multi_reduction <add>, %322, %cst_118 [1] : vector<16x5xf32> to vector<16xf32>
    %324 = vector.shape_cast %323 : vector<16xf32> to vector<16x1xf32>
    %325 = math.log %324 : vector<16x1xf32>
    %326 = arith.addf %319, %325 : vector<16x1xf32>
    %327 = vector.broadcast %326 : vector<16x1xf32> to vector<16x5xf32>
    %328 = arith.subf %317, %327 : vector<16x5xf32>
    %329 = vector.extract_strided_slice %328 {offsets = [0, 0], sizes = [8, 5], strides = [1, 1]} : vector<16x5xf32> to vector<8x5xf32>
    %c0_119 = arith.constant 0 : index
    %c0_120 = arith.constant 0 : index
    %c0_121 = arith.constant 0 : index
    %330 = vector.load %arg13[%c0_119, %c0_120, %c0_121] : memref<2x8x5xf32, #tpu.memory_space<vmem>>, vector<1x8x5xf32>
    %331 = vector.shape_cast %330 : vector<1x8x5xf32> to vector<8x5xf32>
    %332 = vector.shape_cast %329 : vector<8x5xf32> to vector<1x8x5xf32>
    tpu.vector_store %arg13[%c0_119, %c0_120, %c0_121], %332 {strides = array<i32>} : memref<2x8x5xf32, #tpu.memory_space<vmem>>, vector<1x8x5xf32>,
    %333 = vector.extract_strided_slice %328 {offsets = [8, 0], sizes = [8, 5], strides = [1, 1]} : vector<16x5xf32> to vector<8x5xf32>
    %c1_122 = arith.constant 1 : index
    %c0_123 = arith.constant 0 : index
    %c0_124 = arith.constant 0 : index
    %334 = vector.load %arg13[%c1_122, %c0_123, %c0_124] : memref<2x8x5xf32, #tpu.memory_space<vmem>>, vector<1x8x5xf32>
    %335 = vector.shape_cast %334 : vector<1x8x5xf32> to vector<8x5xf32>
    %336 = vector.shape_cast %333 : vector<8x5xf32> to vector<1x8x5xf32>
    tpu.vector_store %arg13[%c1_122, %c0_123, %c0_124], %336 {strides = array<i32>} : memref<2x8x5xf32, #tpu.memory_space<vmem>>, vector<1x8x5xf32>,
    %c0_125 = arith.constant 0 : index
    %c0_126 = arith.constant 0 : index
    %c0_127 = arith.constant 0 : index
    %337 = vector.load %arg13[%c0_125, %c0_126, %c0_127] : memref<2x8x5xf32, #tpu.memory_space<vmem>>, vector<2x8x5xf32>
    %c0_128 = arith.constant 0 : index
    %c0_129 = arith.constant 0 : index
    %c0_130 = arith.constant 0 : index
    %338 = vector.load %arg1[%c0_128, %c0_129, %c0_130] : memref<2x1x8xi32, #tpu.memory_space<vmem>>, vector<2x1x8xi32>
    %c0_131 = arith.constant 0 : index
    %c0_132 = arith.constant 0 : index
    %339 = vector.load %arg11[%c0_131, %c0_132] : memref<7x5xf32, #tpu.memory_space<vmem>>, vector<1x5xf32>
    %c1_133 = arith.constant 1 : index
    %c0_134 = arith.constant 0 : index
    %340 = vector.load %arg11[%c1_133, %c0_134] : memref<7x5xf32, #tpu.memory_space<vmem>>, vector<1x5xf32>
    %c2_135 = arith.constant 2 : index
    %c0_136 = arith.constant 0 : index
    %341 = vector.load %arg11[%c2_135, %c0_136] : memref<7x5xf32, #tpu.memory_space<vmem>>, vector<5x5xf32>
    %342 = tpu.iota {dimensions = array<i32: 0>} : vector<5x5xi32>
    %343 = tpu.iota {dimensions = array<i32: 1>} : vector<5x5xi32>
    %344 = arith.cmpi eq, %342, %343 : vector<5x5xi32>
    %345 = arith.extui %344 : vector<5x5xi1> to vector<5x5xi32>
    %346 = arith.sitofp %345 : vector<5x5xi32> to vector<5x5xf32>
    %347 = tpu.iota {dimensions = array<i32: 1>} : vector<2x5x5xi32>
    %348 = tpu.iota {dimensions = array<i32: 2>} : vector<2x1x5xi32>
    %349 = tpu.iota {dimensions = array<i32: 2>} : vector<2x1x8xi32>
    %350 = vector.extract_strided_slice %337 {offsets = [0, 0, 0], sizes = [2, 1, 5], strides = [1, 1, 1]} : vector<2x8x5xf32> to vector<2x1x5xf32>
    %351 = vector.shape_cast %339 : vector<1x5xf32> to vector<1x1x5xf32>
    %352 = vector.broadcast %351 : vector<1x1x5xf32> to vector<2x1x5xf32>
    %353 = arith.addf %352, %350 : vector<2x1x5xf32>
    %354 = vector.shape_cast %346 : vector<5x5xf32> to vector<1x5x5xf32>
    %355 = vector.broadcast %353 : vector<2x1x5xf32> to vector<2x5x5xf32>
    %356 = vector.broadcast %354 : vector<1x5x5xf32> to vector<2x5x5xf32>
    %357 = arith.mulf %355, %356 : vector<2x5x5xf32>
    %cst_137 = arith.constant dense<0.000000e+00> : vector<2x5xf32>
    %358 = vector.multi_reduction <add>, %357, %cst_137 [2] : vector<2x5x5xf32> to vector<2x5xf32>
    %359 = vector.shape_cast %358 : vector<2x5xf32> to vector<2x5x1xf32>
    %360 = vector.shape_cast %341 : vector<5x5xf32> to vector<1x5x5xf32>
    %361 = vector.broadcast %360 : vector<1x5x5xf32> to vector<2x5x5xf32>
    %362 = vector.broadcast %359 : vector<2x5x1xf32> to vector<2x5x5xf32>
    %363 = arith.addf %361, %362 : vector<2x5x5xf32>
    %cst_138 = arith.constant dense<0xFF800000> : vector<2x5xf32>
    %364 = vector.multi_reduction <maximumf>, %363, %cst_138 [1] : vector<2x5x5xf32> to vector<2x5xf32>
    %365 = vector.shape_cast %364 : vector<2x5xf32> to vector<2x1x5xf32>
    %366 = vector.broadcast %365 : vector<2x1x5xf32> to vector<2x5x5xf32>
    %367 = arith.cmpf oeq, %363, %366 : vector<2x5x5xf32>
    %c5_i32 = arith.constant 5 : i32
    %368 = vector.broadcast %c5_i32 : i32 to vector<2x5x5xi32>
    %369 = arith.select %367, %347, %368 : vector<2x5x5xi1>, vector<2x5x5xi32>
    %cst_139 = arith.constant dense<2147483647> : vector<2x5xi32>
    %370 = vector.multi_reduction <minsi>, %369, %cst_139 [1] : vector<2x5x5xi32> to vector<2x5xi32>
    %371 = vector.shape_cast %370 : vector<2x5xi32> to vector<2x1x5xi32>
    %372 = vector.extract_strided_slice %337 {offsets = [0, 1, 0], sizes = [2, 1, 5], strides = [1, 1, 1]} : vector<2x8x5xf32> to vector<2x1x5xf32>
    %373 = arith.addf %365, %372 : vector<2x1x5xf32>
    %374 = vector.extract_strided_slice %338 {offsets = [0, 0, 1], sizes = [2, 1, 1], strides = [1, 1, 1]} : vector<2x1x8xi32> to vector<2x1x1xi32>
    %c0_i32 = arith.constant 0 : i32
    %375 = vector.broadcast %c0_i32 : i32 to vector<2x1x1xi32>
    %376 = arith.cmpi sgt, %374, %375 : vector<2x1x1xi32>
    %377 = vector.shape_cast %376 : vector<2x1x1xi1> to vector<2x1x1xi1>
    %378 = vector.broadcast %377 : vector<2x1x1xi1> to vector<2x1x5xi1>
    %379 = arith.select %378, %373, %353 : vector<2x1x5xi1>, vector<2x1x5xf32>
    %380 = vector.shape_cast %346 : vector<5x5xf32> to vector<1x5x5xf32>
    %381 = vector.broadcast %379 : vector<2x1x5xf32> to vector<2x5x5xf32>
    %382 = vector.broadcast %380 : vector<1x5x5xf32> to vector<2x5x5xf32>
    %383 = arith.mulf %381, %382 : vector<2x5x5xf32>
    %cst_140 = arith.constant dense<0.000000e+00> : vector<2x5xf32>
    %384 = vector.multi_reduction <add>, %383, %cst_140 [2] : vector<2x5x5xf32> to vector<2x5xf32>
    %385 = vector.shape_cast %384 : vector<2x5xf32> to vector<2x5x1xf32>
    %386 = vector.shape_cast %341 : vector<5x5xf32> to vector<1x5x5xf32>
    %387 = vector.broadcast %386 : vector<1x5x5xf32> to vector<2x5x5xf32>
    %388 = vector.broadcast %385 : vector<2x5x1xf32> to vector<2x5x5xf32>
    %389 = arith.addf %387, %388 : vector<2x5x5xf32>
    %cst_141 = arith.constant dense<0xFF800000> : vector<2x5xf32>
    %390 = vector.multi_reduction <maximumf>, %389, %cst_141 [1] : vector<2x5x5xf32> to vector<2x5xf32>
    %391 = vector.shape_cast %390 : vector<2x5xf32> to vector<2x1x5xf32>
    %392 = vector.broadcast %391 : vector<2x1x5xf32> to vector<2x5x5xf32>
    %393 = arith.cmpf oeq, %389, %392 : vector<2x5x5xf32>
    %c5_i32_142 = arith.constant 5 : i32
    %394 = vector.broadcast %c5_i32_142 : i32 to vector<2x5x5xi32>
    %395 = arith.select %393, %347, %394 : vector<2x5x5xi1>, vector<2x5x5xi32>
    %cst_143 = arith.constant dense<2147483647> : vector<2x5xi32>
    %396 = vector.multi_reduction <minsi>, %395, %cst_143 [1] : vector<2x5x5xi32> to vector<2x5xi32>
    %397 = vector.shape_cast %396 : vector<2x5xi32> to vector<2x1x5xi32>
    %398 = vector.extract_strided_slice %337 {offsets = [0, 2, 0], sizes = [2, 1, 5], strides = [1, 1, 1]} : vector<2x8x5xf32> to vector<2x1x5xf32>
    %399 = arith.addf %391, %398 : vector<2x1x5xf32>
    %400 = vector.extract_strided_slice %338 {offsets = [0, 0, 2], sizes = [2, 1, 1], strides = [1, 1, 1]} : vector<2x1x8xi32> to vector<2x1x1xi32>
    %c0_i32_144 = arith.constant 0 : i32
    %401 = vector.broadcast %c0_i32_144 : i32 to vector<2x1x1xi32>
    %402 = arith.cmpi sgt, %400, %401 : vector<2x1x1xi32>
    %403 = vector.shape_cast %402 : vector<2x1x1xi1> to vector<2x1x1xi1>
    %404 = vector.broadcast %403 : vector<2x1x1xi1> to vector<2x1x5xi1>
    %405 = arith.select %404, %399, %379 : vector<2x1x5xi1>, vector<2x1x5xf32>
    %406 = vector.shape_cast %346 : vector<5x5xf32> to vector<1x5x5xf32>
    %407 = vector.broadcast %405 : vector<2x1x5xf32> to vector<2x5x5xf32>
    %408 = vector.broadcast %406 : vector<1x5x5xf32> to vector<2x5x5xf32>
    %409 = arith.mulf %407, %408 : vector<2x5x5xf32>
    %cst_145 = arith.constant dense<0.000000e+00> : vector<2x5xf32>
    %410 = vector.multi_reduction <add>, %409, %cst_145 [2] : vector<2x5x5xf32> to vector<2x5xf32>
    %411 = vector.shape_cast %410 : vector<2x5xf32> to vector<2x5x1xf32>
    %412 = vector.shape_cast %341 : vector<5x5xf32> to vector<1x5x5xf32>
    %413 = vector.broadcast %412 : vector<1x5x5xf32> to vector<2x5x5xf32>
    %414 = vector.broadcast %411 : vector<2x5x1xf32> to vector<2x5x5xf32>
    %415 = arith.addf %413, %414 : vector<2x5x5xf32>
    %cst_146 = arith.constant dense<0xFF800000> : vector<2x5xf32>
    %416 = vector.multi_reduction <maximumf>, %415, %cst_146 [1] : vector<2x5x5xf32> to vector<2x5xf32>
    %417 = vector.shape_cast %416 : vector<2x5xf32> to vector<2x1x5xf32>
    %418 = vector.broadcast %417 : vector<2x1x5xf32> to vector<2x5x5xf32>
    %419 = arith.cmpf oeq, %415, %418 : vector<2x5x5xf32>
    %c5_i32_147 = arith.constant 5 : i32
    %420 = vector.broadcast %c5_i32_147 : i32 to vector<2x5x5xi32>
    %421 = arith.select %419, %347, %420 : vector<2x5x5xi1>, vector<2x5x5xi32>
    %cst_148 = arith.constant dense<2147483647> : vector<2x5xi32>
    %422 = vector.multi_reduction <minsi>, %421, %cst_148 [1] : vector<2x5x5xi32> to vector<2x5xi32>
    %423 = vector.shape_cast %422 : vector<2x5xi32> to vector<2x1x5xi32>
    %424 = vector.extract_strided_slice %337 {offsets = [0, 3, 0], sizes = [2, 1, 5], strides = [1, 1, 1]} : vector<2x8x5xf32> to vector<2x1x5xf32>
    %425 = arith.addf %417, %424 : vector<2x1x5xf32>
    %426 = vector.extract_strided_slice %338 {offsets = [0, 0, 3], sizes = [2, 1, 1], strides = [1, 1, 1]} : vector<2x1x8xi32> to vector<2x1x1xi32>
    %c0_i32_149 = arith.constant 0 : i32
    %427 = vector.broadcast %c0_i32_149 : i32 to vector<2x1x1xi32>
    %428 = arith.cmpi sgt, %426, %427 : vector<2x1x1xi32>
    %429 = vector.shape_cast %428 : vector<2x1x1xi1> to vector<2x1x1xi1>
    %430 = vector.broadcast %429 : vector<2x1x1xi1> to vector<2x1x5xi1>
    %431 = arith.select %430, %425, %405 : vector<2x1x5xi1>, vector<2x1x5xf32>
    %432 = vector.shape_cast %346 : vector<5x5xf32> to vector<1x5x5xf32>
    %433 = vector.broadcast %431 : vector<2x1x5xf32> to vector<2x5x5xf32>
    %434 = vector.broadcast %432 : vector<1x5x5xf32> to vector<2x5x5xf32>
    %435 = arith.mulf %433, %434 : vector<2x5x5xf32>
    %cst_150 = arith.constant dense<0.000000e+00> : vector<2x5xf32>
    %436 = vector.multi_reduction <add>, %435, %cst_150 [2] : vector<2x5x5xf32> to vector<2x5xf32>
    %437 = vector.shape_cast %436 : vector<2x5xf32> to vector<2x5x1xf32>
    %438 = vector.shape_cast %341 : vector<5x5xf32> to vector<1x5x5xf32>
    %439 = vector.broadcast %438 : vector<1x5x5xf32> to vector<2x5x5xf32>
    %440 = vector.broadcast %437 : vector<2x5x1xf32> to vector<2x5x5xf32>
    %441 = arith.addf %439, %440 : vector<2x5x5xf32>
    %cst_151 = arith.constant dense<0xFF800000> : vector<2x5xf32>
    %442 = vector.multi_reduction <maximumf>, %441, %cst_151 [1] : vector<2x5x5xf32> to vector<2x5xf32>
    %443 = vector.shape_cast %442 : vector<2x5xf32> to vector<2x1x5xf32>
    %444 = vector.broadcast %443 : vector<2x1x5xf32> to vector<2x5x5xf32>
    %445 = arith.cmpf oeq, %441, %444 : vector<2x5x5xf32>
    %c5_i32_152 = arith.constant 5 : i32
    %446 = vector.broadcast %c5_i32_152 : i32 to vector<2x5x5xi32>
    %447 = arith.select %445, %347, %446 : vector<2x5x5xi1>, vector<2x5x5xi32>
    %cst_153 = arith.constant dense<2147483647> : vector<2x5xi32>
    %448 = vector.multi_reduction <minsi>, %447, %cst_153 [1] : vector<2x5x5xi32> to vector<2x5xi32>
    %449 = vector.shape_cast %448 : vector<2x5xi32> to vector<2x1x5xi32>
    %450 = vector.extract_strided_slice %337 {offsets = [0, 4, 0], sizes = [2, 1, 5], strides = [1, 1, 1]} : vector<2x8x5xf32> to vector<2x1x5xf32>
    %451 = arith.addf %443, %450 : vector<2x1x5xf32>
    %452 = vector.extract_strided_slice %338 {offsets = [0, 0, 4], sizes = [2, 1, 1], strides = [1, 1, 1]} : vector<2x1x8xi32> to vector<2x1x1xi32>
    %c0_i32_154 = arith.constant 0 : i32
    %453 = vector.broadcast %c0_i32_154 : i32 to vector<2x1x1xi32>
    %454 = arith.cmpi sgt, %452, %453 : vector<2x1x1xi32>
    %455 = vector.shape_cast %454 : vector<2x1x1xi1> to vector<2x1x1xi1>
    %456 = vector.broadcast %455 : vector<2x1x1xi1> to vector<2x1x5xi1>
    %457 = arith.select %456, %451, %431 : vector<2x1x5xi1>, vector<2x1x5xf32>
    %458 = vector.shape_cast %346 : vector<5x5xf32> to vector<1x5x5xf32>
    %459 = vector.broadcast %457 : vector<2x1x5xf32> to vector<2x5x5xf32>
    %460 = vector.broadcast %458 : vector<1x5x5xf32> to vector<2x5x5xf32>
    %461 = arith.mulf %459, %460 : vector<2x5x5xf32>
    %cst_155 = arith.constant dense<0.000000e+00> : vector<2x5xf32>
    %462 = vector.multi_reduction <add>, %461, %cst_155 [2] : vector<2x5x5xf32> to vector<2x5xf32>
    %463 = vector.shape_cast %462 : vector<2x5xf32> to vector<2x5x1xf32>
    %464 = vector.shape_cast %341 : vector<5x5xf32> to vector<1x5x5xf32>
    %465 = vector.broadcast %464 : vector<1x5x5xf32> to vector<2x5x5xf32>
    %466 = vector.broadcast %463 : vector<2x5x1xf32> to vector<2x5x5xf32>
    %467 = arith.addf %465, %466 : vector<2x5x5xf32>
    %cst_156 = arith.constant dense<0xFF800000> : vector<2x5xf32>
    %468 = vector.multi_reduction <maximumf>, %467, %cst_156 [1] : vector<2x5x5xf32> to vector<2x5xf32>
    %469 = vector.shape_cast %468 : vector<2x5xf32> to vector<2x1x5xf32>
    %470 = vector.broadcast %469 : vector<2x1x5xf32> to vector<2x5x5xf32>
    %471 = arith.cmpf oeq, %467, %470 : vector<2x5x5xf32>
    %c5_i32_157 = arith.constant 5 : i32
    %472 = vector.broadcast %c5_i32_157 : i32 to vector<2x5x5xi32>
    %473 = arith.select %471, %347, %472 : vector<2x5x5xi1>, vector<2x5x5xi32>
    %cst_158 = arith.constant dense<2147483647> : vector<2x5xi32>
    %474 = vector.multi_reduction <minsi>, %473, %cst_158 [1] : vector<2x5x5xi32> to vector<2x5xi32>
    %475 = vector.shape_cast %474 : vector<2x5xi32> to vector<2x1x5xi32>
    %476 = vector.extract_strided_slice %337 {offsets = [0, 5, 0], sizes = [2, 1, 5], strides = [1, 1, 1]} : vector<2x8x5xf32> to vector<2x1x5xf32>
    %477 = arith.addf %469, %476 : vector<2x1x5xf32>
    %478 = vector.extract_strided_slice %338 {offsets = [0, 0, 5], sizes = [2, 1, 1], strides = [1, 1, 1]} : vector<2x1x8xi32> to vector<2x1x1xi32>
    %c0_i32_159 = arith.constant 0 : i32
    %479 = vector.broadcast %c0_i32_159 : i32 to vector<2x1x1xi32>
    %480 = arith.cmpi sgt, %478, %479 : vector<2x1x1xi32>
    %481 = vector.shape_cast %480 : vector<2x1x1xi1> to vector<2x1x1xi1>
    %482 = vector.broadcast %481 : vector<2x1x1xi1> to vector<2x1x5xi1>
    %483 = arith.select %482, %477, %457 : vector<2x1x5xi1>, vector<2x1x5xf32>
    %484 = vector.shape_cast %346 : vector<5x5xf32> to vector<1x5x5xf32>
    %485 = vector.broadcast %483 : vector<2x1x5xf32> to vector<2x5x5xf32>
    %486 = vector.broadcast %484 : vector<1x5x5xf32> to vector<2x5x5xf32>
    %487 = arith.mulf %485, %486 : vector<2x5x5xf32>
    %cst_160 = arith.constant dense<0.000000e+00> : vector<2x5xf32>
    %488 = vector.multi_reduction <add>, %487, %cst_160 [2] : vector<2x5x5xf32> to vector<2x5xf32>
    %489 = vector.shape_cast %488 : vector<2x5xf32> to vector<2x5x1xf32>
    %490 = vector.shape_cast %341 : vector<5x5xf32> to vector<1x5x5xf32>
    %491 = vector.broadcast %490 : vector<1x5x5xf32> to vector<2x5x5xf32>
    %492 = vector.broadcast %489 : vector<2x5x1xf32> to vector<2x5x5xf32>
    %493 = arith.addf %491, %492 : vector<2x5x5xf32>
    %cst_161 = arith.constant dense<0xFF800000> : vector<2x5xf32>
    %494 = vector.multi_reduction <maximumf>, %493, %cst_161 [1] : vector<2x5x5xf32> to vector<2x5xf32>
    %495 = vector.shape_cast %494 : vector<2x5xf32> to vector<2x1x5xf32>
    %496 = vector.broadcast %495 : vector<2x1x5xf32> to vector<2x5x5xf32>
    %497 = arith.cmpf oeq, %493, %496 : vector<2x5x5xf32>
    %c5_i32_162 = arith.constant 5 : i32
    %498 = vector.broadcast %c5_i32_162 : i32 to vector<2x5x5xi32>
    %499 = arith.select %497, %347, %498 : vector<2x5x5xi1>, vector<2x5x5xi32>
    %cst_163 = arith.constant dense<2147483647> : vector<2x5xi32>
    %500 = vector.multi_reduction <minsi>, %499, %cst_163 [1] : vector<2x5x5xi32> to vector<2x5xi32>
    %501 = vector.shape_cast %500 : vector<2x5xi32> to vector<2x1x5xi32>
    %502 = vector.extract_strided_slice %337 {offsets = [0, 6, 0], sizes = [2, 1, 5], strides = [1, 1, 1]} : vector<2x8x5xf32> to vector<2x1x5xf32>
    %503 = arith.addf %495, %502 : vector<2x1x5xf32>
    %504 = vector.extract_strided_slice %338 {offsets = [0, 0, 6], sizes = [2, 1, 1], strides = [1, 1, 1]} : vector<2x1x8xi32> to vector<2x1x1xi32>
    %c0_i32_164 = arith.constant 0 : i32
    %505 = vector.broadcast %c0_i32_164 : i32 to vector<2x1x1xi32>
    %506 = arith.cmpi sgt, %504, %505 : vector<2x1x1xi32>
    %507 = vector.shape_cast %506 : vector<2x1x1xi1> to vector<2x1x1xi1>
    %508 = vector.broadcast %507 : vector<2x1x1xi1> to vector<2x1x5xi1>
    %509 = arith.select %508, %503, %483 : vector<2x1x5xi1>, vector<2x1x5xf32>
    %510 = vector.shape_cast %346 : vector<5x5xf32> to vector<1x5x5xf32>
    %511 = vector.broadcast %509 : vector<2x1x5xf32> to vector<2x5x5xf32>
    %512 = vector.broadcast %510 : vector<1x5x5xf32> to vector<2x5x5xf32>
    %513 = arith.mulf %511, %512 : vector<2x5x5xf32>
    %cst_165 = arith.constant dense<0.000000e+00> : vector<2x5xf32>
    %514 = vector.multi_reduction <add>, %513, %cst_165 [2] : vector<2x5x5xf32> to vector<2x5xf32>
    %515 = vector.shape_cast %514 : vector<2x5xf32> to vector<2x5x1xf32>
    %516 = vector.shape_cast %341 : vector<5x5xf32> to vector<1x5x5xf32>
    %517 = vector.broadcast %516 : vector<1x5x5xf32> to vector<2x5x5xf32>
    %518 = vector.broadcast %515 : vector<2x5x1xf32> to vector<2x5x5xf32>
    %519 = arith.addf %517, %518 : vector<2x5x5xf32>
    %cst_166 = arith.constant dense<0xFF800000> : vector<2x5xf32>
    %520 = vector.multi_reduction <maximumf>, %519, %cst_166 [1] : vector<2x5x5xf32> to vector<2x5xf32>
    %521 = vector.shape_cast %520 : vector<2x5xf32> to vector<2x1x5xf32>
    %522 = vector.broadcast %521 : vector<2x1x5xf32> to vector<2x5x5xf32>
    %523 = arith.cmpf oeq, %519, %522 : vector<2x5x5xf32>
    %c5_i32_167 = arith.constant 5 : i32
    %524 = vector.broadcast %c5_i32_167 : i32 to vector<2x5x5xi32>
    %525 = arith.select %523, %347, %524 : vector<2x5x5xi1>, vector<2x5x5xi32>
    %cst_168 = arith.constant dense<2147483647> : vector<2x5xi32>
    %526 = vector.multi_reduction <minsi>, %525, %cst_168 [1] : vector<2x5x5xi32> to vector<2x5xi32>
    %527 = vector.shape_cast %526 : vector<2x5xi32> to vector<2x1x5xi32>
    %528 = vector.extract_strided_slice %337 {offsets = [0, 7, 0], sizes = [2, 1, 5], strides = [1, 1, 1]} : vector<2x8x5xf32> to vector<2x1x5xf32>
    %529 = arith.addf %521, %528 : vector<2x1x5xf32>
    %530 = vector.extract_strided_slice %338 {offsets = [0, 0, 7], sizes = [2, 1, 1], strides = [1, 1, 1]} : vector<2x1x8xi32> to vector<2x1x1xi32>
    %c0_i32_169 = arith.constant 0 : i32
    %531 = vector.broadcast %c0_i32_169 : i32 to vector<2x1x1xi32>
    %532 = arith.cmpi sgt, %530, %531 : vector<2x1x1xi32>
    %533 = vector.shape_cast %532 : vector<2x1x1xi1> to vector<2x1x1xi1>
    %534 = vector.broadcast %533 : vector<2x1x1xi1> to vector<2x1x5xi1>
    %535 = arith.select %534, %529, %509 : vector<2x1x5xi1>, vector<2x1x5xf32>
    %536 = vector.shape_cast %340 : vector<1x5xf32> to vector<1x1x5xf32>
    %537 = vector.broadcast %536 : vector<1x1x5xf32> to vector<2x1x5xf32>
    %538 = arith.addf %535, %537 : vector<2x1x5xf32>
    %cst_170 = arith.constant dense<0xFF800000> : vector<2x1xf32>
    %539 = vector.multi_reduction <maximumf>, %538, %cst_170 [2] : vector<2x1x5xf32> to vector<2x1xf32>
    %540 = vector.shape_cast %539 : vector<2x1xf32> to vector<2x1x1xf32>
    %541 = vector.broadcast %540 : vector<2x1x1xf32> to vector<2x1x5xf32>
    %542 = arith.cmpf oeq, %538, %541 : vector<2x1x5xf32>
    %c5_i32_171 = arith.constant 5 : i32
    %543 = vector.broadcast %c5_i32_171 : i32 to vector<2x1x5xi32>
    %544 = arith.select %542, %348, %543 : vector<2x1x5xi1>, vector<2x1x5xi32>
    %cst_172 = arith.constant dense<2147483647> : vector<2x1xi32>
    %545 = vector.multi_reduction <minsi>, %544, %cst_172 [2] : vector<2x1x5xi32> to vector<2x1xi32>
    %546 = vector.shape_cast %545 : vector<2x1xi32> to vector<2x1x1xi32>
    %547 = arith.sitofp %338 : vector<2x1x8xi32> to vector<2x1x8xf32>
    %cst_173 = arith.constant dense<0.000000e+00> : vector<2x1xf32>
    %548 = vector.multi_reduction <add>, %547, %cst_173 [2] : vector<2x1x8xf32> to vector<2x1xf32>
    %549 = vector.shape_cast %548 : vector<2x1xf32> to vector<2x1x1xf32>
    %cst_174 = arith.constant 1.000000e+00 : f32
    %550 = vector.broadcast %cst_174 : f32 to vector<2x1x1xf32>
    %551 = arith.subf %549, %550 : vector<2x1x1xf32>
    %552 = arith.fptosi %551 : vector<2x1x1xf32> to vector<2x1x1xi32>
    %553 = vector.broadcast %552 : vector<2x1x1xi32> to vector<2x1x8xi32>
    %554 = arith.cmpi eq, %349, %553 : vector<2x1x8xi32>
    %c0_i32_175 = arith.constant 0 : i32
    %555 = vector.shape_cast %546 : vector<2x1x1xi32> to vector<2x1x1xi32>
    %556 = vector.broadcast %555 : vector<2x1x1xi32> to vector<2x1x8xi32>
    %557 = vector.broadcast %c0_i32_175 : i32 to vector<2x1x8xi32>
    %558 = arith.select %554, %556, %557 : vector<2x1x8xi1>, vector<2x1x8xi32>
    %559 = vector.broadcast %546 : vector<2x1x1xi32> to vector<2x1x5xi32>
    %560 = arith.cmpi eq, %348, %559 : vector<2x1x5xi32>
    %c5_i32_176 = arith.constant 5 : i32
    %561 = vector.broadcast %c5_i32_176 : i32 to vector<2x1x5xi32>
    %562 = arith.select %560, %527, %561 : vector<2x1x5xi1>, vector<2x1x5xi32>
    %cst_177 = arith.constant dense<2147483647> : vector<2x1xi32>
    %563 = vector.multi_reduction <minsi>, %562, %cst_177 [2] : vector<2x1x5xi32> to vector<2x1xi32>
    %564 = vector.shape_cast %563 : vector<2x1xi32> to vector<2x1x1xi32>
    %c7_i32 = arith.constant 7 : i32
    %565 = vector.broadcast %c7_i32 : i32 to vector<2x1x1xi32>
    %566 = arith.cmpi sge, %552, %565 : vector<2x1x1xi32>
    %567 = arith.select %566, %564, %546 : vector<2x1x1xi1>, vector<2x1x1xi32>
    %c6_i32 = arith.constant 6 : i32
    %568 = vector.broadcast %c6_i32 : i32 to vector<2x1x8xi32>
    %569 = arith.cmpi eq, %349, %568 : vector<2x1x8xi32>
    %570 = vector.broadcast %566 : vector<2x1x1xi1> to vector<2x1x8xi1>
    %571 = arith.andi %570, %569 : vector<2x1x8xi1>
    %572 = vector.shape_cast %564 : vector<2x1x1xi32> to vector<2x1x1xi32>
    %573 = vector.broadcast %572 : vector<2x1x1xi32> to vector<2x1x8xi32>
    %574 = arith.select %571, %573, %558 : vector<2x1x8xi1>, vector<2x1x8xi32>
    %575 = vector.broadcast %567 : vector<2x1x1xi32> to vector<2x1x5xi32>
    %576 = arith.cmpi eq, %348, %575 : vector<2x1x5xi32>
    %c5_i32_178 = arith.constant 5 : i32
    %577 = vector.broadcast %c5_i32_178 : i32 to vector<2x1x5xi32>
    %578 = arith.select %576, %501, %577 : vector<2x1x5xi1>, vector<2x1x5xi32>
    %cst_179 = arith.constant dense<2147483647> : vector<2x1xi32>
    %579 = vector.multi_reduction <minsi>, %578, %cst_179 [2] : vector<2x1x5xi32> to vector<2x1xi32>
    %580 = vector.shape_cast %579 : vector<2x1xi32> to vector<2x1x1xi32>
    %c6_i32_180 = arith.constant 6 : i32
    %581 = vector.broadcast %c6_i32_180 : i32 to vector<2x1x1xi32>
    %582 = arith.cmpi sge, %552, %581 : vector<2x1x1xi32>
    %583 = arith.select %582, %580, %567 : vector<2x1x1xi1>, vector<2x1x1xi32>
    %c5_i32_181 = arith.constant 5 : i32
    %584 = vector.broadcast %c5_i32_181 : i32 to vector<2x1x8xi32>
    %585 = arith.cmpi eq, %349, %584 : vector<2x1x8xi32>
    %586 = vector.broadcast %582 : vector<2x1x1xi1> to vector<2x1x8xi1>
    %587 = arith.andi %586, %585 : vector<2x1x8xi1>
    %588 = vector.shape_cast %580 : vector<2x1x1xi32> to vector<2x1x1xi32>
    %589 = vector.broadcast %588 : vector<2x1x1xi32> to vector<2x1x8xi32>
    %590 = arith.select %587, %589, %574 : vector<2x1x8xi1>, vector<2x1x8xi32>
    %591 = vector.broadcast %583 : vector<2x1x1xi32> to vector<2x1x5xi32>
    %592 = arith.cmpi eq, %348, %591 : vector<2x1x5xi32>
    %c5_i32_182 = arith.constant 5 : i32
    %593 = vector.broadcast %c5_i32_182 : i32 to vector<2x1x5xi32>
    %594 = arith.select %592, %475, %593 : vector<2x1x5xi1>, vector<2x1x5xi32>
    %cst_183 = arith.constant dense<2147483647> : vector<2x1xi32>
    %595 = vector.multi_reduction <minsi>, %594, %cst_183 [2] : vector<2x1x5xi32> to vector<2x1xi32>
    %596 = vector.shape_cast %595 : vector<2x1xi32> to vector<2x1x1xi32>
    %c5_i32_184 = arith.constant 5 : i32
    %597 = vector.broadcast %c5_i32_184 : i32 to vector<2x1x1xi32>
    %598 = arith.cmpi sge, %552, %597 : vector<2x1x1xi32>
    %599 = arith.select %598, %596, %583 : vector<2x1x1xi1>, vector<2x1x1xi32>
    %c4_i32 = arith.constant 4 : i32
    %600 = vector.broadcast %c4_i32 : i32 to vector<2x1x8xi32>
    %601 = arith.cmpi eq, %349, %600 : vector<2x1x8xi32>
    %602 = vector.broadcast %598 : vector<2x1x1xi1> to vector<2x1x8xi1>
    %603 = arith.andi %602, %601 : vector<2x1x8xi1>
    %604 = vector.shape_cast %596 : vector<2x1x1xi32> to vector<2x1x1xi32>
    %605 = vector.broadcast %604 : vector<2x1x1xi32> to vector<2x1x8xi32>
    %606 = arith.select %603, %605, %590 : vector<2x1x8xi1>, vector<2x1x8xi32>
    %607 = vector.broadcast %599 : vector<2x1x1xi32> to vector<2x1x5xi32>
    %608 = arith.cmpi eq, %348, %607 : vector<2x1x5xi32>
    %c5_i32_185 = arith.constant 5 : i32
    %609 = vector.broadcast %c5_i32_185 : i32 to vector<2x1x5xi32>
    %610 = arith.select %608, %449, %609 : vector<2x1x5xi1>, vector<2x1x5xi32>
    %cst_186 = arith.constant dense<2147483647> : vector<2x1xi32>
    %611 = vector.multi_reduction <minsi>, %610, %cst_186 [2] : vector<2x1x5xi32> to vector<2x1xi32>
    %612 = vector.shape_cast %611 : vector<2x1xi32> to vector<2x1x1xi32>
    %c4_i32_187 = arith.constant 4 : i32
    %613 = vector.broadcast %c4_i32_187 : i32 to vector<2x1x1xi32>
    %614 = arith.cmpi sge, %552, %613 : vector<2x1x1xi32>
    %615 = arith.select %614, %612, %599 : vector<2x1x1xi1>, vector<2x1x1xi32>
    %c3_i32 = arith.constant 3 : i32
    %616 = vector.broadcast %c3_i32 : i32 to vector<2x1x8xi32>
    %617 = arith.cmpi eq, %349, %616 : vector<2x1x8xi32>
    %618 = vector.broadcast %614 : vector<2x1x1xi1> to vector<2x1x8xi1>
    %619 = arith.andi %618, %617 : vector<2x1x8xi1>
    %620 = vector.shape_cast %612 : vector<2x1x1xi32> to vector<2x1x1xi32>
    %621 = vector.broadcast %620 : vector<2x1x1xi32> to vector<2x1x8xi32>
    %622 = arith.select %619, %621, %606 : vector<2x1x8xi1>, vector<2x1x8xi32>
    %623 = vector.broadcast %615 : vector<2x1x1xi32> to vector<2x1x5xi32>
    %624 = arith.cmpi eq, %348, %623 : vector<2x1x5xi32>
    %c5_i32_188 = arith.constant 5 : i32
    %625 = vector.broadcast %c5_i32_188 : i32 to vector<2x1x5xi32>
    %626 = arith.select %624, %423, %625 : vector<2x1x5xi1>, vector<2x1x5xi32>
    %cst_189 = arith.constant dense<2147483647> : vector<2x1xi32>
    %627 = vector.multi_reduction <minsi>, %626, %cst_189 [2] : vector<2x1x5xi32> to vector<2x1xi32>
    %628 = vector.shape_cast %627 : vector<2x1xi32> to vector<2x1x1xi32>
    %c3_i32_190 = arith.constant 3 : i32
    %629 = vector.broadcast %c3_i32_190 : i32 to vector<2x1x1xi32>
    %630 = arith.cmpi sge, %552, %629 : vector<2x1x1xi32>
    %631 = arith.select %630, %628, %615 : vector<2x1x1xi1>, vector<2x1x1xi32>
    %c2_i32 = arith.constant 2 : i32
    %632 = vector.broadcast %c2_i32 : i32 to vector<2x1x8xi32>
    %633 = arith.cmpi eq, %349, %632 : vector<2x1x8xi32>
    %634 = vector.broadcast %630 : vector<2x1x1xi1> to vector<2x1x8xi1>
    %635 = arith.andi %634, %633 : vector<2x1x8xi1>
    %636 = vector.shape_cast %628 : vector<2x1x1xi32> to vector<2x1x1xi32>
    %637 = vector.broadcast %636 : vector<2x1x1xi32> to vector<2x1x8xi32>
    %638 = arith.select %635, %637, %622 : vector<2x1x8xi1>, vector<2x1x8xi32>
    %639 = vector.broadcast %631 : vector<2x1x1xi32> to vector<2x1x5xi32>
    %640 = arith.cmpi eq, %348, %639 : vector<2x1x5xi32>
    %c5_i32_191 = arith.constant 5 : i32
    %641 = vector.broadcast %c5_i32_191 : i32 to vector<2x1x5xi32>
    %642 = arith.select %640, %397, %641 : vector<2x1x5xi1>, vector<2x1x5xi32>
    %cst_192 = arith.constant dense<2147483647> : vector<2x1xi32>
    %643 = vector.multi_reduction <minsi>, %642, %cst_192 [2] : vector<2x1x5xi32> to vector<2x1xi32>
    %644 = vector.shape_cast %643 : vector<2x1xi32> to vector<2x1x1xi32>
    %c2_i32_193 = arith.constant 2 : i32
    %645 = vector.broadcast %c2_i32_193 : i32 to vector<2x1x1xi32>
    %646 = arith.cmpi sge, %552, %645 : vector<2x1x1xi32>
    %647 = arith.select %646, %644, %631 : vector<2x1x1xi1>, vector<2x1x1xi32>
    %c1_i32 = arith.constant 1 : i32
    %648 = vector.broadcast %c1_i32 : i32 to vector<2x1x8xi32>
    %649 = arith.cmpi eq, %349, %648 : vector<2x1x8xi32>
    %650 = vector.broadcast %646 : vector<2x1x1xi1> to vector<2x1x8xi1>
    %651 = arith.andi %650, %649 : vector<2x1x8xi1>
    %652 = vector.shape_cast %644 : vector<2x1x1xi32> to vector<2x1x1xi32>
    %653 = vector.broadcast %652 : vector<2x1x1xi32> to vector<2x1x8xi32>
    %654 = arith.select %651, %653, %638 : vector<2x1x8xi1>, vector<2x1x8xi32>
    %655 = vector.broadcast %647 : vector<2x1x1xi32> to vector<2x1x5xi32>
    %656 = arith.cmpi eq, %348, %655 : vector<2x1x5xi32>
    %c5_i32_194 = arith.constant 5 : i32
    %657 = vector.broadcast %c5_i32_194 : i32 to vector<2x1x5xi32>
    %658 = arith.select %656, %371, %657 : vector<2x1x5xi1>, vector<2x1x5xi32>
    %cst_195 = arith.constant dense<2147483647> : vector<2x1xi32>
    %659 = vector.multi_reduction <minsi>, %658, %cst_195 [2] : vector<2x1x5xi32> to vector<2x1xi32>
    %660 = vector.shape_cast %659 : vector<2x1xi32> to vector<2x1x1xi32>
    %c1_i32_196 = arith.constant 1 : i32
    %661 = vector.broadcast %c1_i32_196 : i32 to vector<2x1x1xi32>
    %662 = arith.cmpi sge, %552, %661 : vector<2x1x1xi32>
    %c0_i32_197 = arith.constant 0 : i32
    %663 = vector.broadcast %c0_i32_197 : i32 to vector<2x1x8xi32>
    %664 = arith.cmpi eq, %349, %663 : vector<2x1x8xi32>
    %665 = vector.broadcast %662 : vector<2x1x1xi1> to vector<2x1x8xi1>
    %666 = arith.andi %665, %664 : vector<2x1x8xi1>
    %667 = vector.shape_cast %660 : vector<2x1x1xi32> to vector<2x1x1xi32>
    %668 = vector.broadcast %667 : vector<2x1x1xi32> to vector<2x1x8xi32>
    %669 = arith.select %666, %668, %654 : vector<2x1x8xi1>, vector<2x1x8xi32>
    %c0_198 = arith.constant 0 : index
    %c0_199 = arith.constant 0 : index
    %c0_200 = arith.constant 0 : index
    %670 = vector.load %arg12[%c0_198, %c0_199, %c0_200] : memref<2x1x8xi32, #tpu.memory_space<vmem>>, vector<2x1x8xi32>
    tpu.vector_store %arg12[%c0_198, %c0_199, %c0_200], %669 {strides = array<i32>} : memref<2x1x8xi32, #tpu.memory_space<vmem>>, vector<2x1x8xi32>,
    return
  }
}

</mosaic_0001>

<bundles_post_ra>
// kernel: tile.16
= control target key start
LH: loop header
LB: loop body
LE: loop exit
PB: predicated region body
PF: predicated region fallthrough
CT: control target
= control target key end

     0   :  { %vm7_vm0 = vcmask 64512   ;;  %vm13_vm1 = vcmask 130112   ;;  %s39_s0 = inlined_call_operand.vmem [shape: s32[2,8], index: 0, kind: input, shape index: {}]   ;;  %s40_s1 = inlined_call_operand.vmem [shape: s32[16], index: 1, kind: output, shape index: {}]  }
   0x1   :  { %v4_v0 = vld [vmem:[%s39_s0] sm:$0x3]  ;;  %s22_s0 = smov 8  }
   0x2   :  { %5 = vst [vmem:[#allocation1] sm:$0x3] %v4_v0 }
   0x9   :  { %v10_v1 = vld [vmem:[#allocation1 + $0x1] sm:$0x1]   ;;  %v6_v2 = vld [vmem:[#allocation1] sm:$0x1]  }
   0xa   :  { %11 = vrot.lane.b32.xlu0 %v10_v1, %s22_s0  ;;  %8 = vst.msk [vmem:[#allocation0] sm:$0x1] %vm7_vm0, %v6_v2  }
  0x7c   :  { %v12_v3 = vpop.permute.xlu0 %11  }
  0x7d   :  { %14 = vst.msk [vmem:[#allocation0] sm:$0x1] %vm13_vm1, %v12_v3  }
  0x84   :  { %v18_v4 = vld [vmem:[#allocation0] sm:$0x1] }
  0x85   :  { %20 = vst [vmem:[%s40_s1] sm:$0x1] %v18_v4 }

// kernel: tile.17
= control target key start
LH: loop header
LB: loop body
LE: loop exit
PB: predicated region body
PF: predicated region fallthrough
CT: control target
= control target key end

     0   :  { %s22_s0 = inlined_call_operand.vmem [shape: s32[16], index: 0, kind: input, shape index: {}]   ;;  %s23_s1 = inlined_call_operand.vmem [shape: s32[4,16], index: 1, kind: output, shape index: {}]  }
   0x1   :  { %v4_v0 = vld [vmem:[%s22_s0] ss:$0 sm:$0xff] }
   0x2   :  { %5 = vst [vmem:[%s23_s1] sm:$0xf] %v4_v0 }

// kernel: eq.22
= control target key start
LH: loop header
LB: loop body
LE: loop exit
PB: predicated region body
PF: predicated region fallthrough
CT: control target
= control target key end

     0   :  { %vm7_vm0 = vcmask 130048   ;;  %s37_s8 = smov 16   ;;  %s38_s9 = smov 32   ;;  %vm13_vm1 = vcmask 523648   ;;  %vm19_vm2 = vcmask 392448   ;;  %vm25_vm3 = vcmask 261248   ;;  %s55_s0 = inlined_call_operand.vmem [shape: s32[4,16], index: 0, kind: input, shape index: {}]   ;;  %s56_s1 = inlined_call_operand.vmem [shape: s32[64], index: 1, kind: output, shape index: {}]  }
   0x1   :  { %v4_v0 = vld [vmem:[%s55_s0] sm:$0xf]  ;;  %s36_s0 = smov 48  }
   0x2   :  { %5 = vst [vmem:[#allocation1] sm:$0xf] %v4_v0 }
   0x9   :  { %v10_v1 = vld [vmem:[#allocation1 + $0x3] sm:$0x1]   ;;  %v22_v2 = vld [vmem:[#allocation1 + $0x1] sm:$0x1]   ;;  %v6_v3 = vld [vmem:[#allocation1] sm:$0x1]  }
   0xa   :  { %11 = vrot.lane.b32.xlu0 %v10_v1, %s36_s0  ;;  %23 = vrot.lane.b32.xlu1 %v22_v2, %s37_s8  ;;  %v16_v4 = vld [vmem:[#allocation1 + $0x2] sm:$0x1]   ;;  %8 = vst.msk [vmem:[#allocation0] sm:$0x1] %vm7_vm0, %v6_v3  }
   0xe   :  { %17 = vrot.lane.b32.xlu0 %v16_v4, %s38_s9 }
  0x7c   :  { %v12_v5 = vpop.permute.xlu0 %11   ;;  %v24_v6 = vpop.permute.xlu1 %23  }
  0x7d   :  { %14 = vst.msk [vmem:[#allocation0] sm:$0x1] %vm13_vm1, %v12_v5  }
  0x80   :  { %v18_v7 = vpop.permute.xlu0 %17  }
  0x81   :  { %20 = vst.msk [vmem:[#allocation0] sm:$0x1] %vm19_vm2, %v18_v7  }
  0x82   :  { %26 = vst.msk [vmem:[#allocation0] sm:$0x1] %vm25_vm3, %v24_v6  }
  0x89   :  { %v30_v8 = vld [vmem:[#allocation0] sm:$0x1] }
  0x8a   :  { %32 = vst [vmem:[%s56_s1] sm:$0x1] %v30_v8 }

// kernel: bert_crf_decode.1
= control target key start
LH: loop header
LB: loop body
LE: loop exit
PB: predicated region body
PF: predicated region fallthrough
CT: control target
= control target key end

     0   :  { %v3524_v1 = vmov 0   ;;  %v3525_v2 = vmov 0.0   ;;  %vm3526_vm0 = vmmov 0   ;;  %v3527_v9 = vmov 1   ;;  %s4692_s0 = inlined_call_operand.vmem [shape: s32[16,2], index: 0, kind: input, shape index: {}]   ;;  %s4693_s1 = inlined_call_operand.vmem [shape: s32[2,1,8], index: 1, kind: input, shape index: {}]   ;;  %s4694_s2 = inlined_call_operand.vmem [shape: f32[64,64], index: 2, kind: input, shape index: {}]   ;;  %s4695_s3 = inlined_call_operand.vmem [shape: bf16[82,32], index: 3, kind: input, shape index: {}]   ;;  %s4696_s4 = inlined_call_operand.vmem [shape: bf16[2,32,96], index: 4, kind: input, shape index: {}]   ;;  %s4697_s5 = inlined_call_operand.vmem [shape: bf16[2,32,32], index: 5, kind: input, shape index: {}]   ;;  %s4698_s6 = inlined_call_operand.vmem [shape: bf16[2,32,128], index: 6, kind: input, shape index: {}]   ;;  %s4699_s7 = inlined_call_operand.vmem [shape: bf16[2,128,32], index: 7, kind: input, shape index: {}]   ;;  %s4700_s8 = inlined_call_operand.vmem [shape: f32[2,2,128], index: 8, kind: input, shape index: {}]   ;;  %s4701_s9 = inlined_call_operand.vmem [shape: f32[14,32], index: 9, kind: input, shape index: {}]   ;;  %s4702_s10 = inlined_call_operand.vmem [shape: bf16[32,5], index: 10, kind: input, shape index: {}]   ;;  %s4703_s11 = inlined_call_operand.vmem [shape: f32[7,5], index: 11, kind: input, shape index: {}]   ;;  %s4704_s12 = inlined_call_operand.hbm [shape: s32[2,1,8], index: 12, kind: output, shape index: {}]  }
   0x1   :  { %v43_v0 = vld [vmem:[%s4692_s0] sm:$0xff]  ;;  %3290 = vset.pattern.permute.xlu0 %v3524_v1  ;;  %3086 = vmatprep.subr.bf16.mxu0 %v3525_v2  ;;  %v44_v4 = vld [vmem:[%s4692_s0 + $0x8] sm:$0xff]  ;;  %v3368_v6 = vld [vmem:[%s4695_s3 + $0x10] sm:$0xff]  }
   0x2   :  { %v3366_v3 = vld [vmem:[%s4695_s3] sm:$0xff]   ;;  %48 = vperm.xlu0 %3290, %v43_v0   ;;  %v3367_v5 = vld [vmem:[%s4695_s3 + $0x8] sm:$0xff]   ;;  %3094 = vmatprep.mubr.msk.bf16.mxu0 %vm3526_vm0, %v3525_v2  ;;  %v3369_v7 = vld [vmem:[%s4695_s3 + $0x18] sm:$0xff]   ;;  %v141_v8 = vcvt.s32.f32 %v43_v0  ;;  %v142_v10 = vcvt.s32.f32 %v44_v4 }
   0x3   :  { %3087 = vmatpush3.bf16.msra.mxu0 %v3366_v3  ;;  %3291 = vset.pattern.permute.xlu1 %v3527_v9 }
   0x4   :  { %3088 = vmatprep.subr.bf16.mxu0 %v3525_v2  ;;  %149 = vperm.xlu1 %3291, %v141_v8  }
   0x6   :  { %51 = vperm.xlu0 %3290, %v44_v4  }
   0x7   :  { %3089 = vmatpush3.bf16.msra.mxu0 %v3367_v5 }
   0x8   :  { %3090 = vmatprep.subr.bf16.mxu0 %v3525_v2  ;;  %154 = vperm.xlu1 %3291, %v142_v10  }
   0xa   :  { %3352 = vset.pattern.permute.xlu0 %v3527_v9 }
   0xb   :  { %3091 = vmatpush3.bf16.msra.mxu0 %v3368_v6 }
   0xc   :  { %3092 = vmatprep.subr.bf16.mxu0 %v3525_v2 }
   0xf   :  { %3093 = vmatpush3.bf16.msra.mxu0 %v3369_v7 }
  0x10   :  { %3098 = vmatprep.subr.bf16.mxu0 %v3525_v2 }
  0x11   :  { %17 = vsyncpa [#allocation4], 0  ;;  %v45_v11 = vlaneseq  ;;  %vm96_vm3 = vcmask 523264   ;;  %v66_v18 = vld [vmem:[%s4695_s3 + $0x20] sm:$0x1]  ;;  %vm174_vm4 = vcmask 1045504  }
  0x12   :  { %v67_v19 = vunpack.c.l.bf16 %v66_v18  ;;  %v165_v24 = vld [vmem:[%s4695_s3 + $0x20] sm:$0xe]  ;;  %v166_v25 = vld [vmem:[%s4695_s3 + $0x24] sm:$0xf]  ;;  %v167_v27 = vld [vmem:[%s4695_s3 + $0x28] sm:$0x1] }
  0x13   :  { %v3635_v12 = vand.u32 127, %v45_v11  ;;  %v3647_v20 = vshrl.u32 %v45_v11, 7  ;;  %v168_v29 = vunpack.c.l.bf16 %v165_v24  ;;  %v169_v30 = vunpack.c.l.bf16 %v166_v25  ;;  %v3370_v0 = vld [vmem:[%s4696_s4] sm:$0xff]   ;;  %v3371_v3 = vld [vmem:[%s4696_s4 + $0x8] sm:$0xff]   ;;  %s3528_s0 = smov 112   ;;  %s3529_s13 = smov 120  }
  0x14   :  { %v144_v21 = vrot.slane %v67_v19, 7  ;;  %v170_v32 = vunpack.c.l.bf16 %v167_v27  ;;  %vm186_vm5 = vcmask 261120   ;;  %v2908_v24 = vld [vmem:[%s4700_s8] ss:$0 sm:$0xff]  ;;  %vm343_vm6 = vcmask 64512   ;;  %s3530_s14 = smov 104  }
  0x15   :  { %v3650_v23 = vsub.s32 1, %v3647_v20  ;;  %v3659_v26 = vsub.s32 0, %v3647_v20  ;;  %v175_v34 = vrot.slane %v168_v29, 2  ;;  %v176_v35 = vrot.slane %v169_v30, 2  ;;  %s3531_s15 = smov 96   ;;  %s3533_s20 = smov 8  }
  0x16   :  { %v146_v22 = vsub.f32 %v67_v19, %v144_v21  ;;  %v178_v39 = vrot.slane %v170_v32, 2  ;;  %s3534_s21 = smov 24   ;;  %s3535_s3 = smov 16   ;;  %vm656_vm7 = vcmask 130048   ;;  %vm659_vm8 = vcmask 195584  }
  0x17   :  { %v71_v33 = vrot.slane %v67_v19, %v3659_v26  ;;  %v177_v43 = vsel %vm174_vm4, %v175_v34, %v176_v35  ;;  %vm1829_vm9 = vcmask 39936   ;;  %vm1868_vm10 = vcmp.eq.s32.totalorder %v3647_v20, %v3635_v12 }
  0x18   :  { %v160_v31 = vrot.slane %v146_v22, %v3650_v23  ;;  %v179_v48 = vsel %vm174_vm4, %v176_v35, %v178_v39  ;;  %vm1883_vm11 = vcmask 36864  }
  0x81   :  { %v49_v13 = vpop.permute.xlu0 %48 }
  0x82   :  { %vm53_vm1 = vcmp.eq.s32.totalorder %v49_v13, %v3635_v12  ;;  %v2906_v13 = vld [vmem:[%s4701_s9 + $0xc] ss:$0 sm:$0xff] }
  0x83   :  { %v55_v15 = vsel %vm53_vm1, 1.0, %v3525_v2  ;;  %v150_v28 = vpop.permute.xlu1 %149 }
  0x84   :  { %v161_v36 = vmul.f32 %v160_v31, %v150_v28 }
  0x85   :  { %v52_v14 = vpop.permute.xlu0 %51 }
  0x86   :  { %vm54_vm2 = vcmp.eq.s32.totalorder %v52_v14, %v3635_v12 }
  0x87   :  { %v56_v16 = vsel %vm54_vm2, 1.0, %v3525_v2  ;;  %v155_v38 = vpop.permute.xlu1 %154 }
  0x88   :  { %v57_v17 = vpack.c.bf16 %v56_v16, %v55_v15  ;;  %v162_v45 = vmul.f32 %v160_v31, %v155_v38 }
  0x8a   :  { %3095 = vmatmul.mubr.msk.bf16.vlgmr.msra.gmra.mrb[0].mxu0 %vm96_vm3, %v57_v17  ;;  %v2907_v17 = vld [vmem:[%s4701_s9 + $0xd] ss:$0 sm:$0xff] }
  0x8b   :  { %3102 = vmatprep.mubr.msk.bf16.mxu0 %vm3526_vm0, %v3525_v2  ;;  %3099 = vmatpush3.bf16.msra.mxu0 %v3370_v0 }
  0x8c   :  { %3100 = vmatprep.subr.bf16.mxu0 %v3525_v2 }
  0x8f   :  { %3101 = vmatpush3.bf16.msra.mxu0 %v3371_v3 }
 0x15d   :  { %v134_v37 = vpop.f32.mrb[0].mxu0 }
 0x15e   :  { %v135_v40 = vadd.f32 %v134_v37, %v71_v33  ;;  %v3096_v41 = vpop.f32.mrb[1].mxu0 }
 0x15f   :  { %v137_v42 = vpop.f32.mrb[2].mxu0 }
 0x160   :  { %v163_v44 = vadd.f32 %v161_v36, %v135_v40  ;;  %v138_v46 = vadd.f32 %v137_v42, %v71_v33  ;;  %v3097_v47 = vpop.f32.mrb[3].mxu0 }
 0x162   :  { %v164_v49 = vadd.f32 %v162_v45, %v138_v46  ;;  %v182_v50 = vadd.f32 %v177_v43, %v163_v44 }
 0x164   :  { %v187_v51 = vsel %vm186_vm5, %v182_v50, 0.0  ;;  %v183_v52 = vadd.f32 %v179_v48, %v164_v49 }
 0x165   :  { %188 = vadd.xlane.f32.xlu0 %v187_v51 }
 0x166   :  { %v190_v53 = vsel %vm186_vm5, %v183_v52, 0.0 }
 0x167   :  { %191 = vadd.xlane.f32.xlu1 %v190_v53 }
 0x1f2   :  { %v189_v54 = vpop.xlane.xlu0 %188 }
 0x1f3   :  { %v194_v55 = vmul.f32 0.03125, %v189_v54 }
 0x1f4   :  { %v192_v56 = vpop.xlane.xlu1 %191 }
 0x1f5   :  { %v196_v57 = vsub.f32 %v182_v50, %v194_v55  ;;  %v195_v58 = vmul.f32 0.03125, %v192_v56  ;;  %v3734_v56 = vld [vmem:[%s4694_s2] sm:$0xff] }
 0x1f7   :  { %v197_v59 = vsub.f32 %v183_v52, %v195_v58  ;;  %v198_v60 = vmul.f32 %v196_v57, %v196_v57 }
 0x1f9   :  { %v200_v61 = vsel %vm186_vm5, %v198_v60, 0.0  ;;  %v199_v62 = vmul.f32 %v197_v59, %v197_v59 }
 0x1fa   :  { %201 = vadd.xlane.f32.xlu0 %v200_v61 }
 0x1fb   :  { %v203_v63 = vsel %vm186_vm5, %v199_v62, 0.0 }
 0x1fe   :  { %204 = vadd.xlane.f32.xlu0 %v203_v63  ;;  %v3744_v63 = vld [vmem:[%s4694_s2 + $0x8] sm:$0xff] }
 0x287   :  { %v202_v4 = vpop.xlane.xlu0 %201 }
 0x288   :  { %v206_v5 = vmul.f32 0.03125, %v202_v4  ;;  %v3750_v4 = vld [vmem:[%s4694_s2 + $0x10] sm:$0xff] }
 0x28a   :  { %v208_v6 = vadd.f32 1e-12, %v206_v5 }
 0x28b   :  { %v205_v7 = vpop.xlane.xlu0 %204 }
 0x28c   :  { %3400 = vrsqrt.f32 %v208_v6  ;;  %v207_v8 = vmul.f32 0.03125, %v205_v7 }
 0x28e   :  { %v209_v9 = vadd.f32 1e-12, %v207_v8 }
 0x290   :  { %3402 = vrsqrt.f32 %v209_v9 }
 0x296   :  { %v3401_v10 = vpop.eup %3400 }
 0x297   :  { %v212_v11 = vmul.f32 %v3401_v10, %v196_v57 }
 0x299   :  { %v218_v15 = vmul.f32 %v2906_v13, %v212_v11 }
 0x29a   :  { %v3403_v14 = vpop.eup %3402 }
 0x29b   :  { %v213_v16 = vmul.f32 %v3403_v14, %v197_v59  ;;  %v3683_v19 = vadd.f32 %v2907_v17, %v218_v15  ;;  %v3739_v59 = vld [vmem:[%s4694_s2 + $0x18] sm:$0xff] }
 0x29d   :  { %v219_v18 = vmul.f32 %v2906_v13, %v213_v16  ;;  %v3760_v13 = vld [vmem:[%s4694_s2 + $0x20] sm:$0xff] }
 0x29f   :  { %v3685_v21 = vadd.f32 %v2907_v17, %v219_v18 }
 0x2a1   :  { %v242_v22 = vpack.c.bf16 %v3685_v21, %v3683_v19 }
 0x2a3   :  { %3103 = vmatmul.mubr.msk.bf16.vlgmr.msra.gmra.mrb[4].mxu0 %vm186_vm5, %v242_v22  ;;  %v3767_v22 = vld [vmem:[%s4694_s2 + $0x28] sm:$0xff] }
 0x376   :  { %v300_v25 = vpop.f32.mrb[4].mxu0 }
 0x377   :  { %v3104_v27 = vpop.f32.mrb[5].mxu0  ;;  %v301_v29 = vadd.f32 %v2908_v24, %v300_v25 }
 0x378   :  { %v303_v28 = vpop.f32.mrb[6].mxu0 }
 0x379   :  { %v304_v30 = vadd.f32 %v2908_v24, %v303_v28  ;;  %v3105_v31 = vpop.f32.mrb[7].mxu0 }
 0x37b   :  { %v3297_v32 = vpack.i.bf16 %v304_v30, %v301_v29  ;;  %v3693_v33 = vpack.c.bf16 %v304_v30, %v301_v29  ;;  %v3773_v29 = vld [vmem:[%s4694_s2 + $0x30] sm:$0xff]  ;;  %v3778_v30 = vld [vmem:[%s4694_s2 + $0x38] sm:$0xff]  ;;  %s3532_s2 = smov 64  }
 0x37d   :  { %3298 = vrot.lane.b32.xlu0 %v3297_v32, %s3528_s0  ;;  %3293 = vrot.lane.b32.xlu1 %v3297_v32, %s3529_s13 }
 0x37e   :  { %3114 = vmatprep.mubr.msk.bf16.mxu1 %vm343_vm6, %v3693_v33 }
 0x381   :  { %3303 = vrot.lane.b32.xlu1 %v3297_v32, %s3530_s14 }
 0x385   :  { %335 = vrot.lane.b32.xlu1 %v3693_v33, %s3531_s15 }
 0x3ef   :  { %v3299_v34 = vpop.permute.xlu0 %3298  ;;  %v3294_v35 = vpop.permute.xlu1 %3293 }
 0x3f0   :  { %v3301_v36 = vunpack.i.h.bf16 %v3299_v34  ;;  %v3300_v37 = vunpack.i.l.bf16 %v3299_v34  ;;  %v3296_v38 = vunpack.i.h.bf16 %v3294_v35  ;;  %v3295_v39 = vunpack.i.l.bf16 %v3294_v35 }
 0x3f2   :  { %v3702_v40 = vpack.c.bf16 %v3296_v38, %v3295_v39  ;;  %v3704_v41 = vpack.c.bf16 %v3301_v36, %v3300_v37 }
 0x3f3   :  { %v3304_v42 = vpop.permute.xlu1 %3303 }
 0x3f4   :  { %v3306_v43 = vunpack.i.h.bf16 %v3304_v42  ;;  %v3305_v44 = vunpack.i.l.bf16 %v3304_v42  ;;  %337 = vrot.lane.b32.xlu0 %v3702_v40, %s3531_s15  ;;  %339 = vrot.lane.b32.xlu1 %v3704_v41, %s3531_s15 }
 0x3f6   :  { %v3710_v45 = vpack.c.bf16 %v3306_v43, %v3305_v44 }
 0x3f7   :  { %v336_v46 = vpop.permute.xlu1 %335 }
 0x3f8   :  { %341 = vrot.lane.b32.xlu0 %v3710_v45, %s3531_s15  ;;  %3258 = vmatprep.subr.msk.bf16.mxu1 %vm343_vm6, %v336_v46  ;;  %v357_v47 = vsel %vm343_vm6, %v336_v46, 0 }
 0x3f9   :  { %3107 = vmatpush3.bf16.xpose.msra.mxu1 %v357_v47 }
 0x466   :  { %v338_v48 = vpop.permute.xlu0 %337  ;;  %v340_v50 = vpop.permute.xlu1 %339 }
 0x467   :  { %3259 = vmatprep.subr.msk.bf16.mxu1 %vm343_vm6, %v338_v48  ;;  %v360_v49 = vsel %vm343_vm6, %v338_v48, 0  ;;  %v363_v51 = vsel %vm343_vm6, %v340_v50, 0 }
 0x468   :  { %3109 = vmatpush3.bf16.xpose.msra.mxu1 %v360_v49 }
 0x469   :  { %3260 = vmatprep.subr.msk.bf16.mxu1 %vm343_vm6, %v340_v50 }
 0x46a   :  { %v342_v52 = vpop.permute.xlu0 %341 }
 0x46b   :  { %v366_v53 = vsel %vm343_vm6, %v342_v52, 0 }
 0x470   :  { %3111 = vmatpush3.bf16.xpose.msra.mxu1 %v363_v51 }
 0x471   :  { %3261 = vmatprep.subr.msk.bf16.mxu1 %vm343_vm6, %v342_v52 }
 0x478   :  { %3113 = vmatpush3.bf16.xpose.msra.mxu1 %v366_v53 }
 0x479   :  { %3154 = vmatprep.subr.bf16.mxu1 %v3525_v2 }
 0x47f   :  { %3115 = vmatmul.mubr.msk.bf16.vlgmr.msra.gmra.mrb[0].mxu1 %vm343_vm6, %v3702_v40 }
 0x480   :  { %3118 = vmatprep.mubr.msk.bf16.mxu1 %vm343_vm6, %v3704_v41 }
 0x487   :  { %3119 = vmatmul.mubr.msk.bf16.gmra.mrb[4].mxu1 %vm343_vm6, %v3710_v45 }
 0x488   :  { %3170 = vmatprep.mubr.msk.bf16.mxu1 %vm3526_vm0, %v3525_v2 }
 0x552   :  { %v3116_v54 = vpop.f32.mrb[0].mxu1 }
 0x553   :  { %v402_v55 = vpop.f32.mrb[1].mxu1  ;;  %v435_v60 = vmul.f32 0.35355338, %v3116_v54 }
 0x554   :  { %v433_v57 = vmul.f32 0.35355338, %v402_v55  ;;  %v3117_v58 = vpop.f32.mrb[2].mxu1 }
 0x555   :  { %v436_v61 = vmul.f32 0.35355338, %v3117_v58  ;;  %v405_v62 = vpop.f32.mrb[3].mxu1  ;;  %v443_v8 = vadd.f32 %v435_v60, %v3750_v4 }
 0x556   :  { %v434_v0 = vmul.f32 0.35355338, %v405_v62  ;;  %v441_v3 = vadd.f32 %v433_v57, %v3734_v56 }
 0x557   :  { %v444_v7 = vadd.f32 %v436_v61, %v3739_v59  ;;  %v455_v18 = vsel %vm96_vm3, %v443_v8, -inf }
 0x558   :  { %v449_v5 = vsel %vm96_vm3, %v441_v3, -inf  ;;  %v442_v6 = vadd.f32 %v434_v0, %v3744_v63 }
 0x559   :  { %450 = vmax.xlane.f32.xlu1 %v449_v5  ;;  %v458_v16 = vsel %vm96_vm3, %v444_v7, -inf }
 0x55a   :  { %v3120_v9 = vpop.f32.mrb[4].mxu1  ;;  %v452_v10 = vsel %vm96_vm3, %v442_v6, -inf }
 0x55b   :  { %453 = vmax.xlane.f32.xlu0 %v452_v10  ;;  %v418_v11 = vpop.f32.mrb[5].mxu1  ;;  %v439_v24 = vmul.f32 0.35355338, %v3120_v9 }
 0x55c   :  { %v437_v14 = vmul.f32 0.35355338, %v418_v11  ;;  %v3121_v15 = vpop.f32.mrb[6].mxu1 }
 0x55d   :  { %459 = vmax.xlane.f32.xlu1 %v458_v16  ;;  %v421_v17 = vpop.f32.mrb[7].mxu1  ;;  %v440_v25 = vmul.f32 0.35355338, %v3121_v15  ;;  %v447_v35 = vadd.f32 %v439_v24, %v3773_v29 }
 0x55e   :  { %v438_v27 = vmul.f32 0.35355338, %v421_v17  ;;  %v445_v28 = vadd.f32 %v437_v14, %v3760_v13 }
 0x55f   :  { %456 = vmax.xlane.f32.xlu0 %v455_v18  ;;  %v448_v36 = vadd.f32 %v440_v25, %v3778_v30  ;;  %v467_v37 = vsel %vm96_vm3, %v447_v35, -inf }
 0x560   :  { %v446_v31 = vadd.f32 %v438_v27, %v3767_v22  ;;  %v461_v32 = vsel %vm96_vm3, %v445_v28, -inf }
 0x561   :  { %v470_v38 = vsel %vm96_vm3, %v448_v36, -inf }
 0x562   :  { %v464_v34 = vsel %vm96_vm3, %v446_v31, -inf }
 0x563   :  { %462 = vmax.xlane.f32.xlu0 %v461_v32  ;;  %465 = vmax.xlane.f32.xlu1 %v464_v34 }
 0x567   :  { %468 = vmax.xlane.f32.xlu0 %v467_v37  ;;  %471 = vmax.xlane.f32.xlu1 %v470_v38 }
 0x578   :  { %543 = vrot.lane.b32.xlu1 %v3702_v40, %s3532_s2 }
 0x57d   :  { %541 = vrot.lane.b32.xlu0 %v3693_v33, %s3532_s2 }
 0x5e6   :  { %v451_v39 = vpop.xlane.xlu1 %450 }
 0x5e7   :  { %v473_v46 = vsub.f32 %v441_v3, %v451_v39 }
 0x5e8   :  { %v454_v42 = vpop.xlane.xlu0 %453 }
 0x5e9   :  { %v474_v43 = vsub.f32 %v442_v6, %v454_v42  ;;  %v481_v52 = vmul.f32 1.442695, %v473_v46 }
 0x5ea   :  { %v460_v44 = vpop.xlane.xlu1 %459 }
 0x5eb   :  { %v476_v47 = vsub.f32 %v444_v7, %v460_v44  ;;  %v483_v48 = vmul.f32 1.442695, %v474_v43 }
 0x5ec   :  { %v457_v49 = vpop.xlane.xlu0 %456 }
 0x5ed   :  { %v487_v50 = vmul.f32 1.442695, %v476_v47  ;;  %v475_v51 = vsub.f32 %v443_v8, %v457_v49 }
 0x5ef   :  { %3404 = vpow2.f32 %v487_v50  ;;  %v485_v53 = vmul.f32 1.442695, %v475_v51 }
 0x5f0   :  { %3406 = vpow2.f32 %v483_v48  ;;  %v463_v54 = vpop.xlane.xlu0 %462  ;;  %v466_v55 = vpop.xlane.xlu1 %465 }
 0x5f1   :  { %3408 = vpow2.f32 %v485_v53  ;;  %v477_v40 = vsub.f32 %v445_v28, %v463_v54  ;;  %v478_v33 = vsub.f32 %v446_v31, %v466_v55 }
 0x5f2   :  { %3410 = vpow2.f32 %v481_v52 }
 0x5f3   :  { %v489_v62 = vmul.f32 1.442695, %v477_v40  ;;  %v491_v5 = vmul.f32 1.442695, %v478_v33 }
 0x5f4   :  { %v469_v57 = vpop.xlane.xlu0 %468  ;;  %v472_v58 = vpop.xlane.xlu1 %471 }
 0x5f5   :  { %v479_v60 = vsub.f32 %v447_v35, %v469_v57  ;;  %v480_v61 = vsub.f32 %v448_v36, %v472_v58 }
 0x5f7   :  { %v493_v0 = vmul.f32 1.442695, %v479_v60  ;;  %v495_v3 = vmul.f32 1.442695, %v480_v61 }
 0x5f8   :  { %v542_v6 = vpop.permute.xlu0 %541  ;;  %v544_v9 = vpop.permute.xlu1 %543 }
 0x5f9   :  { %v3791_v7 = vpop.eup %3404  ;;  %3412 = vpow2.f32 %v493_v0  ;;  %3122 = vmatprep.subr.bf16.mxu0 %v542_v6 }
 0x5fa   :  { %v3407_v8 = vpop.eup %3406  ;;  %3414 = vpow2.f32 %v495_v3  ;;  %3123 = vmatpush3.bf16.msra.mxu0 %v542_v6  ;;  %v506_v10 = vsel %vm96_vm3, %v3791_v7, 0.0  ;;  %v3372_v6 = vld [vmem:[%s4697_s5] sm:$0xff]  }
 0x5fb   :  { %v3409_v11 = vpop.eup %3408  ;;  %3416 = vpow2.f32 %v489_v62  ;;  %507 = vadd.xlane.f32.xlu1 %v506_v10  ;;  %3124 = vmatprep.subr.bf16.mxu0 %v544_v9  ;;  %v500_v16 = vsel %vm96_vm3, %v3407_v8, 0.0 }
 0x5fc   :  { %3418 = vpow2.f32 %v491_v5  ;;  %v503_v14 = vsel %vm96_vm3, %v3409_v11, 0.0  ;;  %v3411_v15 = vpop.eup %3410 }
 0x5fd   :  { %504 = vadd.xlane.f32.xlu0 %v503_v14  ;;  %v497_v17 = vsel %vm96_vm3, %v3411_v15, 0.0 }
 0x5fe   :  { %3125 = vmatpush3.bf16.msra.mxu0 %v544_v9 }
 0x5ff   :  { %501 = vadd.xlane.f32.xlu1 %v500_v16 }
 0x601   :  { %498 = vadd.xlane.f32.xlu0 %v497_v17 }
 0x603   :  { %v3413_v18 = vpop.eup %3412 }
 0x604   :  { %v3415_v24 = vpop.eup %3414  ;;  %v515_v25 = vsel %vm96_vm3, %v3413_v18, 0.0 }
 0x605   :  { %v3417_v27 = vpop.eup %3416  ;;  %516 = vadd.xlane.f32.xlu0 %v515_v25  ;;  %v518_v28 = vsel %vm96_vm3, %v3415_v24, 0.0 }
 0x606   :  { %v3419_v31 = vpop.eup %3418  ;;  %519 = vadd.xlane.f32.xlu1 %v518_v28  ;;  %v509_v32 = vsel %vm96_vm3, %v3417_v27, 0.0 }
 0x607   :  { %v512_v34 = vsel %vm96_vm3, %v3419_v31, 0.0 }
 0x609   :  { %510 = vadd.xlane.f32.xlu0 %v509_v32 }
 0x60a   :  { %513 = vadd.xlane.f32.xlu1 %v512_v34 }
 0x61b   :  { %545 = vrot.lane.b32.xlu1 %v3704_v41, %s3532_s2 }
 0x61f   :  { %547 = vrot.lane.b32.xlu0 %v3710_v45, %s3532_s2 }
 0x688   :  { %v508_v35 = vpop.xlane.xlu1 %507 }
 0x68a   :  { %v505_v36 = vpop.xlane.xlu0 %504 }
 0x68c   :  { %v502_v37 = vpop.xlane.xlu1 %501 }
 0x68d   :  { %3420 = vrcp.f32 %v502_v37 }
 0x68e   :  { %v499_v38 = vpop.xlane.xlu0 %498 }
 0x68f   :  { %3422 = vrcp.f32 %v499_v38 }
 0x690   :  { %3424 = vrcp.f32 %v505_v36 }
 0x691   :  { %3426 = vrcp.f32 %v508_v35 }
 0x692   :  { %v517_v39 = vpop.xlane.xlu0 %516 }
 0x693   :  { %v520_v42 = vpop.xlane.xlu1 %519  ;;  %3428 = vrcp.f32 %v517_v39 }
 0x696   :  { %v511_v43 = vpop.xlane.xlu0 %510 }
 0x697   :  { %v3421_v44 = vpop.eup %3420  ;;  %3430 = vrcp.f32 %v511_v43  ;;  %v514_v46 = vpop.xlane.xlu1 %513 }
 0x698   :  { %3432 = vrcp.f32 %v514_v46  ;;  %v530_v45 = vmul.f32 %v3421_v44, %v3407_v8 }
 0x699   :  { %v3423_v41 = vpop.eup %3422  ;;  %3434 = vrcp.f32 %v520_v42 }
 0x69a   :  { %v529_v47 = vmul.f32 %v3423_v41, %v3411_v15  ;;  %v3425_v48 = vpop.eup %3424  ;;  %v548_v52 = vpop.permute.xlu0 %547 }
 0x69b   :  { %v546_v49 = vpop.permute.xlu1 %545  ;;  %v3427_v51 = vpop.eup %3426  ;;  %v531_v53 = vmul.f32 %v3425_v48, %v3409_v11 }
 0x69c   :  { %3126 = vmatprep.subr.bf16.mxu0 %v546_v49  ;;  %v537_v50 = vpack.c.bf16 %v530_v45, %v529_v47  ;;  %v532_v55 = vmul.f32 %v3427_v51, %v3791_v7  ;;  %v3373_v7 = vld [vmem:[%s4697_s5 + $0x8] sm:$0xff]   ;;  %v2920_v45 = vld [vmem:[%s4701_s9] ss:$0 sm:$0xff] }
 0x69d   :  { %3127 = vmatpush3.bf16.msra.mxu0 %v546_v49  ;;  %v3429_v54 = vpop.eup %3428 }
 0x69e   :  { %3128 = vmatprep.subr.bf16.mxu0 %v548_v52  ;;  %3130 = vmatprep.mubr.msk.bf16.mxu0 %vm96_vm3, %v537_v50  ;;  %v538_v57 = vpack.c.bf16 %v532_v55, %v531_v53  ;;  %v535_v0 = vmul.f32 %v3429_v54, %v3413_v18 }
 0x6a1   :  { %v3431_v40 = vpop.eup %3430  ;;  %3129 = vmatpush3.bf16.msra.mxu0 %v548_v52 }
 0x6a2   :  { %v3433_v33 = vpop.eup %3432  ;;  %v533_v58 = vmul.f32 %v3431_v40, %v3417_v27  ;;  %3138 = vmatprep.subr.bf16.mxu0 %v3525_v2 }
 0x6a3   :  { %v3435_v60 = vpop.eup %3434  ;;  %v534_v61 = vmul.f32 %v3433_v33, %v3419_v31 }
 0x6a4   :  { %3131 = vmatmul.mubr.msk.bf16.vlgmr.msra.gmra.mrb[8].mxu0 %vm96_vm3, %v538_v57  ;;  %v536_v3 = vmul.f32 %v3435_v60, %v3415_v24 }
 0x6a5   :  { %v539_v62 = vpack.c.bf16 %v534_v61, %v533_v58  ;;  %3139 = vmatpush3.bf16.msra.mxu0 %v3372_v6 }
 0x6a6   :  { %v540_v5 = vpack.c.bf16 %v536_v3, %v535_v0  ;;  %3140 = vmatprep.subr.bf16.mxu0 %v3525_v2 }
 0x6a7   :  { %3134 = vmatprep.mubr.msk.bf16.mxu0 %vm96_vm3, %v539_v62 }
 0x6a9   :  { %3141 = vmatpush3.bf16.msra.mxu0 %v3373_v7  ;;  %v3375_v7 = vld [vmem:[%s4698_s6 + $0x8] sm:$0xff]  }
 0x6aa   :  { %3146 = vmatprep.subr.bf16.mxu0 %v3525_v2 }
 0x6ac   :  { %3135 = vmatmul.mubr.msk.bf16.gmra.mrb[12].mxu0 %vm96_vm3, %v540_v5 }
 0x6ad   :  { %3142 = vmatprep.mubr.msk.bf16.mxu0 %vm3526_vm0, %v3525_v2 }
 0x777   :  { %v3132_v8 = vpop.f32.mrb[8].mxu0 }
 0x778   :  { %v599_v9 = vpop.f32.mrb[9].mxu0 }
 0x779   :  { %v3133_v10 = vpop.f32.mrb[10].mxu0 }
 0x77a   :  { %v3307_v11 = vpack.i.bf16 %v3133_v10, %v3132_v8  ;;  %v602_v14 = vpop.f32.mrb[11].mxu0 }
 0x77c   :  { %3308 = vrot.lane.b32.xlu1 %v3307_v11, %s3533_s20 }
 0x77f   :  { %v3136_v15 = vpop.f32.mrb[12].mxu0 }
 0x780   :  { %v615_v16 = vpop.f32.mrb[13].mxu0 }
 0x781   :  { %v3137_v17 = vpop.f32.mrb[14].mxu0 }
 0x782   :  { %v3317_v18 = vpack.i.bf16 %v3137_v17, %v3136_v15  ;;  %v618_v24 = vpop.f32.mrb[15].mxu0 }
 0x783   :  { %v3312_v25 = vpack.i.bf16 %v618_v24, %v615_v16 }
 0x784   :  { %3318 = vrot.lane.b32.xlu1 %v3317_v18, %s3534_s21  ;;  %v2924_v18 = vld [vmem:[%s4701_s9 + $0x2] ss:$0 sm:$0xff] }
 0x785   :  { %3313 = vrot.lane.b32.xlu0 %v3312_v25, %s3535_s3 }
 0x7ee   :  { %v3309_v27 = vpop.permute.xlu1 %3308 }
 0x7ef   :  { %v3311_v28 = vunpack.i.h.bf16 %v3309_v27  ;;  %v3310_v31 = vunpack.i.l.bf16 %v3309_v27 }
 0x7f1   :  { %v654_v37 = vsel %vm343_vm6, %v599_v9, %v3310_v31  ;;  %v655_v38 = vsel %vm343_vm6, %v602_v14, %v3311_v28  ;;  %v2925_v28 = vld [vmem:[%s4701_s9 + $0x3] ss:$0 sm:$0xff] }
 0x7f6   :  { %v3319_v32 = vpop.permute.xlu1 %3318 }
 0x7f7   :  { %v3314_v34 = vpop.permute.xlu0 %3313  ;;  %v3321_v39 = vunpack.i.h.bf16 %v3319_v32  ;;  %v3320_v42 = vunpack.i.l.bf16 %v3319_v32 }
 0x7f8   :  { %v3316_v35 = vunpack.i.h.bf16 %v3314_v34  ;;  %v3315_v36 = vunpack.i.l.bf16 %v3314_v34 }
 0x7fa   :  { %v658_v43 = vsel %vm656_vm7, %v655_v38, %v3316_v35  ;;  %v657_v44 = vsel %vm656_vm7, %v654_v37, %v3315_v36  ;;  %v3376_v36 = vld [vmem:[%s4699_s7] sm:$0xff]   ;;  %v3377_v37 = vld [vmem:[%s4699_s7 + $0x8] sm:$0xff]   ;;  %v3378_v38 = vld [vmem:[%s4699_s7 + $0x10] sm:$0xff]  }
 0x7fb   :  { %v661_v46 = vsel %vm659_vm8, %v658_v43, %v3321_v39  ;;  %v660_v41 = vsel %vm659_vm8, %v657_v44, %v3320_v42  ;;  %3155 = vmatpush3.bf16.msra.mxu1 %v3376_v36  ;;  %v3379_v39 = vld [vmem:[%s4699_s7 + $0x18] sm:$0xff]   ;;  %v3380_v42 = vld [vmem:[%s4699_s7 + $0x20] sm:$0xff]   ;;  %v3381_v43 = vld [vmem:[%s4699_s7 + $0x28] sm:$0xff]  }
 0x7fc   :  { %v662_v47 = vpack.c.bf16 %v661_v46, %v660_v41  ;;  %3156 = vmatprep.subr.bf16.mxu1 %v3525_v2  ;;  %v3382_v44 = vld [vmem:[%s4699_s7 + $0x30] sm:$0xff]   ;;  %v3383_v46 = vld [vmem:[%s4699_s7 + $0x38] sm:$0xff]   ;;  %v2926_v41 = vld [vmem:[%s4700_s8 + $0x1] ss:$0 sm:$0xff] }
 0x7fe   :  { %3143 = vmatmul.mubr.msk.bf16.vlgmr.msra.gmra.mrb[16].mxu0 %vm186_vm5, %v662_v47 }
 0x7ff   :  { %3150 = vmatprep.mubr.msk.bf16.mxu0 %vm3526_vm0, %v3525_v2  ;;  %3157 = vmatpush3.bf16.msra.mxu1 %v3377_v37 }
 0x800   :  { %3158 = vmatprep.subr.bf16.mxu1 %v3525_v2 }
 0x803   :  { %3159 = vmatpush3.bf16.msra.mxu1 %v3378_v38 }
 0x804   :  { %3160 = vmatprep.subr.bf16.mxu1 %v3525_v2 }
 0x807   :  { %3161 = vmatpush3.bf16.msra.mxu1 %v3379_v39 }
 0x808   :  { %3162 = vmatprep.subr.bf16.mxu1 %v3525_v2 }
 0x80b   :  { %3163 = vmatpush3.bf16.msra.mxu1 %v3380_v42 }
 0x80c   :  { %3164 = vmatprep.subr.bf16.mxu1 %v3525_v2 }
 0x80f   :  { %3165 = vmatpush3.bf16.msra.mxu1 %v3381_v43 }
 0x810   :  { %3166 = vmatprep.subr.bf16.mxu1 %v3525_v2 }
 0x813   :  { %3167 = vmatpush3.bf16.msra.mxu1 %v3382_v44  ;;  %v3385_v44 = vld [vmem:[%s4696_s4 + $0x18] sm:$0xff]  }
 0x814   :  { %3168 = vmatprep.subr.bf16.mxu1 %v3525_v2 }
 0x817   :  { %3169 = vmatpush3.bf16.msra.mxu1 %v3383_v46 }
 0x8d1   :  { %v720_v48 = vpop.f32.mrb[16].mxu0 }
 0x8d2   :  { %v721_v49 = vadd.f32 %v2920_v45, %v720_v48  ;;  %v3144_v50 = vpop.f32.mrb[17].mxu0 }
 0x8d3   :  { %v723_v51 = vpop.f32.mrb[18].mxu0 }
 0x8d4   :  { %v724_v52 = vadd.f32 %v2920_v45, %v723_v51  ;;  %v3145_v53 = vpop.f32.mrb[19].mxu0  ;;  %v727_v54 = vadd.f32 %v721_v49, %v3683_v19 }
 0x8d6   :  { %v729_v55 = vsel %vm186_vm5, %v727_v54, 0.0  ;;  %v728_v40 = vadd.f32 %v724_v52, %v3685_v21  ;;  %v3374_v21 = vld [vmem:[%s4698_s6] sm:$0xff]  }
 0x8d7   :  { %730 = vadd.xlane.f32.xlu0 %v729_v55  ;;  %3147 = vmatpush3.bf16.msra.mxu0 %v3374_v21 }
 0x8d8   :  { %v732_v33 = vsel %vm186_vm5, %v728_v40, 0.0  ;;  %3148 = vmatprep.subr.bf16.mxu0 %v3525_v2 }
 0x8d9   :  { %733 = vadd.xlane.f32.xlu1 %v732_v33 }
 0x8db   :  { %3149 = vmatpush3.bf16.msra.mxu0 %v3375_v7 }
 0x8dc   :  { %3174 = vmatprep.subr.bf16.mxu0 %v3525_v2 }
 0x964   :  { %v731_v57 = vpop.xlane.xlu0 %730 }
 0x965   :  { %v735_v58 = vmul.f32 0.03125, %v731_v57 }
 0x966   :  { %v734_v60 = vpop.xlane.xlu1 %733 }
 0x967   :  { %v737_v61 = vsub.f32 %v727_v54, %v735_v58  ;;  %v736_v62 = vmul.f32 0.03125, %v734_v60 }
 0x969   :  { %v738_v0 = vsub.f32 %v728_v40, %v736_v62  ;;  %v739_v3 = vmul.f32 %v737_v61, %v737_v61 }
 0x96b   :  { %v741_v5 = vsel %vm186_vm5, %v739_v3, 0.0  ;;  %v740_v6 = vmul.f32 %v738_v0, %v738_v0 }
 0x96c   :  { %742 = vadd.xlane.f32.xlu0 %v741_v5 }
 0x96d   :  { %v744_v19 = vsel %vm186_vm5, %v740_v6, 0.0 }
 0x970   :  { %745 = vadd.xlane.f32.xlu0 %v744_v19 }
 0x9f9   :  { %v743_v8 = vpop.xlane.xlu0 %742 }
 0x9fa   :  { %v747_v9 = vmul.f32 0.03125, %v743_v8 }
 0x9fc   :  { %v749_v10 = vadd.f32 1e-12, %v747_v9  ;;  %v2930_v9 = vld [vmem:[%s4701_s9 + $0x1] ss:$0 sm:$0xff] }
 0x9fd   :  { %v746_v11 = vpop.xlane.xlu0 %745 }
 0x9fe   :  { %3436 = vrsqrt.f32 %v749_v10  ;;  %v748_v14 = vmul.f32 0.03125, %v746_v11 }
 0xa00   :  { %v750_v15 = vadd.f32 1e-12, %v748_v14 }
 0xa02   :  { %3438 = vrsqrt.f32 %v750_v15 }
 0xa08   :  { %v3437_v16 = vpop.eup %3436 }
 0xa09   :  { %v753_v17 = vmul.f32 %v3437_v16, %v737_v61 }
 0xa0b   :  { %v759_v25 = vmul.f32 %v2924_v18, %v753_v17 }
 0xa0c   :  { %v3439_v24 = vpop.eup %3438 }
 0xa0d   :  { %v754_v27 = vmul.f32 %v3439_v24, %v738_v0  ;;  %v3857_v32 = vadd.f32 %v2925_v28, %v759_v25 }
 0xa0f   :  { %v760_v31 = vmul.f32 %v2924_v18, %v754_v27 }
 0xa11   :  { %v3859_v34 = vadd.f32 %v2925_v28, %v760_v31 }
 0xa13   :  { %v767_v35 = vpack.c.bf16 %v3859_v34, %v3857_v32 }
 0xa15   :  { %3151 = vmatmul.mubr.msk.bf16.vlgmr.msra.gmra.mrb[20].mxu0 %vm186_vm5, %v767_v35 }
 0xa16   :  { %3178 = vmatprep.mubr.msk.bf16.mxu0 %vm3526_vm0, %v3525_v2 }
 0xae8   :  { %v825_v47 = vpop.f32.mrb[20].mxu0 }
 0xae9   :  { %v826_v45 = vadd.f32 %v2926_v41, %v825_v47  ;;  %v3152_v48 = vpop.f32.mrb[21].mxu0 }
 0xaea   :  { %v828_v49 = vpop.f32.mrb[22].mxu0 }
 0xaeb   :  { %v832_v50 = vmul.f32 %v826_v45, %v826_v45  ;;  %v829_v51 = vadd.f32 %v2926_v41, %v828_v49  ;;  %v3153_v52 = vpop.f32.mrb[23].mxu0 }
 0xaed   :  { %v834_v53 = vmul.f32 %v832_v50, %v826_v45  ;;  %v833_v54 = vmul.f32 %v829_v51, %v829_v51 }
 0xaef   :  { %v836_v55 = vmul.f32 0.044715, %v834_v53  ;;  %v835_v40 = vmul.f32 %v833_v54, %v829_v51 }
 0xaf1   :  { %v838_v33 = vadd.f32 %v836_v55, %v826_v45  ;;  %v837_v57 = vmul.f32 0.044715, %v835_v40  ;;  %v2940_v40 = vld [vmem:[%s4701_s9 + $0x5] ss:$0 sm:$0xff] }
 0xaf3   :  { %v840_v58 = vmul.f32 0.7978846, %v838_v33  ;;  %v839_v60 = vadd.f32 %v837_v57, %v829_v51 }
 0xaf5   :  { %3440 = vtanh.f32 %v840_v58  ;;  %v841_v61 = vmul.f32 0.7978846, %v839_v60 }
 0xaf7   :  { %3442 = vtanh.f32 %v841_v61  ;;  %v2947_v61 = vld [vmem:[%s4700_s8 + $0x2] ss:$0 sm:$0xff] }
 0xaff   :  { %v3441_v62 = vpop.eup %3440 }
 0xb00   :  { %v844_v0 = vadd.f32 1.0, %v3441_v62 }
 0xb01   :  { %v3443_v3 = vpop.eup %3442 }
 0xb02   :  { %v846_v5 = vmul.f32 0.5, %v844_v0  ;;  %v845_v6 = vadd.f32 1.0, %v3443_v3 }
 0xb04   :  { %v847_v19 = vmul.f32 0.5, %v845_v6  ;;  %v848_v21 = vmul.f32 %v846_v5, %v826_v45 }
 0xb06   :  { %v849_v7 = vmul.f32 %v847_v19, %v829_v51  ;;  %v2939_v51 = vld [vmem:[%s4701_s9 + $0x4] ss:$0 sm:$0xff] }
 0xb08   :  { %v850_v8 = vpack.c.bf16 %v849_v7, %v848_v21 }
 0xb0a   :  { %3171 = vmatmul.mubr.bf16.vlgmr.msra.gmra.mrb[8].mxu1 %v850_v8 }
 0xbdd   :  { %v953_v10 = vpop.f32.mrb[8].mxu1 }
 0xbde   :  { %v954_v11 = vadd.f32 %v2930_v9, %v953_v10  ;;  %v3172_v14 = vpop.f32.mrb[9].mxu1 }
 0xbdf   :  { %v956_v15 = vpop.f32.mrb[10].mxu1 }
 0xbe0   :  { %v957_v16 = vadd.f32 %v2930_v9, %v956_v15  ;;  %v3173_v17 = vpop.f32.mrb[11].mxu1  ;;  %v960_v18 = vadd.f32 %v954_v11, %v3857_v32 }
 0xbe2   :  { %v962_v24 = vsel %vm186_vm5, %v960_v18, 0.0  ;;  %v961_v25 = vadd.f32 %v957_v16, %v3859_v34  ;;  %v3384_v34 = vld [vmem:[%s4696_s4 + $0x10] sm:$0xff]  }
 0xbe3   :  { %963 = vadd.xlane.f32.xlu1 %v962_v24  ;;  %3175 = vmatpush3.bf16.msra.mxu0 %v3384_v34 }
 0xbe4   :  { %v965_v27 = vsel %vm186_vm5, %v961_v25, 0.0  ;;  %3176 = vmatprep.subr.bf16.mxu0 %v3525_v2 }
 0xbe5   :  { %966 = vadd.xlane.f32.xlu0 %v965_v27 }
 0xbe7   :  { %3177 = vmatpush3.bf16.msra.mxu0 %v3385_v44 }
 0xc70   :  { %v964_v28 = vpop.xlane.xlu1 %963 }
 0xc71   :  { %v968_v31 = vmul.f32 0.03125, %v964_v28 }
 0xc72   :  { %v967_v35 = vpop.xlane.xlu0 %966 }
 0xc73   :  { %v970_v36 = vsub.f32 %v960_v18, %v968_v31  ;;  %v969_v37 = vmul.f32 0.03125, %v967_v35 }
 0xc75   :  { %v971_v38 = vsub.f32 %v961_v25, %v969_v37  ;;  %v972_v39 = vmul.f32 %v970_v36, %v970_v36 }
 0xc77   :  { %v974_v42 = vsel %vm186_vm5, %v972_v39, 0.0  ;;  %v973_v43 = vmul.f32 %v971_v38, %v971_v38 }
 0xc78   :  { %975 = vadd.xlane.f32.xlu1 %v974_v42 }
 0xc79   :  { %v977_v32 = vsel %vm186_vm5, %v973_v43, 0.0 }
 0xc7a   :  { %978 = vadd.xlane.f32.xlu0 %v977_v32 }
 0xd05   :  { %v976_v46 = vpop.xlane.xlu1 %975 }
 0xd06   :  { %v980_v41 = vmul.f32 0.03125, %v976_v46 }
 0xd07   :  { %v979_v47 = vpop.xlane.xlu0 %978 }
 0xd08   :  { %v982_v45 = vadd.f32 1e-12, %v980_v41  ;;  %v981_v48 = vmul.f32 0.03125, %v979_v47 }
 0xd0a   :  { %3444 = vrsqrt.f32 %v982_v45  ;;  %v983_v49 = vadd.f32 1e-12, %v981_v48 }
 0xd0c   :  { %3446 = vrsqrt.f32 %v983_v49 }
 0xd14   :  { %v3445_v50 = vpop.eup %3444 }
 0xd15   :  { %v986_v52 = vmul.f32 %v3445_v50, %v970_v36 }
 0xd16   :  { %v3447_v53 = vpop.eup %3446 }
 0xd17   :  { %v992_v54 = vmul.f32 %v2939_v51, %v986_v52  ;;  %v987_v55 = vmul.f32 %v3447_v53, %v971_v38 }
 0xd19   :  { %v993_v33 = vmul.f32 %v2939_v51, %v987_v55  ;;  %v3922_v57 = vadd.f32 %v2940_v40, %v992_v54 }
 0xd1b   :  { %v3924_v58 = vadd.f32 %v2940_v40, %v993_v33 }
 0xd1d   :  { %v1009_v60 = vpack.c.bf16 %v3924_v58, %v3922_v57 }
 0xd1f   :  { %3179 = vmatmul.mubr.msk.bf16.vlgmr.msra.gmra.mrb[24].mxu0 %vm186_vm5, %v1009_v60 }
 0xdf2   :  { %v1068_v62 = vpop.f32.mrb[24].mxu0 }
 0xdf3   :  { %v3180_v0 = vpop.f32.mrb[25].mxu0  ;;  %v1069_v5 = vadd.f32 %v2947_v61, %v1068_v62 }
 0xdf4   :  { %v1071_v3 = vpop.f32.mrb[26].mxu0 }
 0xdf5   :  { %v1072_v6 = vadd.f32 %v2947_v61, %v1071_v3  ;;  %v3181_v19 = vpop.f32.mrb[27].mxu0 }
 0xdf7   :  { %v3327_v21 = vpack.i.bf16 %v1072_v6, %v1069_v5  ;;  %v3932_v7 = vpack.c.bf16 %v1072_v6, %v1069_v5 }
 0xdf9   :  { %3328 = vrot.lane.b32.xlu0 %v3327_v21, %s3528_s0  ;;  %3323 = vrot.lane.b32.xlu1 %v3327_v21, %s3529_s13 }
 0xdfa   :  { %3190 = vmatprep.mubr.msk.bf16.mxu0 %vm343_vm6, %v3932_v7 }
 0xdfd   :  { %3333 = vrot.lane.b32.xlu1 %v3327_v21, %s3530_s14 }
 0xe01   :  { %1103 = vrot.lane.b32.xlu1 %v3932_v7, %s3531_s15 }
 0xe6b   :  { %v3329_v8 = vpop.permute.xlu0 %3328  ;;  %v3324_v9 = vpop.permute.xlu1 %3323 }
 0xe6c   :  { %v3331_v10 = vunpack.i.h.bf16 %v3329_v8  ;;  %v3330_v11 = vunpack.i.l.bf16 %v3329_v8  ;;  %v3326_v14 = vunpack.i.h.bf16 %v3324_v9  ;;  %v3325_v15 = vunpack.i.l.bf16 %v3324_v9 }
 0xe6e   :  { %v3941_v16 = vpack.c.bf16 %v3326_v14, %v3325_v15  ;;  %v3943_v17 = vpack.c.bf16 %v3331_v10, %v3330_v11 }
 0xe6f   :  { %v3334_v18 = vpop.permute.xlu1 %3333 }
 0xe70   :  { %v3336_v24 = vunpack.i.h.bf16 %v3334_v18  ;;  %v3335_v25 = vunpack.i.l.bf16 %v3334_v18  ;;  %1105 = vrot.lane.b32.xlu0 %v3941_v16, %s3531_s15  ;;  %1107 = vrot.lane.b32.xlu1 %v3943_v17, %s3531_s15 }
 0xe72   :  { %v3949_v27 = vpack.c.bf16 %v3336_v24, %v3335_v25 }
 0xe73   :  { %v1104_v28 = vpop.permute.xlu1 %1103 }
 0xe74   :  { %1109 = vrot.lane.b32.xlu0 %v3949_v27, %s3531_s15  ;;  %3262 = vmatprep.subr.msk.bf16.mxu0 %vm343_vm6, %v1104_v28  ;;  %v1124_v31 = vsel %vm343_vm6, %v1104_v28, 0 }
 0xe75   :  { %3183 = vmatpush3.bf16.xpose.msra.mxu0 %v1124_v31 }
 0xee2   :  { %v1106_v35 = vpop.permute.xlu0 %1105  ;;  %v1108_v37 = vpop.permute.xlu1 %1107 }
 0xee3   :  { %3263 = vmatprep.subr.msk.bf16.mxu0 %vm343_vm6, %v1106_v35  ;;  %v1127_v36 = vsel %vm343_vm6, %v1106_v35, 0  ;;  %v1130_v38 = vsel %vm343_vm6, %v1108_v37, 0 }
 0xee4   :  { %3185 = vmatpush3.bf16.xpose.msra.mxu0 %v1127_v36 }
 0xee5   :  { %3264 = vmatprep.subr.msk.bf16.mxu0 %vm343_vm6, %v1108_v37 }
 0xee6   :  { %v1110_v39 = vpop.permute.xlu0 %1109 }
 0xee7   :  { %v1133_v42 = vsel %vm343_vm6, %v1110_v39, 0 }
 0xeec   :  { %3187 = vmatpush3.bf16.xpose.msra.mxu0 %v1130_v38 }
 0xeed   :  { %3265 = vmatprep.subr.msk.bf16.mxu0 %vm343_vm6, %v1110_v39 }
 0xef4   :  { %3189 = vmatpush3.bf16.xpose.msra.mxu0 %v1133_v42 }
 0xef5   :  { %3222 = vmatprep.subr.bf16.mxu0 %v3525_v2 }
 0xefb   :  { %3191 = vmatmul.mubr.msk.bf16.vlgmr.msra.gmra.mrb[28].mxu0 %vm343_vm6, %v3941_v16 }
 0xefc   :  { %3194 = vmatprep.mubr.msk.bf16.mxu0 %vm343_vm6, %v3943_v17 }
 0xf03   :  { %3195 = vmatmul.mubr.msk.bf16.gmra.mrb[32].mxu0 %vm343_vm6, %v3949_v27 }
 0xf04   :  { %3226 = vmatprep.mubr.msk.bf16.mxu0 %vm3526_vm0, %v3525_v2 }
 0xfce   :  { %v3192_v43 = vpop.f32.mrb[28].mxu0 }
 0xfcf   :  { %v1169_v32 = vpop.f32.mrb[29].mxu0  ;;  %v1202_v46 = vmul.f32 0.35355338, %v3192_v43 }
 0xfd0   :  { %v1200_v34 = vmul.f32 0.35355338, %v1169_v32  ;;  %v3193_v44 = vpop.f32.mrb[30].mxu0 }
 0xfd1   :  { %v1203_v41 = vmul.f32 0.35355338, %v3193_v44  ;;  %v1172_v47 = vpop.f32.mrb[31].mxu0  ;;  %v1210_v52 = vadd.f32 %v1202_v46, %v3750_v4 }
 0xfd2   :  { %v1201_v45 = vmul.f32 0.35355338, %v1172_v47  ;;  %v1208_v48 = vadd.f32 %v1200_v34, %v3734_v56 }
 0xfd3   :  { %v1211_v51 = vadd.f32 %v1203_v41, %v3739_v59  ;;  %v1222_v61 = vsel %vm96_vm3, %v1210_v52, -inf }
 0xfd4   :  { %v1216_v49 = vsel %vm96_vm3, %v1208_v48, -inf  ;;  %v1209_v50 = vadd.f32 %v1201_v45, %v3744_v63 }
 0xfd5   :  { %1217 = vmax.xlane.f32.xlu1 %v1216_v49  ;;  %v1225_v60 = vsel %vm96_vm3, %v1211_v51, -inf }
 0xfd6   :  { %v3196_v53 = vpop.f32.mrb[32].mxu0  ;;  %v1219_v54 = vsel %vm96_vm3, %v1209_v50, -inf }
 0xfd7   :  { %1220 = vmax.xlane.f32.xlu0 %v1219_v54  ;;  %v1185_v55 = vpop.f32.mrb[33].mxu0  ;;  %v1206_v62 = vmul.f32 0.35355338, %v3196_v53 }
 0xfd8   :  { %v1204_v40 = vmul.f32 0.35355338, %v1185_v55  ;;  %v3197_v33 = vpop.f32.mrb[34].mxu0 }
 0xfd9   :  { %1226 = vmax.xlane.f32.xlu1 %v1225_v60  ;;  %v1188_v56 = vpop.f32.mrb[35].mxu0  ;;  %v1207_v63 = vmul.f32 0.35355338, %v3197_v33  ;;  %v1214_v6 = vadd.f32 %v1206_v62, %v3773_v29 }
 0xfda   :  { %v1205_v0 = vmul.f32 0.35355338, %v1188_v56  ;;  %v1212_v59 = vadd.f32 %v1204_v40, %v3760_v13 }
 0xfdb   :  { %1223 = vmax.xlane.f32.xlu0 %v1222_v61  ;;  %v1215_v19 = vadd.f32 %v1207_v63, %v3778_v30  ;;  %v1234_v21 = vsel %vm96_vm3, %v1214_v6, -inf }
 0xfdc   :  { %v1213_v4 = vadd.f32 %v1205_v0, %v3767_v22  ;;  %v1228_v3 = vsel %vm96_vm3, %v1212_v59, -inf }
 0xfdd   :  { %v1237_v8 = vsel %vm96_vm3, %v1215_v19, -inf }
 0xfde   :  { %v1231_v5 = vsel %vm96_vm3, %v1213_v4, -inf }
 0xfdf   :  { %1229 = vmax.xlane.f32.xlu0 %v1228_v3  ;;  %1232 = vmax.xlane.f32.xlu1 %v1231_v5 }
 0xfe3   :  { %1235 = vmax.xlane.f32.xlu0 %v1234_v21  ;;  %1238 = vmax.xlane.f32.xlu1 %v1237_v8 }
 0xff4   :  { %1310 = vrot.lane.b32.xlu1 %v3941_v16, %s3532_s2 }
 0xff9   :  { %1308 = vrot.lane.b32.xlu0 %v3932_v7, %s3532_s2 }
0x1062   :  { %v1218_v13 = vpop.xlane.xlu1 %1217 }
0x1063   :  { %v1240_v10 = vsub.f32 %v1208_v48, %v1218_v13 }
0x1064   :  { %v1221_v22 = vpop.xlane.xlu0 %1220 }
0x1065   :  { %v1241_v9 = vsub.f32 %v1209_v50, %v1221_v22  ;;  %v1248_v24 = vmul.f32 1.442695, %v1240_v10 }
0x1066   :  { %v1227_v29 = vpop.xlane.xlu1 %1226 }
0x1067   :  { %v1243_v30 = vsub.f32 %v1211_v51, %v1227_v29  ;;  %v1250_v11 = vmul.f32 1.442695, %v1241_v9 }
0x1068   :  { %v1224_v14 = vpop.xlane.xlu0 %1223 }
0x1069   :  { %v1254_v15 = vmul.f32 1.442695, %v1243_v30  ;;  %v1242_v18 = vsub.f32 %v1210_v52, %v1224_v14 }
0x106b   :  { %3448 = vpow2.f32 %v1254_v15  ;;  %v1252_v25 = vmul.f32 1.442695, %v1242_v18 }
0x106c   :  { %3450 = vpow2.f32 %v1250_v11  ;;  %v1230_v28 = vpop.xlane.xlu0 %1229  ;;  %v1233_v31 = vpop.xlane.xlu1 %1232 }
0x106d   :  { %3452 = vpow2.f32 %v1252_v25  ;;  %v1244_v16 = vsub.f32 %v1212_v59, %v1230_v28  ;;  %v1245_v7 = vsub.f32 %v1213_v4, %v1233_v31 }
0x106e   :  { %3454 = vpow2.f32 %v1248_v24 }
0x106f   :  { %v1256_v39 = vmul.f32 1.442695, %v1244_v16  ;;  %v1258_v32 = vmul.f32 1.442695, %v1245_v7 }
0x1070   :  { %v1236_v35 = vpop.xlane.xlu0 %1235  ;;  %v1239_v36 = vpop.xlane.xlu1 %1238 }
0x1071   :  { %v1246_v37 = vsub.f32 %v1214_v6, %v1236_v35  ;;  %v1247_v38 = vsub.f32 %v1215_v19, %v1239_v36  ;;  %v3386_v35 = vld [vmem:[%s4697_s5 + $0x10] sm:$0xff]   ;;  %v3387_v36 = vld [vmem:[%s4697_s5 + $0x18] sm:$0xff]  }
0x1073   :  { %v1260_v42 = vmul.f32 1.442695, %v1246_v37  ;;  %v1262_v43 = vmul.f32 1.442695, %v1247_v38 }
0x1074   :  { %v1309_v34 = vpop.permute.xlu0 %1308  ;;  %v1311_v41 = vpop.permute.xlu1 %1310 }
0x1075   :  { %v3990_v44 = vpop.eup %3448  ;;  %3456 = vpow2.f32 %v1260_v42  ;;  %3198 = vmatprep.subr.bf16.mxu1 %v1309_v34 }
0x1076   :  { %v3451_v46 = vpop.eup %3450  ;;  %3458 = vpow2.f32 %v1262_v43  ;;  %3199 = vmatpush3.bf16.msra.mxu1 %v1309_v34  ;;  %v1273_v47 = vsel %vm96_vm3, %v3990_v44, 0.0 }
0x1077   :  { %v3453_v45 = vpop.eup %3452  ;;  %3460 = vpow2.f32 %v1256_v39  ;;  %1274 = vadd.xlane.f32.xlu1 %v1273_v47  ;;  %3200 = vmatprep.subr.bf16.mxu1 %v1311_v41  ;;  %v1267_v50 = vsel %vm96_vm3, %v3451_v46, 0.0 }
0x1078   :  { %3462 = vpow2.f32 %v1258_v32  ;;  %v1270_v48 = vsel %vm96_vm3, %v3453_v45, 0.0  ;;  %v3455_v49 = vpop.eup %3454 }
0x1079   :  { %1271 = vadd.xlane.f32.xlu0 %v1270_v48  ;;  %v1264_v51 = vsel %vm96_vm3, %v3455_v49, 0.0 }
0x107a   :  { %3201 = vmatpush3.bf16.msra.mxu1 %v1311_v41 }
0x107b   :  { %1268 = vadd.xlane.f32.xlu1 %v1267_v50 }
0x107d   :  { %1265 = vadd.xlane.f32.xlu0 %v1264_v51 }
0x107f   :  { %v3457_v52 = vpop.eup %3456 }
0x1080   :  { %v3459_v53 = vpop.eup %3458  ;;  %v1282_v54 = vsel %vm96_vm3, %v3457_v52, 0.0 }
0x1081   :  { %v3461_v55 = vpop.eup %3460  ;;  %1283 = vadd.xlane.f32.xlu0 %v1282_v54  ;;  %v1285_v40 = vsel %vm96_vm3, %v3459_v53, 0.0 }
0x1082   :  { %v3463_v33 = vpop.eup %3462  ;;  %1286 = vadd.xlane.f32.xlu1 %v1285_v40  ;;  %v1276_v60 = vsel %vm96_vm3, %v3461_v55, 0.0 }
0x1083   :  { %v1279_v56 = vsel %vm96_vm3, %v3463_v33, 0.0 }
0x1085   :  { %1277 = vadd.xlane.f32.xlu0 %v1276_v60 }
0x1086   :  { %1280 = vadd.xlane.f32.xlu1 %v1279_v56 }
0x1097   :  { %1312 = vrot.lane.b32.xlu1 %v3943_v17, %s3532_s2 }
0x109b   :  { %1314 = vrot.lane.b32.xlu0 %v3949_v27, %s3532_s2 }
0x1104   :  { %v1275_v61 = vpop.xlane.xlu1 %1274 }
0x1106   :  { %v1272_v62 = vpop.xlane.xlu0 %1271 }
0x1108   :  { %v1269_v63 = vpop.xlane.xlu1 %1268 }
0x1109   :  { %3464 = vrcp.f32 %v1269_v63 }
0x110a   :  { %v1266_v0 = vpop.xlane.xlu0 %1265 }
0x110b   :  { %3466 = vrcp.f32 %v1266_v0  ;;  %v2963_v0 = vld [vmem:[%s4701_s9 + $0x6] ss:$0 sm:$0xff] }
0x110c   :  { %3468 = vrcp.f32 %v1272_v62 }
0x110d   :  { %3470 = vrcp.f32 %v1275_v61 }
0x110e   :  { %v1284_v59 = vpop.xlane.xlu0 %1283 }
0x110f   :  { %v1287_v4 = vpop.xlane.xlu1 %1286  ;;  %3472 = vrcp.f32 %v1284_v59 }
0x1112   :  { %v1278_v3 = vpop.xlane.xlu0 %1277 }
0x1113   :  { %v3465_v5 = vpop.eup %3464  ;;  %3474 = vrcp.f32 %v1278_v3  ;;  %v1281_v6 = vpop.xlane.xlu1 %1280 }
0x1114   :  { %3476 = vrcp.f32 %v1281_v6  ;;  %v1297_v27 = vmul.f32 %v3465_v5, %v3451_v46 }
0x1115   :  { %v3467_v17 = vpop.eup %3466  ;;  %3478 = vrcp.f32 %v1287_v4 }
0x1116   :  { %v1296_v19 = vmul.f32 %v3467_v17, %v3455_v49  ;;  %v3469_v21 = vpop.eup %3468  ;;  %v1315_v9 = vpop.permute.xlu0 %1314 }
0x1117   :  { %v1313_v8 = vpop.permute.xlu1 %1312  ;;  %v3471_v22 = vpop.eup %3470  ;;  %v1298_v29 = vmul.f32 %v3469_v21, %v3453_v45 }
0x1118   :  { %3202 = vmatprep.subr.bf16.mxu1 %v1313_v8  ;;  %v1304_v13 = vpack.c.bf16 %v1297_v27, %v1296_v19  ;;  %v1299_v30 = vmul.f32 %v3471_v22, %v3990_v44 }
0x1119   :  { %3203 = vmatpush3.bf16.msra.mxu1 %v1313_v8  ;;  %v3473_v10 = vpop.eup %3472 }
0x111a   :  { %3204 = vmatprep.subr.bf16.mxu1 %v1315_v9  ;;  %3206 = vmatprep.mubr.msk.bf16.mxu1 %vm96_vm3, %v1304_v13  ;;  %v1305_v15 = vpack.c.bf16 %v1299_v30, %v1298_v29  ;;  %v1302_v31 = vmul.f32 %v3473_v10, %v3457_v52 }
0x111d   :  { %v3475_v11 = vpop.eup %3474  ;;  %3205 = vmatpush3.bf16.msra.mxu1 %v1315_v9 }
0x111e   :  { %v3477_v14 = vpop.eup %3476  ;;  %v1300_v18 = vmul.f32 %v3475_v11, %v3461_v55  ;;  %3214 = vmatprep.subr.bf16.mxu1 %v3525_v2 }
0x111f   :  { %v3479_v24 = vpop.eup %3478  ;;  %v1301_v25 = vmul.f32 %v3477_v14, %v3463_v33 }
0x1120   :  { %3207 = vmatmul.mubr.msk.bf16.vlgmr.msra.gmra.mrb[12].mxu1 %vm96_vm3, %v1305_v15  ;;  %v1303_v16 = vmul.f32 %v3479_v24, %v3459_v53 }
0x1121   :  { %v1306_v28 = vpack.c.bf16 %v1301_v25, %v1300_v18  ;;  %3215 = vmatpush3.bf16.msra.mxu1 %v3386_v35  ;;  %v3389_v18 = vld [vmem:[%s4698_s6 + $0x18] sm:$0xff]  }
0x1122   :  { %v1307_v7 = vpack.c.bf16 %v1303_v16, %v1302_v31  ;;  %3216 = vmatprep.subr.bf16.mxu1 %v3525_v2 }
0x1123   :  { %3210 = vmatprep.mubr.msk.bf16.mxu1 %vm96_vm3, %v1306_v28 }
0x1125   :  { %3217 = vmatpush3.bf16.msra.mxu1 %v3387_v36 }
0x1126   :  { %3230 = vmatprep.subr.bf16.mxu1 %v3525_v2 }
0x1128   :  { %3211 = vmatmul.mubr.msk.bf16.gmra.mrb[16].mxu1 %vm96_vm3, %v1307_v7 }
0x1129   :  { %3218 = vmatprep.mubr.msk.bf16.mxu1 %vm3526_vm0, %v3525_v2 }
0x11f3   :  { %v3208_v37 = vpop.f32.mrb[12].mxu1 }
0x11f4   :  { %v1366_v38 = vpop.f32.mrb[13].mxu1 }
0x11f5   :  { %v3209_v39 = vpop.f32.mrb[14].mxu1 }
0x11f6   :  { %v3337_v42 = vpack.i.bf16 %v3209_v39, %v3208_v37  ;;  %v1369_v43 = vpop.f32.mrb[15].mxu1  ;;  %v2967_v37 = vld [vmem:[%s4701_s9 + $0x8] ss:$0 sm:$0xff] }
0x11f8   :  { %3338 = vrot.lane.b32.xlu1 %v3337_v42, %s3533_s20 }
0x11fb   :  { %v3212_v32 = vpop.f32.mrb[16].mxu1 }
0x11fc   :  { %v1382_v34 = vpop.f32.mrb[17].mxu1 }
0x11fd   :  { %v3213_v44 = vpop.f32.mrb[18].mxu1 }
0x11fe   :  { %v3347_v46 = vpack.i.bf16 %v3213_v44, %v3212_v32  ;;  %v1385_v41 = vpop.f32.mrb[19].mxu1 }
0x11ff   :  { %v3342_v47 = vpack.i.bf16 %v1385_v41, %v1382_v34  ;;  %v3390_v41 = vld [vmem:[%s4699_s7 + $0x40] sm:$0xff]  }
0x1200   :  { %3348 = vrot.lane.b32.xlu1 %v3347_v46, %s3534_s21 }
0x1201   :  { %3343 = vrot.lane.b32.xlu0 %v3342_v47, %s3535_s3  ;;  %v3391_v47 = vld [vmem:[%s4699_s7 + $0x48] sm:$0xff]  }
0x126a   :  { %v3339_v45 = vpop.permute.xlu1 %3338 }
0x126b   :  { %v3341_v48 = vunpack.i.h.bf16 %v3339_v45  ;;  %v3340_v49 = vunpack.i.l.bf16 %v3339_v45  ;;  %v3392_v45 = vld [vmem:[%s4699_s7 + $0x50] sm:$0xff]  }
0x126d   :  { %v1421_v54 = vsel %vm343_vm6, %v1366_v38, %v3340_v49  ;;  %v1422_v55 = vsel %vm343_vm6, %v1369_v43, %v3341_v48  ;;  %v2968_v43 = vld [vmem:[%s4701_s9 + $0x9] ss:$0 sm:$0xff]  ;;  %v3393_v48 = vld [vmem:[%s4699_s7 + $0x58] sm:$0xff]   ;;  %v3394_v49 = vld [vmem:[%s4699_s7 + $0x60] sm:$0xff]  }
0x1272   :  { %v3349_v50 = vpop.permute.xlu1 %3348 }
0x1273   :  { %v3344_v51 = vpop.permute.xlu0 %3343  ;;  %v3351_v40 = vunpack.i.h.bf16 %v3349_v50  ;;  %v3350_v33 = vunpack.i.l.bf16 %v3349_v50  ;;  %v3395_v50 = vld [vmem:[%s4699_s7 + $0x68] sm:$0xff]  }
0x1274   :  { %v3346_v52 = vunpack.i.h.bf16 %v3344_v51  ;;  %v3345_v53 = vunpack.i.l.bf16 %v3344_v51  ;;  %v3396_v51 = vld [vmem:[%s4699_s7 + $0x70] sm:$0xff]  }
0x1276   :  { %v1424_v60 = vsel %vm656_vm7, %v1422_v55, %v3346_v52  ;;  %v1423_v56 = vsel %vm656_vm7, %v1421_v54, %v3345_v53  ;;  %v3397_v52 = vld [vmem:[%s4699_s7 + $0x78] sm:$0xff]   ;;  %v2973_v53 = vld [vmem:[%s4700_s8 + $0x3] ss:$0 sm:$0xff] }
0x1277   :  { %v1426_v61 = vsel %vm659_vm8, %v1424_v60, %v3351_v40  ;;  %v1425_v62 = vsel %vm659_vm8, %v1423_v56, %v3350_v33 }
0x1278   :  { %v1427_v63 = vpack.c.bf16 %v1426_v61, %v1425_v62 }
0x127a   :  { %3219 = vmatmul.mubr.msk.bf16.vlgmr.msra.gmra.mrb[20].mxu1 %vm186_vm5, %v1427_v63 }
0x127b   :  { %3246 = vmatprep.mubr.msk.bf16.mxu1 %vm3526_vm0, %v3525_v2  ;;  %3231 = vmatpush3.bf16.msra.mxu1 %v3390_v41 }
0x127c   :  { %3232 = vmatprep.subr.bf16.mxu1 %v3525_v2 }
0x127f   :  { %3233 = vmatpush3.bf16.msra.mxu1 %v3391_v47 }
0x1280   :  { %3234 = vmatprep.subr.bf16.mxu1 %v3525_v2 }
0x1283   :  { %3235 = vmatpush3.bf16.msra.mxu1 %v3392_v45 }
0x1284   :  { %3236 = vmatprep.subr.bf16.mxu1 %v3525_v2 }
0x1287   :  { %3237 = vmatpush3.bf16.msra.mxu1 %v3393_v48 }
0x1288   :  { %3238 = vmatprep.subr.bf16.mxu1 %v3525_v2 }
0x128b   :  { %3239 = vmatpush3.bf16.msra.mxu1 %v3394_v49 }
0x128c   :  { %3240 = vmatprep.subr.bf16.mxu1 %v3525_v2 }
0x128f   :  { %3241 = vmatpush3.bf16.msra.mxu1 %v3395_v50 }
0x1290   :  { %3242 = vmatprep.subr.bf16.mxu1 %v3525_v2 }
0x1293   :  { %3243 = vmatpush3.bf16.msra.mxu1 %v3396_v51  ;;  %v3002_v51 = vld [vmem:[%s4701_s9 + $0xa] ss:$0 sm:$0xff] }
0x1294   :  { %3244 = vmatprep.subr.bf16.mxu1 %v3525_v2 }
0x1297   :  { %3245 = vmatpush3.bf16.msra.mxu1 %v3397_v52 }
0x134d   :  { %v1486_v59 = vpop.f32.mrb[20].mxu1 }
0x134e   :  { %v1487_v4 = vadd.f32 %v2963_v0, %v1486_v59  ;;  %v3220_v3 = vpop.f32.mrb[21].mxu1 }
0x134f   :  { %v1489_v5 = vpop.f32.mrb[22].mxu1 }
0x1350   :  { %v1490_v6 = vadd.f32 %v2963_v0, %v1489_v5  ;;  %v3221_v17 = vpop.f32.mrb[23].mxu1  ;;  %v1493_v19 = vadd.f32 %v1487_v4, %v3922_v57 }
0x1352   :  { %v1495_v27 = vsel %vm186_vm5, %v1493_v19, 0.0  ;;  %v1494_v21 = vadd.f32 %v1490_v6, %v3924_v58  ;;  %v3388_v58 = vld [vmem:[%s4698_s6 + $0x10] sm:$0xff]  }
0x1353   :  { %1496 = vadd.xlane.f32.xlu0 %v1495_v27  ;;  %3223 = vmatpush3.bf16.msra.mxu0 %v3388_v58 }
0x1354   :  { %v1498_v8 = vsel %vm186_vm5, %v1494_v21, 0.0  ;;  %3224 = vmatprep.subr.bf16.mxu0 %v3525_v2 }
0x1355   :  { %1499 = vadd.xlane.f32.xlu1 %v1498_v8 }
0x1357   :  { %3225 = vmatpush3.bf16.msra.mxu0 %v3389_v18 }
0x1358   :  { %3250 = vmatprep.subr.bf16.mxu0 %v3525_v2 }
0x13e0   :  { %v1497_v13 = vpop.xlane.xlu0 %1496 }
0x13e1   :  { %v1501_v22 = vmul.f32 0.03125, %v1497_v13 }
0x13e2   :  { %v1500_v9 = vpop.xlane.xlu1 %1499 }
0x13e3   :  { %v1503_v29 = vsub.f32 %v1493_v19, %v1501_v22  ;;  %v1502_v10 = vmul.f32 0.03125, %v1500_v9 }
0x13e5   :  { %v1504_v30 = vsub.f32 %v1494_v21, %v1502_v10  ;;  %v1505_v11 = vmul.f32 %v1503_v29, %v1503_v29 }
0x13e7   :  { %v1507_v14 = vsel %vm186_vm5, %v1505_v11, 0.0  ;;  %v1506_v15 = vmul.f32 %v1504_v30, %v1504_v30 }
0x13e8   :  { %1508 = vadd.xlane.f32.xlu0 %v1507_v14 }
0x13e9   :  { %v1510_v57 = vsel %vm186_vm5, %v1506_v15, 0.0 }
0x13ec   :  { %1511 = vadd.xlane.f32.xlu0 %v1510_v57 }
0x1475   :  { %v1509_v24 = vpop.xlane.xlu0 %1508 }
0x1476   :  { %v1513_v25 = vmul.f32 0.03125, %v1509_v24 }
0x1478   :  { %v1515_v28 = vadd.f32 1e-12, %v1513_v25 }
0x1479   :  { %v1512_v31 = vpop.xlane.xlu0 %1511 }
0x147a   :  { %3480 = vrsqrt.f32 %v1515_v28  ;;  %v1514_v16 = vmul.f32 0.03125, %v1512_v31 }
0x147c   :  { %v1516_v7 = vadd.f32 1e-12, %v1514_v16 }
0x147e   :  { %3482 = vrsqrt.f32 %v1516_v7 }
0x1484   :  { %v3481_v35 = vpop.eup %3480 }
0x1485   :  { %v1519_v36 = vmul.f32 %v3481_v35, %v1503_v29 }
0x1487   :  { %v1525_v39 = vmul.f32 %v2967_v37, %v1519_v36 }
0x1488   :  { %v3483_v38 = vpop.eup %3482 }
0x1489   :  { %v1520_v42 = vmul.f32 %v3483_v38, %v1504_v30  ;;  %v4056_v34 = vadd.f32 %v2968_v43, %v1525_v39  ;;  %v2993_v30 = vld [vmem:[%s4701_s9 + $0x7] ss:$0 sm:$0xff] }
0x148b   :  { %v1526_v32 = vmul.f32 %v2967_v37, %v1520_v42 }
0x148d   :  { %v4058_v44 = vadd.f32 %v2968_v43, %v1526_v32 }
0x148f   :  { %v1533_v46 = vpack.c.bf16 %v4058_v44, %v4056_v34 }
0x1491   :  { %3227 = vmatmul.mubr.msk.bf16.vlgmr.msra.gmra.mrb[36].mxu0 %vm186_vm5, %v1533_v46 }
0x1492   :  { %3254 = vmatprep.mubr.msk.bf16.mxu0 %vm3526_vm0, %v3525_v2 }
0x1564   :  { %v1592_v54 = vpop.f32.mrb[36].mxu0 }
0x1565   :  { %v1593_v55 = vadd.f32 %v2973_v53, %v1592_v54  ;;  %v3228_v40 = vpop.f32.mrb[37].mxu0 }
0x1566   :  { %v1595_v33 = vpop.f32.mrb[38].mxu0  ;;  %v3003_v40 = vld [vmem:[%s4701_s9 + $0xb] ss:$0 sm:$0xff] }
0x1567   :  { %v1599_v60 = vmul.f32 %v1593_v55, %v1593_v55  ;;  %v1596_v56 = vadd.f32 %v2973_v53, %v1595_v33  ;;  %v3229_v61 = vpop.f32.mrb[39].mxu0 }
0x1569   :  { %v1601_v62 = vmul.f32 %v1599_v60, %v1593_v55  ;;  %v1600_v63 = vmul.f32 %v1596_v56, %v1596_v56 }
0x156b   :  { %v1603_v0 = vmul.f32 0.044715, %v1601_v62  ;;  %v1602_v59 = vmul.f32 %v1600_v63, %v1596_v56 }
0x156d   :  { %v1605_v4 = vadd.f32 %v1603_v0, %v1593_v55  ;;  %v1604_v3 = vmul.f32 0.044715, %v1602_v59 }
0x156f   :  { %v1607_v5 = vmul.f32 0.7978846, %v1605_v4  ;;  %v1606_v6 = vadd.f32 %v1604_v3, %v1596_v56 }
0x1571   :  { %3484 = vtanh.f32 %v1607_v5  ;;  %v1608_v17 = vmul.f32 0.7978846, %v1606_v6 }
0x1573   :  { %3486 = vtanh.f32 %v1608_v17 }
0x157b   :  { %v3485_v19 = vpop.eup %3484 }
0x157c   :  { %v1611_v27 = vadd.f32 1.0, %v3485_v19 }
0x157d   :  { %v3487_v21 = vpop.eup %3486 }
0x157e   :  { %v1613_v8 = vmul.f32 0.5, %v1611_v27  ;;  %v1612_v13 = vadd.f32 1.0, %v3487_v21 }
0x1580   :  { %v1614_v22 = vmul.f32 0.5, %v1612_v13  ;;  %v1615_v9 = vmul.f32 %v1613_v8, %v1593_v55 }
0x1582   :  { %v1616_v29 = vmul.f32 %v1614_v22, %v1596_v56 }
0x1584   :  { %v1617_v10 = vpack.c.bf16 %v1616_v29, %v1615_v9 }
0x1586   :  { %3247 = vmatmul.mubr.bf16.vlgmr.msra.gmra.mrb[24].mxu1 %v1617_v10 }
0x1659   :  { %v1721_v11 = vpop.f32.mrb[24].mxu1 }
0x165a   :  { %v1722_v14 = vadd.f32 %v2993_v30, %v1721_v11  ;;  %v3248_v15 = vpop.f32.mrb[25].mxu1 }
0x165b   :  { %v1724_v57 = vpop.f32.mrb[26].mxu1 }
0x165c   :  { %v1725_v58 = vadd.f32 %v2993_v30, %v1724_v57  ;;  %v3249_v18 = vpop.f32.mrb[27].mxu1  ;;  %v1728_v24 = vadd.f32 %v1722_v14, %v4056_v34  ;;  %v3398_v34 = vld [vmem:[%s4702_s10] sm:$0xff]  }
0x165d   :  { %3251 = vmatpush3.bf16.msra.mxu0 %v3398_v34  ;;  %v4160_v34 = vld [vmem:[%s4693_s1 + $0x1] sm:$0x1] }
0x165e   :  { %v1730_v25 = vsel %vm186_vm5, %v1728_v24, 0.0  ;;  %v1729_v28 = vadd.f32 %v1725_v58, %v4058_v44  ;;  %3252 = vmatprep.subr.bf16.mxu0 %v3525_v2  ;;  %v3399_v44 = vld [vmem:[%s4702_s10 + $0x8] sm:$0xff]   ;;  %vm1933_vm13 = vcmp.gt.s32.totalorder %v4160_v34, 0 }
0x165f   :  { %1731 = vadd.xlane.f32.xlu1 %v1730_v25  ;;  %v1863_v25 = vld [vmem:[%s4703_s11] sm:$0x1] }
0x1660   :  { %v1733_v31 = vsel %vm186_vm5, %v1729_v28, 0.0 }
0x1661   :  { %1734 = vadd.xlane.f32.xlu0 %v1733_v31  ;;  %3253 = vmatpush3.bf16.msra.mxu0 %v3399_v44  ;;  %v4165_v44 = vsel %vm1933_vm13, 1, %v3524_v1 }
0x16ec   :  { %v1732_v16 = vpop.xlane.xlu1 %1731 }
0x16ed   :  { %v1736_v7 = vmul.f32 0.03125, %v1732_v16  ;;  %v4137_v16 = vsel %vm1868_vm10, 1.0, %v3525_v2  ;;  %v4151_v2 = vld [vmem:[%s4693_s1] sm:$0x1] }
0x16ee   :  { %v1735_v35 = vpop.xlane.xlu0 %1734  ;;  %vm1932_vm12 = vcmp.gt.s32.totalorder %v4151_v2, 0 }
0x16ef   :  { %v1738_v36 = vsub.f32 %v1728_v24, %v1736_v7  ;;  %v1737_v37 = vmul.f32 0.03125, %v1735_v35 }
0x16f1   :  { %v1739_v38 = vsub.f32 %v1729_v28, %v1737_v37  ;;  %v1740_v39 = vmul.f32 %v1738_v36, %v1738_v36 }
0x16f3   :  { %v1742_v42 = vsel %vm186_vm5, %v1740_v39, 0.0  ;;  %v1741_v43 = vmul.f32 %v1739_v38, %v1739_v38 }
0x16f4   :  { %1743 = vadd.xlane.f32.xlu1 %v1742_v42 }
0x16f5   :  { %v1745_v32 = vsel %vm186_vm5, %v1741_v43, 0.0 }
0x16f6   :  { %1746 = vadd.xlane.f32.xlu0 %v1745_v32  ;;  %v4155_v32 = vsel %vm1932_vm12, 1, %v3524_v1 }
0x1781   :  { %v1744_v46 = vpop.xlane.xlu1 %1743 }
0x1782   :  { %v1748_v41 = vmul.f32 0.03125, %v1744_v46  ;;  %v3536_v46 = vmov 2  }
0x1783   :  { %v1747_v47 = vpop.xlane.xlu0 %1746 }
0x1784   :  { %v1750_v45 = vadd.f32 1e-12, %v1748_v41  ;;  %v1749_v48 = vmul.f32 0.03125, %v1747_v47  ;;  %v4171_v41 = vld [vmem:[%s4703_s11 + $0x2] sm:$0x1f] }
0x1786   :  { %3488 = vrsqrt.f32 %v1750_v45  ;;  %v1751_v49 = vadd.f32 1e-12, %v1749_v48 }
0x1788   :  { %3490 = vrsqrt.f32 %v1751_v49 }
0x1790   :  { %v3489_v50 = vpop.eup %3488 }
0x1791   :  { %v1754_v52 = vmul.f32 %v3489_v50, %v1738_v36 }
0x1792   :  { %v3491_v53 = vpop.eup %3490 }
0x1793   :  { %v1760_v54 = vmul.f32 %v3002_v51, %v1754_v52  ;;  %v1755_v55 = vmul.f32 %v3491_v53, %v1739_v38 }
0x1795   :  { %v1761_v33 = vmul.f32 %v3002_v51, %v1755_v55  ;;  %v1766_v60 = vadd.f32 %v3003_v40, %v1760_v54 }
0x1797   :  { %v1767_v56 = vadd.f32 %v3003_v40, %v1761_v33 }
0x1799   :  { %v1768_v61 = vpack.c.bf16 %v1767_v56, %v1766_v60 }
0x179b   :  { %3255 = vmatmul.mubr.msk.bf16.vlgmr.msra.gmra.mrb[40].mxu0 %vm186_vm5, %v1768_v61 }
0x186e   :  { %v1822_v62 = vpop.f32.mrb[40].mxu0 }
0x186f   :  { %v3256_v63 = vpop.f32.mrb[41].mxu0  ;;  %v1830_v0 = vsel %vm1829_vm9, %v1822_v62, -inf }
0x1870   :  { %1831 = vmax.xlane.f32.xlu1 %v1830_v0  ;;  %v1825_v59 = vpop.f32.mrb[42].mxu0 }
0x1871   :  { %v3257_v4 = vpop.f32.mrb[43].mxu0  ;;  %v1833_v3 = vsel %vm1829_vm9, %v1825_v59, -inf }
0x1872   :  { %1834 = vmax.xlane.f32.xlu0 %v1833_v3 }
0x18fd   :  { %v1832_v5 = vpop.xlane.xlu1 %1831 }
0x18fe   :  { %v1836_v6 = vsub.f32 %v1822_v62, %v1832_v5 }
0x18ff   :  { %v1835_v17 = vpop.xlane.xlu0 %1834 }
0x1900   :  { %v1838_v19 = vmul.f32 1.442695, %v1836_v6  ;;  %v1837_v27 = vsub.f32 %v1825_v59, %v1835_v17 }
0x1902   :  { %3492 = vpow2.f32 %v1838_v19  ;;  %v1840_v21 = vmul.f32 1.442695, %v1837_v27 }
0x1904   :  { %3494 = vpow2.f32 %v1840_v21 }
0x190c   :  { %v3493_v8 = vpop.eup %3492 }
0x190d   :  { %v1842_v13 = vsel %vm1829_vm9, %v3493_v8, 0.0 }
0x190e   :  { %v3495_v22 = vpop.eup %3494  ;;  %1843 = vadd.xlane.f32.xlu1 %v1842_v13 }
0x190f   :  { %v1845_v9 = vsel %vm1829_vm9, %v3495_v22, 0.0 }
0x1910   :  { %1846 = vadd.xlane.f32.xlu0 %v1845_v9 }
0x199b   :  { %v1844_v29 = vpop.xlane.xlu1 %1843 }
0x199c   :  { %3496 = vlog2.f32 %v1844_v29 }
0x199d   :  { %v1847_v10 = vpop.xlane.xlu0 %1846 }
0x199e   :  { %3498 = vlog2.f32 %v1847_v10 }
0x19a6   :  { %v3497_v30 = vpop.eup %3496 }
0x19a7   :  { %v1849_v11 = vmul.f32 0.6931472, %v3497_v30 }
0x19a8   :  { %v3499_v14 = vpop.eup %3498 }
0x19a9   :  { %v1852_v15 = vadd.f32 %v1849_v11, %v1832_v5  ;;  %v1851_v57 = vmul.f32 0.6931472, %v3499_v14  ;;  %v3537_v11 = vmov 3  }
0x19ab   :  { %v1854_v58 = vsub.f32 %v1822_v62, %v1852_v15  ;;  %v1853_v18 = vadd.f32 %v1851_v57, %v1835_v17 }
0x19ad   :  { %1856 = vst.msk [vmem:[#allocation2] sm:$0xff] %vm1829_vm9, %v1854_v58  ;;  %v1855_v24 = vsub.f32 %v1825_v59, %v1853_v18 }
0x19af   :  { %1858 = vst.msk [vmem:[#allocation2 + $0x8] sm:$0xff] %vm1829_vm9, %v1855_v24 }
0x19b4   :  { %v4133_v28 = vld [vmem:[#allocation2] sm:$0xff] }
0x19b5   :  { %v1871_v31 = vadd.f32 %v1863_v25, %v4133_v28 }
0x19b6   :  { %v4139_v7 = vld [vmem:[#allocation2 + $0x8] sm:$0xff] }
0x19b7   :  { %v1876_v35 = vrot.slane %v1871_v31, %v3659_v26  ;;  %v1872_v36 = vadd.f32 %v1863_v25, %v4139_v7  ;;  %v1954_v17 = vrot.slane %v1871_v31, 7 }
0x19b9   :  { %v1881_v37 = vmul.f32 %v4137_v16, %v1876_v35  ;;  %v1880_v38 = vrot.slane %v1872_v36, %v3659_v26  ;;  %v1955_v21 = vrot.slane %v1872_v36, 7 }
0x19bb   :  { %v1884_v39 = vsel %vm1883_vm11, %v1881_v37, 0.0  ;;  %v1882_v42 = vmul.f32 %v4137_v16, %v1880_v38 }
0x19bc   :  { %1885 = vadd.xlane.f32.xlu1 %v1884_v39 }
0x19bd   :  { %v1887_v43 = vsel %vm1883_vm11, %v1882_v42, 0.0 }
0x19be   :  { %1888 = vadd.xlane.f32.xlu0 %v1887_v43 }
0x19cd   :  { %1937 = vperm.xlu1 %3291, %v4155_v32  }
0x19d1   :  { %3353 = vset.pattern.permute.xlu1 %v3536_v46 }
0x19d4   :  { %1944 = vperm.xlu0 %3352, %v4165_v44  }
0x19d8   :  { %3354 = vset.pattern.permute.xlu0 %v3537_v11 }
0x1a49   :  { %v1886_v47 = vpop.xlane.xlu1 %1885 }
0x1a4a   :  { %v4174_v45 = vadd.f32 %v1886_v47, %v4171_v41 }
0x1a4b   :  { %v1889_v48 = vpop.xlane.xlu0 %1888 }
0x1a4c   :  { %v1892_v49 = vsel %vm1883_vm11, %v4174_v45, -inf  ;;  %v4179_v50 = vadd.f32 %v1889_v48, %v4171_v41 }
0x1a4d   :  { %v1893_v51 = vrot.slane %v1892_v49, 4  ;;  %v1938_v56 = vpop.permute.xlu1 %1937 }
0x1a4e   :  { %v1899_v52 = vsel %vm1883_vm11, %v4179_v50, -inf  ;;  %v1942_v0 = vrot.slane %v1938_v56, %v3659_v26 }
0x1a4f   :  { %v1894_v53 = vmax.f32 %v1892_v49, %v1893_v51  ;;  %v1900_v54 = vrot.slane %v1899_v52, 4 }
0x1a50   :  { %vm1950_vm15 = vcmp.eq.s32.totalorder %v1942_v0, 1 }
0x1a51   :  { %v1895_v55 = vrot.slane %v1894_v53, 2  ;;  %v1901_v40 = vmax.f32 %v1899_v52, %v1900_v54  ;;  %v2044_v52 = vsub.s32 2, %v3647_v20 }
0x1a53   :  { %v1896_v33 = vmax.f32 %v1894_v53, %v1895_v55  ;;  %v1902_v60 = vrot.slane %v1901_v40, 2  ;;  %v1945_v61 = vpop.permute.xlu0 %1944 }
0x1a54   :  { %v1949_v59 = vrot.slane %v1945_v61, %v3659_v26 }
0x1a55   :  { %v1897_v62 = vrot.slane %v1896_v33, 1  ;;  %v1903_v63 = vmax.f32 %v1901_v40, %v1902_v60 }
0x1a56   :  { %vm1951_vm0 = vcmp.eq.s32.totalorder %v1949_v59, 1 }
0x1a57   :  { %v4185_v4 = vmax.f32 %v1896_v33, %v1897_v62  ;;  %v1904_v3 = vrot.slane %v1903_v63, 1 }
0x1a59   :  { %v1930_v5 = vadd.f32 %v4185_v4, %v4133_v28  ;;  %v4191_v6 = vmax.f32 %v1903_v63, %v1904_v3 }
0x1a5b   :  { %v1931_v19 = vadd.f32 %v4191_v6, %v4139_v7  ;;  %v1958_v27 = vsel %vm1950_vm15, %v1930_v5, %v1954_v17  ;;  %v3538_v5 = vmov 4  }
0x1a5c   :  { %v1963_v8 = vrot.slane %v1958_v27, %v3650_v23  ;;  %v2036_v54 = vrot.slane %v1958_v27, 7 }
0x1a5d   :  { %v1959_v13 = vsel %vm1951_vm0, %v1931_v19, %v1955_v21 }
0x1a5e   :  { %v1967_v22 = vrot.slane %v1959_v13, %v3650_v23  ;;  %v1968_v9 = vmul.f32 %v4137_v16, %v1963_v8  ;;  %v2037_v33 = vrot.slane %v1959_v13, 7 }
0x1a60   :  { %v1969_v29 = vmul.f32 %v4137_v16, %v1967_v22  ;;  %v1970_v10 = vsel %vm1883_vm11, %v1968_v9, 0.0 }
0x1a61   :  { %1971 = vadd.xlane.f32.xlu1 %v1970_v10 }
0x1a62   :  { %v1973_v30 = vsel %vm1883_vm11, %v1969_v29, 0.0 }
0x1a63   :  { %1974 = vadd.xlane.f32.xlu0 %v1973_v30 }
0x1a72   :  { %2019 = vperm.xlu1 %3353, %v4155_v32  }
0x1a76   :  { %2026 = vperm.xlu1 %3353, %v4165_v44  }
0x1a7a   :  { %3355 = vset.pattern.permute.xlu1 %v3537_v11 }
0x1aee   :  { %v1972_v14 = vpop.xlane.xlu1 %1971 }
0x1aef   :  { %v4206_v23 = vadd.f32 %v1972_v14, %v4171_v41 }
0x1af0   :  { %v1975_v15 = vpop.xlane.xlu0 %1974 }
0x1af1   :  { %v4209_v57 = vadd.f32 %v1975_v15, %v4171_v41  ;;  %v1978_v58 = vsel %vm1883_vm11, %v4206_v23, -inf }
0x1af2   :  { %v1979_v18 = vrot.slane %v1978_v58, 4  ;;  %v2020_v35 = vpop.permute.xlu1 %2019 }
0x1af3   :  { %v1985_v24 = vsel %vm1883_vm11, %v4209_v57, -inf  ;;  %v2024_v43 = vrot.slane %v2020_v35, %v3659_v26 }
0x1af4   :  { %v1986_v25 = vrot.slane %v1985_v24, 4  ;;  %v1980_v31 = vmax.f32 %v1978_v58, %v1979_v18 }
0x1af5   :  { %vm2032_vm2 = vcmp.eq.s32.totalorder %v2024_v43, 1 }
0x1af6   :  { %v1987_v36 = vmax.f32 %v1985_v24, %v1986_v25  ;;  %v1981_v37 = vrot.slane %v1980_v31, 2  ;;  %v2027_v47 = vpop.permute.xlu1 %2026 }
0x1af7   :  { %v2031_v53 = vrot.slane %v2027_v47, %v3659_v26 }
0x1af8   :  { %v1988_v38 = vrot.slane %v1987_v36, 2  ;;  %v1982_v39 = vmax.f32 %v1980_v31, %v1981_v37  ;;  %v2126_v37 = vsub.s32 3, %v3647_v20 }
0x1af9   :  { %vm2033_vm5 = vcmp.eq.s32.totalorder %v2031_v53, 1 }
0x1afa   :  { %v1989_v42 = vmax.f32 %v1987_v36, %v1988_v38  ;;  %v1983_v46 = vrot.slane %v1982_v39, 1 }
0x1afc   :  { %v1990_v48 = vrot.slane %v1989_v42, 1  ;;  %v4216_v49 = vmax.f32 %v1982_v39, %v1983_v46 }
0x1afe   :  { %v4218_v51 = vmax.f32 %v1989_v42, %v1990_v48  ;;  %v2016_v55 = vadd.f32 %v4216_v49, %v4133_v28 }
0x1b00   :  { %v2017_v40 = vadd.f32 %v4218_v51, %v4139_v7  ;;  %v2040_v60 = vsel %vm2032_vm2, %v2016_v55, %v2036_v54 }
0x1b01   :  { %v2045_v56 = vrot.slane %v2040_v60, %v2044_v52  ;;  %v2118_v38 = vrot.slane %v2040_v60, 7  ;;  %v3539_v60 = vmov 5  }
0x1b02   :  { %v2041_v61 = vsel %vm2033_vm5, %v2017_v40, %v2037_v33 }
0x1b03   :  { %v2049_v62 = vrot.slane %v2041_v61, %v2044_v52  ;;  %v2050_v63 = vmul.f32 %v4137_v16, %v2045_v56  ;;  %v2119_v43 = vrot.slane %v2041_v61, 7 }
0x1b05   :  { %v2052_v0 = vsel %vm1883_vm11, %v2050_v63, 0.0  ;;  %v2051_v59 = vmul.f32 %v4137_v16, %v2049_v62 }
0x1b06   :  { %2053 = vadd.xlane.f32.xlu1 %v2052_v0 }
0x1b07   :  { %v2055_v3 = vsel %vm1883_vm11, %v2051_v59, 0.0 }
0x1b08   :  { %2056 = vadd.xlane.f32.xlu0 %v2055_v3 }
0x1b17   :  { %2108 = vperm.xlu1 %3355, %v4165_v44  }
0x1b1b   :  { %3357 = vset.pattern.permute.xlu1 %v3538_v5 }
0x1b1e   :  { %2101 = vperm.xlu0 %3354, %v4155_v32  }
0x1b22   :  { %3356 = vset.pattern.permute.xlu0 %v3538_v5 }
0x1b93   :  { %v2054_v17 = vpop.xlane.xlu1 %2053 }
0x1b94   :  { %v4237_v19 = vadd.f32 %v2054_v17, %v4171_v41 }
0x1b95   :  { %v2057_v27 = vpop.xlane.xlu0 %2056 }
0x1b96   :  { %v2060_v21 = vsel %vm1883_vm11, %v4237_v19, -inf  ;;  %v4242_v8 = vadd.f32 %v2057_v27, %v4171_v41 }
0x1b97   :  { %v2061_v13 = vrot.slane %v2060_v21, 4  ;;  %v2109_v58 = vpop.permute.xlu1 %2108 }
0x1b98   :  { %v2067_v22 = vsel %vm1883_vm11, %v4242_v8, -inf  ;;  %v2113_v31 = vrot.slane %v2109_v58, %v3659_v26 }
0x1b99   :  { %v2062_v9 = vmax.f32 %v2060_v21, %v2061_v13  ;;  %v2068_v29 = vrot.slane %v2067_v22, 4 }
0x1b9a   :  { %vm2115_vm8 = vcmp.eq.s32.totalorder %v2113_v31, 1 }
0x1b9b   :  { %v2063_v10 = vrot.slane %v2062_v9, 2  ;;  %v2069_v30 = vmax.f32 %v2067_v22, %v2068_v29 }
0x1b9d   :  { %v2064_v11 = vmax.f32 %v2062_v9, %v2063_v10  ;;  %v2070_v14 = vrot.slane %v2069_v30, 2  ;;  %v2102_v15 = vpop.permute.xlu0 %2101 }
0x1b9e   :  { %v2106_v18 = vrot.slane %v2102_v15, %v3659_v26 }
0x1b9f   :  { %v2065_v24 = vrot.slane %v2064_v11, 1  ;;  %v2071_v25 = vmax.f32 %v2069_v30, %v2070_v14 }
0x1ba0   :  { %vm2114_vm6 = vcmp.eq.s32.totalorder %v2106_v18, 1 }
0x1ba1   :  { %v4248_v35 = vmax.f32 %v2064_v11, %v2065_v24  ;;  %v2072_v36 = vrot.slane %v2071_v25, 1  ;;  %v2208_v24 = vsub.s32 4, %v3647_v20 }
0x1ba3   :  { %vm2074_vm7 = vcmp.eq.f32.partialorder %v4237_v19, %v4248_v35  ;;  %v2098_v39 = vadd.f32 %v4248_v35, %v4133_v28  ;;  %v4255_v42 = vmax.f32 %v2071_v25, %v2072_v36 }
0x1ba5   :  { %vm2075_vm9 = vcmp.eq.f32.partialorder %v4242_v8, %v4255_v42  ;;  %v2099_v46 = vadd.f32 %v4255_v42, %v4139_v7  ;;  %v2122_v47 = vsel %vm2114_vm6, %v2098_v39, %v2118_v38 }
0x1ba6   :  { %v2127_v48 = vrot.slane %v2122_v47, %v2126_v37  ;;  %v2200_v25 = vrot.slane %v2122_v47, 7 }
0x1ba7   :  { %v2123_v52 = vsel %vm2115_vm8, %v2099_v46, %v2119_v43 }
0x1ba8   :  { %v2131_v53 = vrot.slane %v2123_v52, %v2126_v37  ;;  %v2132_v54 = vmul.f32 %v4137_v16, %v2127_v48  ;;  %v2201_v37 = vrot.slane %v2123_v52, 7 }
0x1baa   :  { %v2133_v55 = vmul.f32 %v4137_v16, %v2131_v53  ;;  %v2134_v40 = vsel %vm1883_vm11, %v2132_v54, 0.0 }
0x1bab   :  { %2135 = vadd.xlane.f32.xlu0 %v2134_v40 }
0x1bac   :  { %v2137_v33 = vsel %vm1883_vm11, %v2133_v55, 0.0  ;;  %v3540_v55 = vmov 6  }
0x1bad   :  { %2138 = vadd.xlane.f32.xlu1 %v2137_v33 }
0x1bbe   :  { %2190 = vperm.xlu1 %3357, %v4165_v44  }
0x1bc1   :  { %2183 = vperm.xlu0 %3356, %v4155_v32  }
0x1bc2   :  { %3358 = vset.pattern.permute.xlu1 %v3539_v60 }
0x1bc5   :  { %3359 = vset.pattern.permute.xlu0 %v3539_v60 }
0x1c38   :  { %v2136_v56 = vpop.xlane.xlu0 %2135 }
0x1c39   :  { %v4268_v61 = vadd.f32 %v2136_v56, %v4171_v41 }
0x1c3a   :  { %v2139_v62 = vpop.xlane.xlu1 %2138 }
0x1c3b   :  { %v4271_v63 = vadd.f32 %v2139_v62, %v4171_v41  ;;  %v2142_v0 = vsel %vm1883_vm11, %v4268_v61, -inf }
0x1c3c   :  { %v2143_v59 = vrot.slane %v2142_v0, 4 }
0x1c3d   :  { %v2149_v3 = vsel %vm1883_vm11, %v4271_v63, -inf }
0x1c3e   :  { %v2150_v5 = vrot.slane %v2149_v3, 4  ;;  %v2144_v17 = vmax.f32 %v2142_v0, %v2143_v59  ;;  %v2191_v29 = vpop.permute.xlu1 %2190 }
0x1c3f   :  { %v2195_v15 = vrot.slane %v2191_v29, %v3659_v26 }
0x1c40   :  { %v2151_v27 = vmax.f32 %v2149_v3, %v2150_v5  ;;  %v2145_v21 = vrot.slane %v2144_v17, 2  ;;  %v2184_v13 = vpop.permute.xlu0 %2183 }
0x1c41   :  { %v2188_v30 = vrot.slane %v2184_v13, %v3659_v26  ;;  %vm2197_vm15 = vcmp.eq.s32.totalorder %v2195_v15, 1  ;;  %v2290_v15 = vsub.s32 5, %v3647_v20 }
0x1c42   :  { %v2152_v22 = vrot.slane %v2151_v27, 2  ;;  %v2146_v9 = vmax.f32 %v2144_v17, %v2145_v21 }
0x1c43   :  { %vm2196_vm10 = vcmp.eq.s32.totalorder %v2188_v30, 1 }
0x1c44   :  { %v2153_v10 = vmax.f32 %v2151_v27, %v2152_v22  ;;  %v2147_v11 = vrot.slane %v2146_v9, 1 }
0x1c46   :  { %v2154_v14 = vrot.slane %v2153_v10, 1  ;;  %v4279_v58 = vmax.f32 %v2146_v9, %v2147_v11 }
0x1c48   :  { %v4281_v18 = vmax.f32 %v2153_v10, %v2154_v14  ;;  %vm2156_vm12 = vcmp.eq.f32.partialorder %v4268_v61, %v4279_v58  ;;  %v2180_v31 = vadd.f32 %v4279_v58, %v4133_v28 }
0x1c4a   :  { %vm2157_vm13 = vcmp.eq.f32.partialorder %v4271_v63, %v4281_v18  ;;  %v2181_v36 = vadd.f32 %v4281_v18, %v4139_v7  ;;  %v2204_v38 = vsel %vm2196_vm10, %v2180_v31, %v2200_v25 }
0x1c4b   :  { %v2209_v39 = vrot.slane %v2204_v38, %v2208_v24 }
0x1c4c   :  { %v2205_v43 = vsel %vm2197_vm15, %v2181_v36, %v2201_v37 }
0x1c4d   :  { %v2213_v46 = vrot.slane %v2205_v43, %v2208_v24  ;;  %v2214_v47 = vmul.f32 %v4137_v16, %v2209_v39  ;;  %v2282_v24 = vrot.slane %v2204_v38, 7  ;;  %v2283_v36 = vrot.slane %v2205_v43, 7 }
0x1c4e   :  { %v3541_v43 = vmov 7  }
0x1c4f   :  { %v2216_v48 = vsel %vm1883_vm11, %v2214_v47, 0.0  ;;  %v2215_v53 = vmul.f32 %v4137_v16, %v2213_v46 }
0x1c50   :  { %2217 = vadd.xlane.f32.xlu1 %v2216_v48 }
0x1c51   :  { %v2219_v54 = vsel %vm1883_vm11, %v2215_v53, 0.0 }
0x1c52   :  { %2220 = vadd.xlane.f32.xlu0 %v2219_v54 }
0x1c61   :  { %2265 = vperm.xlu1 %3358, %v4155_v32  }
0x1c65   :  { %3360 = vset.pattern.permute.xlu1 %v3540_v55 }
0x1c68   :  { %2272 = vperm.xlu0 %3359, %v4165_v44  }
0x1c6c   :  { %3361 = vset.pattern.permute.xlu0 %v3540_v55 }
0x1c6d   :  { %2354 = vperm.xlu0 %3361, %v4165_v44  }
0x1c71   :  { %3362 = vset.pattern.permute.xlu0 %v3541_v43 }
0x1cdd   :  { %v2218_v52 = vpop.xlane.xlu1 %2217 }
0x1cde   :  { %v4300_v40 = vadd.f32 %v2218_v52, %v4171_v41 }
0x1cdf   :  { %v2221_v33 = vpop.xlane.xlu0 %2220 }
0x1ce0   :  { %v2224_v60 = vsel %vm1883_vm11, %v4300_v40, -inf  ;;  %v4305_v56 = vadd.f32 %v2221_v33, %v4171_v41 }
0x1ce1   :  { %v2225_v62 = vrot.slane %v2224_v60, 4  ;;  %v2266_v27 = vpop.permute.xlu1 %2265 }
0x1ce2   :  { %v2231_v0 = vsel %vm1883_vm11, %v4305_v56, -inf  ;;  %v2270_v9 = vrot.slane %v2266_v27, %v3659_v26 }
0x1ce3   :  { %v2226_v59 = vmax.f32 %v2224_v60, %v2225_v62  ;;  %v2232_v3 = vrot.slane %v2231_v0, 4 }
0x1ce4   :  { %vm2278_vm0 = vcmp.eq.s32.totalorder %v2270_v9, 1 }
0x1ce5   :  { %v2227_v5 = vrot.slane %v2226_v59, 2  ;;  %v2233_v17 = vmax.f32 %v2231_v0, %v2232_v3 }
0x1ce7   :  { %v2228_v21 = vmax.f32 %v2226_v59, %v2227_v5  ;;  %v2234_v13 = vrot.slane %v2233_v17, 2  ;;  %v2273_v22 = vpop.permute.xlu0 %2272 }
0x1ce8   :  { %v2277_v30 = vrot.slane %v2273_v22, %v3659_v26 }
0x1ce9   :  { %v2229_v29 = vrot.slane %v2228_v21, 1  ;;  %v2235_v10 = vmax.f32 %v2233_v17, %v2234_v13 }
0x1cea   :  { %vm2279_vm5 = vcmp.eq.s32.totalorder %v2277_v30, 1 }
0x1ceb   :  { %v4311_v11 = vmax.f32 %v2228_v21, %v2229_v29  ;;  %v2236_v14 = vrot.slane %v2235_v10, 1 }
0x1cec   :  { %v2355_v30 = vpop.permute.xlu0 %2354 }
0x1ced   :  { %vm2238_vm2 = vcmp.eq.f32.partialorder %v4300_v40, %v4311_v11  ;;  %v2262_v25 = vadd.f32 %v4311_v11, %v4133_v28  ;;  %v4318_v31 = vmax.f32 %v2235_v10, %v2236_v14 }
0x1cef   :  { %vm2239_vm6 = vcmp.eq.f32.partialorder %v4305_v56, %v4318_v31  ;;  %v2263_v37 = vadd.f32 %v4318_v31, %v4139_v7  ;;  %v2286_v39 = vsel %vm2278_vm0, %v2262_v25, %v2282_v24  ;;  %v2372_v24 = vsub.s32 6, %v3647_v20 }
0x1cf0   :  { %v2291_v46 = vrot.slane %v2286_v39, %v2290_v15  ;;  %v2359_v25 = vrot.slane %v2355_v30, %v3659_v26 }
0x1cf1   :  { %v2287_v47 = vsel %vm2279_vm5, %v2263_v37, %v2283_v36  ;;  %v2364_v36 = vrot.slane %v2286_v39, 7 }
0x1cf2   :  { %v2295_v38 = vrot.slane %v2287_v47, %v2290_v15  ;;  %v2296_v48 = vmul.f32 %v4137_v16, %v2291_v46  ;;  %vm2361_vm15 = vcmp.eq.s32.totalorder %v2359_v25, 1 }
0x1cf4   :  { %v2298_v53 = vsel %vm1883_vm11, %v2296_v48, 0.0  ;;  %v2297_v54 = vmul.f32 %v4137_v16, %v2295_v38 }
0x1cf5   :  { %2299 = vadd.xlane.f32.xlu1 %v2298_v53 }
0x1cf6   :  { %v2301_v55 = vsel %vm1883_vm11, %v2297_v54, 0.0  ;;  %v2365_v54 = vrot.slane %v2287_v47, 7 }
0x1cf9   :  { %2302 = vadd.xlane.f32.xlu1 %v2301_v55 }
0x1d0a   :  { %2347 = vperm.xlu1 %3360, %v4155_v32  }
0x1d0e   :  { %3363 = vset.pattern.permute.xlu1 %v3541_v43 }
0x1d82   :  { %v2300_v52 = vpop.xlane.xlu1 %2299 }
0x1d83   :  { %v4330_v33 = vadd.f32 %v2300_v52, %v4171_v41 }
0x1d85   :  { %v2306_v60 = vsel %vm1883_vm11, %v4330_v33, -inf }
0x1d86   :  { %v2307_v62 = vrot.slane %v2306_v60, 4  ;;  %v2303_v0 = vpop.xlane.xlu1 %2302 }
0x1d87   :  { %v4335_v59 = vadd.f32 %v2303_v0, %v4171_v41 }
0x1d88   :  { %v2308_v3 = vmax.f32 %v2306_v60, %v2307_v62 }
0x1d89   :  { %v2313_v5 = vsel %vm1883_vm11, %v4335_v59, -inf }
0x1d8a   :  { %v2309_v17 = vrot.slane %v2308_v3, 2  ;;  %v2314_v27 = vrot.slane %v2313_v5, 4  ;;  %v2348_v21 = vpop.permute.xlu1 %2347 }
0x1d8b   :  { %v2352_v9 = vrot.slane %v2348_v21, %v3659_v26 }
0x1d8c   :  { %v2310_v13 = vmax.f32 %v2308_v3, %v2309_v17  ;;  %v2315_v22 = vmax.f32 %v2313_v5, %v2314_v27 }
0x1d8d   :  { %vm2360_vm8 = vcmp.eq.s32.totalorder %v2352_v9, 1 }
0x1d8e   :  { %v2311_v29 = vrot.slane %v2310_v13, 1  ;;  %v2316_v10 = vrot.slane %v2315_v22, 2 }
0x1d90   :  { %v4340_v14 = vmax.f32 %v2310_v13, %v2311_v29  ;;  %v2317_v15 = vmax.f32 %v2315_v22, %v2316_v10 }
0x1d92   :  { %vm2320_vm10 = vcmp.eq.f32.partialorder %v4330_v33, %v4340_v14  ;;  %v2344_v37 = vadd.f32 %v4340_v14, %v4133_v28  ;;  %v2318_v46 = vrot.slane %v2317_v15, 1 }
0x1d94   :  { %v4348_v38 = vmax.f32 %v2317_v15, %v2318_v46  ;;  %v2368_v48 = vsel %vm2360_vm8, %v2344_v37, %v2364_v36 }
0x1d95   :  { %v2373_v53 = vrot.slane %v2368_v48, %v2372_v24  ;;  %v2446_v46 = vrot.slane %v2368_v48, 7 }
0x1d96   :  { %vm2321_vm0 = vcmp.eq.f32.partialorder %v4335_v59, %v4348_v38  ;;  %v2345_v55 = vadd.f32 %v4348_v38, %v4139_v7 }
0x1d97   :  { %v2378_v39 = vmul.f32 %v4137_v16, %v2373_v53 }
0x1d98   :  { %v2369_v43 = vsel %vm2361_vm15, %v2345_v55, %v2365_v54  ;;  %vm2457_vm15 = vcmask 39943  }
0x1d99   :  { %v2377_v52 = vrot.slane %v2369_v43, %v2372_v24  ;;  %v2380_v60 = vsel %vm1883_vm11, %v2378_v39, 0.0  ;;  %v1864_v24 = vld [vmem:[%s4703_s11 + $0x1] sm:$0x1]  ;;  %s3542_s11 = smov [#allocation3]  }
0x1d9a   :  { %2381 = vadd.xlane.f32.xlu0 %v2380_v60  ;;  %v2453_v37 = vrot.slane %v1864_v24, 1  ;;  %v2447_v60 = vrot.slane %v2369_v43, 7  ;;  %s2890_s13 = sshll.u32 %s3542_s11, 4  ;;  %s2891_s13 = int_to_ptr.vmem [resolvable:$true] %s2890_s13 }
0x1d9b   :  { %v2379_v62 = vmul.f32 %v4137_v16, %v2377_v52  ;;  %s3500_s14 = scalar_lea.vmem %s2891_s13, 32  ;;  %p3505_p1 = scmp.lt.s32.totalorder %s2891_s13, %s2891_s13 }
0x1d9c   :  { %p3501_p0 = scmp.ne.s32.totalorder %s2891_s13, %s3500_s14  ;;  %p3506_p2 = scmp.lt.s32.totalorder %s3500_s14, %s3500_s14 }
0x1d9d   :  { %v2383_v0 = vsel %vm1883_vm11, %v2379_v62, 0.0 }
0x1d9e   :  { %2384 = vadd.xlane.f32.xlu1 %v2383_v0  ;;  %p3507_p3 = por %p3506_p2, %p3505_p1 }
0x1da0   :  { %p3508_p4 = pnand %p3507_p3, %p3501_p0 }
0x1daf   :  { %2436 = vperm.xlu1 %3363, %v4165_v44  }
0x1db0   :  { %2429 = vperm.xlu0 %3362, %v4155_v32  }
0x1db3   :  { %3364 = vset.pattern.permute.xlu1 %v3524_v1 }
0x1db4   :  { %3365 = vset.pattern.permute.xlu0 %v3524_v1 }
0x1e27   :  { %v2382_v47 = vpop.xlane.xlu0 %2381 }
0x1e28   :  { %v4363_v3 = vadd.f32 %v2382_v47, %v4171_v41 }
0x1e2a   :  { %v2388_v5 = vsel %vm1883_vm11, %v4363_v3, -inf }
0x1e2b   :  { %v2389_v17 = vrot.slane %v2388_v5, 4  ;;  %v2385_v16 = vpop.xlane.xlu1 %2384 }
0x1e2c   :  { %v4368_v27 = vadd.f32 %v2385_v16, %v4171_v41 }
0x1e2d   :  { %v2390_v21 = vmax.f32 %v2388_v5, %v2389_v17 }
0x1e2e   :  { %v2395_v32 = vsel %vm1883_vm11, %v4368_v27, -inf }
0x1e2f   :  { %v2391_v44 = vrot.slane %v2390_v21, 2  ;;  %v2396_v13 = vrot.slane %v2395_v32, 4  ;;  %v2430_v22 = vpop.permute.xlu0 %2429  ;;  %v2437_v15 = vpop.permute.xlu1 %2436 }
0x1e30   :  { %v2434_v29 = vrot.slane %v2430_v22, %v3659_v26  ;;  %v2441_v36 = vrot.slane %v2437_v15, %v3659_v26 }
0x1e31   :  { %v2392_v1 = vmax.f32 %v2390_v21, %v2391_v44  ;;  %v2397_v9 = vmax.f32 %v2395_v32, %v2396_v13 }
0x1e32   :  { %vm2442_vm5 = vcmp.eq.s32.totalorder %v2434_v29, 1  ;;  %vm2443_vm1 = vcmp.eq.s32.totalorder %v2441_v36, 1 }
0x1e33   :  { %v2393_v10 = vrot.slane %v2392_v1, 1  ;;  %v2398_v30 = vrot.slane %v2397_v9, 2 }
0x1e35   :  { %v2394_v41 = vmax.f32 %v2392_v1, %v2393_v10  ;;  %v2399_v25 = vmax.f32 %v2397_v9, %v2398_v30 }
0x1e37   :  { %vm2402_vm8 = vcmp.eq.f32.partialorder %v4363_v3, %v2394_v41  ;;  %v2426_v53 = vadd.f32 %v2394_v41, %v4133_v28  ;;  %v2400_v54 = vrot.slane %v2399_v25, 1 }
0x1e39   :  { %v2401_v55 = vmax.f32 %v2399_v25, %v2400_v54  ;;  %v2450_v39 = vsel %vm2442_vm5, %v2426_v53, %v2446_v46  ;;  %v2404_v25 = vsel %vm2402_vm8, %v3647_v20, 5 }
0x1e3a   :  { %v2455_v52 = vadd.f32 %v2453_v37, %v2450_v39  ;;  %v2406_v36 = vsel %vm1883_vm11, %v2404_v25, 2147483647 }
0x1e3b   :  { %vm2403_vm14 = vcmp.eq.f32.partialorder %v4368_v27, %v2401_v55  ;;  %v2427_v62 = vadd.f32 %v2401_v55, %v4139_v7  ;;  %v2407_v46 = vrot.slane %v2406_v36, 4 }
0x1e3c   :  { %v2458_v0 = vsel %vm2457_vm15, %v2455_v52, -inf }
0x1e3d   :  { %v2451_v26 = vsel %vm2443_vm1, %v2427_v62, %v2447_v60  ;;  %2459 = vmax.xlane.f32.xlu1 %v2458_v0 }
0x1e3e   :  { %v2456_v48 = vadd.f32 %v2453_v37, %v2451_v26  ;;  %v2405_v37 = vsel %vm2403_vm14, %v3647_v20, 5 }
0x1e3f   :  { %v2416_v53 = vsel %vm1883_vm11, %v2405_v37, 2147483647 }
0x1e40   :  { %v2461_v47 = vsel %vm2457_vm15, %v2456_v48, -inf  ;;  %v2417_v54 = vrot.slane %v2416_v53, 4 }
0x1e41   :  { %2462 = vmax.xlane.f32.xlu0 %v2461_v47 }
0x1eca   :  { %v2460_v28 = vpop.xlane.xlu1 %2459 }
0x1ecb   :  { %vm2464_vm4 = vcmp.eq.f32.partialorder %v2455_v52, %v2460_v28 }
0x1ecc   :  { %v2466_v5 = vsel %vm2464_vm4, %v3635_v12, 5 }
0x1ecd   :  { %v2468_v17 = vsel %vm2457_vm15, %v2466_v5, 2147483647 }
0x1ece   :  { %v2470_v16 = vshra.s32 %v2468_v17, 16  ;;  %v2463_v43 = vpop.xlane.xlu0 %2462  ;;  %v2469_v22 = vand.u32 65535, %v2468_v17 }
0x1ecf   :  { %vm2465_vm5 = vcmp.eq.f32.partialorder %v2456_v48, %v2463_v43 }
0x1ed0   :  { %v2467_v21 = vsel %vm2465_vm5, %v3635_v12, 5  ;;  %v2472_v7 = vcvt.s32.f32 %v2470_v16  ;;  %v2471_v29 = vcvt.s32.f32 %v2469_v22  ;;  %vm2408_vm5 = vcmp.lt.s32.totalorder %v2406_v36, %v2407_v46 }
0x1ed1   :  { %v2483_v32 = vsel %vm2457_vm15, %v2467_v21, 2147483647  ;;  %v2409_v39 = vsel %vm2408_vm5, %v2406_v36, %v2407_v46 }
0x1ed2   :  { %v2485_v44 = vshra.s32 %v2483_v32, 16  ;;  %2473 = vmin.xlane.f32.xlu1 %v2472_v7  ;;  %v2484_v1 = vand.u32 65535, %v2483_v32  ;;  %v2410_v52 = vrot.slane %v2409_v39, 2 }
0x1ed4   :  { %v2487_v13 = vcvt.s32.f32 %v2485_v44  ;;  %v2486_v15 = vcvt.s32.f32 %v2484_v1  ;;  %v2498_v1 = vcvt.s32.f32 %v4151_v2 }
0x1ed6   :  { %2488 = vmin.xlane.f32.xlu1 %v2487_v13 }
0x1f5f   :  { %v2474_v9 = vpop.xlane.xlu1 %2473 }
0x1f60   :  { %vm2475_vm1 = vcmp.eq.f32.partialorder %v2472_v7, %v2474_v9  ;;  %v2480_v3 = vcvt.f32.s32 %v2474_v9 }
0x1f61   :  { %v2476_v10 = vsel %vm2475_vm1, %v2471_v29, inf  ;;  %vm2418_vm1 = vcmp.lt.s32.totalorder %v2416_v53, %v2417_v54 }
0x1f62   :  { %2477 = vmin.xlane.f32.xlu1 %v2476_v10  ;;  %v2419_v60 = vsel %vm2418_vm1, %v2416_v53, %v2417_v54  ;;  %v2481_v47 = vshll.u32 %v2480_v3, 16  ;;  %vm4705_vm1 = vcmask 57344  }
0x1f63   :  { %v2489_v30 = vpop.xlane.xlu1 %2488  ;;  %v2420_v62 = vrot.slane %v2419_v60, 2 }
0x1f64   :  { %vm2490_vm4 = vcmp.eq.f32.partialorder %v2487_v13, %v2489_v30  ;;  %v2495_v27 = vcvt.f32.s32 %v2489_v30 }
0x1f65   :  { %v2491_v24 = vsel %vm2490_vm4, %v2486_v15, inf  ;;  %vm2411_vm4 = vcmp.lt.s32.totalorder %v2409_v39, %v2410_v52  ;;  %vm2421_vm3 = vcmp.lt.s32.totalorder %v2419_v60, %v2420_v62  ;;  %v2501_v15 = vsel %vm4705_vm1, %v2498_v1, 0.0 }
0x1f66   :  { %2492 = vmin.xlane.f32.xlu0 %v2491_v24  ;;  %v2412_v0 = vsel %vm2411_vm4, %v2409_v39, %v2410_v52  ;;  %v2422_v26 = vsel %vm2421_vm3, %v2419_v60, %v2420_v62  ;;  %v2496_v16 = vshll.u32 %v2495_v27, 16  ;;  %v2499_v24 = vcvt.s32.f32 %v4160_v34 }
0x1f67   :  { %v2413_v41 = vrot.slane %v2412_v0, 1  ;;  %v2423_v28 = vrot.slane %v2422_v26, 1 }
0x1f68   :  { %v2504_v36 = vsel %vm4705_vm1, %v2499_v24, 0.0 }
0x1f69   :  { %vm2414_vm14 = vcmp.lt.s32.totalorder %v2412_v0, %v2413_v41  ;;  %vm2424_vm5 = vcmp.lt.s32.totalorder %v2422_v26, %v2423_v28 }
0x1f6a   :  { %v2415_v43 = vsel %vm2414_vm14, %v2412_v0, %v2413_v41  ;;  %v2425_v22 = vsel %vm2424_vm5, %v2422_v26, %v2423_v28  ;;  %vm2557_vm5 = vcmp.eq.s32.totalorder %v3635_v12, 6 }
0x1fef   :  { %v2478_v48 = vpop.xlane.xlu1 %2477 }
0x1ff0   :  { %v2479_v55 = vcvt.f32.s32 %v2478_v48 }
0x1ff2   :  { %v4395_v5 = vadd.s32 %v2481_v47, %v2479_v55 }
0x1ff3   :  { %v2493_v17 = vpop.xlane.xlu0 %2492 }
0x1ff4   :  { %vm2517_vm8 = vcmp.eq.s32.totalorder %v3635_v12, %v4395_v5  ;;  %v2494_v21 = vcvt.f32.s32 %v2493_v17 }
0x1ff5   :  { %v2519_v7 = vsel %vm2517_vm8, %v2415_v43, 5 }
0x1ff6   :  { %v4399_v32 = vadd.s32 %v2496_v16, %v2494_v21  ;;  %v2521_v44 = vsel %vm2457_vm15, %v2519_v7, 2147483647  ;;  %v2513_v21 = vrot.slane %v4395_v5, 7 }
0x1ff7   :  { %v2523_v13 = vshra.s32 %v2521_v44, 16  ;;  %v2522_v37 = vand.u32 65535, %v2521_v44 }
0x1ff8   :  { %vm2518_vm3 = vcmp.eq.s32.totalorder %v3635_v12, %v4399_v32  ;;  %v2514_v5 = vrot.slane %v4399_v32, 7 }
0x1ff9   :  { %v2520_v9 = vsel %vm2518_vm3, %v2425_v22, 5  ;;  %v2525_v29 = vcvt.s32.f32 %v2523_v13  ;;  %v2524_v2 = vcvt.s32.f32 %v2522_v37  ;;  %v2323_v37 = vsel %vm2321_vm0, %v3647_v20, 5 }
0x1ffa   :  { %v2536_v10 = vsel %vm2457_vm15, %v2520_v9, 2147483647 }
0x1ffb   :  { %2526 = vmin.xlane.f32.xlu1 %v2525_v29  ;;  %v2538_v30 = vshra.s32 %v2536_v10, 16  ;;  %v2537_v53 = vand.u32 65535, %v2536_v10 }
0x1ffd   :  { %v2540_v25 = vcvt.s32.f32 %v2538_v30  ;;  %v2539_v52 = vcvt.s32.f32 %v2537_v53 }
0x1fff   :  { %2502 = vadd.xlane.f32.xlu1 %v2501_v15  ;;  %2541 = vmin.xlane.f32.xlu0 %v2540_v25 }
0x2003   :  { %2505 = vadd.xlane.f32.xlu0 %v2504_v36  ;;  %v2322_v36 = vsel %vm2320_vm10, %v3647_v20, 5 }
0x2004   :  { %v2324_v32 = vsel %vm1883_vm11, %v2322_v36, 2147483647 }
0x2088   :  { %v2527_v46 = vpop.xlane.xlu1 %2526 }
0x2089   :  { %vm2528_vm4 = vcmp.eq.f32.partialorder %v2525_v29, %v2527_v46  ;;  %v2533_v26 = vcvt.f32.s32 %v2527_v46  ;;  %v2325_v46 = vrot.slane %v2324_v32, 4 }
0x208a   :  { %v2529_v54 = vsel %vm2528_vm4, %v2524_v2, inf  ;;  %v2334_v2 = vsel %vm1883_vm11, %v2323_v37, 2147483647 }
0x208b   :  { %2530 = vmin.xlane.f32.xlu1 %v2529_v54  ;;  %v2534_v55 = vshll.u32 %v2533_v26, 16  ;;  %v2335_v53 = vrot.slane %v2334_v2, 4 }
0x208c   :  { %v2542_v39 = vpop.xlane.xlu0 %2541  ;;  %v2503_v62 = vpop.xlane.xlu1 %2502 }
0x208d   :  { %vm2543_vm15 = vcmp.eq.f32.partialorder %v2540_v25, %v2542_v39  ;;  %v3008_v34 = vadd.f32 -1.0, %v2503_v62  ;;  %v2548_v28 = vcvt.f32.s32 %v2542_v39 }
0x208e   :  { %v2544_v60 = vsel %vm2543_vm15, %v2539_v52, inf }
0x208f   :  { %2545 = vmin.xlane.f32.xlu0 %v2544_v60  ;;  %v3266_v41 = vtrunc.f32 %v3008_v34  ;;  %v2549_v44 = vshll.u32 %v2548_v28, 16 }
0x2090   :  { %v2506_v0 = vpop.xlane.xlu0 %2505 }
0x2091   :  { %v3009_v3 = vadd.f32 -1.0, %v2506_v0  ;;  %v4409_v47 = vcvt.f32.s32 %v3266_v41 }
0x2093   :  { %v3268_v48 = vtrunc.f32 %v3009_v3  ;;  %vm2511_vm14 = vcmp.eq.s32.totalorder %v3635_v12, %v4409_v47  ;;  %vm2551_vm8 = vcmp.ge.s32.totalorder %v4409_v47, 7 }
0x2094   :  { %vm2562_vm3 = vmand %vm2551_vm8, %vm2557_vm5  ;;  %v2515_v1 = vsel %vm2511_vm14, %v2513_v21, 0  ;;  %vm2326_vm14 = vcmp.lt.s32.totalorder %v2324_v32, %v2325_v46 }
0x2095   :  { %v4411_v16 = vcvt.f32.s32 %v3268_v48  ;;  %v2327_v54 = vsel %vm2326_vm14, %v2324_v32, %v2325_v46 }
0x2096   :  { %v2328_v39 = vrot.slane %v2327_v54, 2 }
0x2097   :  { %vm2512_vm4 = vcmp.eq.s32.totalorder %v3635_v12, %v4411_v16  ;;  %vm2552_vm15 = vcmp.ge.s32.totalorder %v4411_v16, 7 }
0x2098   :  { %vm2563_vm1 = vmand %vm2552_vm15, %vm2557_vm5  ;;  %v2516_v15 = vsel %vm2512_vm4, %v2514_v5, 0 }
0x2118   :  { %v2531_v27 = vpop.xlane.xlu1 %2530 }
0x2119   :  { %v2532_v17 = vcvt.f32.s32 %v2531_v27 }
0x211b   :  { %v2535_v43 = vadd.s32 %v2534_v55, %v2532_v17 }
0x211c   :  { %v2546_v7 = vpop.xlane.xlu0 %2545 }
0x211d   :  { %v2553_v13 = vrot.slane %v2535_v43, 7  ;;  %v2547_v22 = vcvt.f32.s32 %v2546_v7 }
0x211f   :  { %v2550_v9 = vadd.s32 %v2549_v44, %v2547_v22  ;;  %v4422_v29 = vsel %vm2551_vm8, %v2553_v13, %v2513_v21  ;;  %v4424_v10 = vsel %vm2562_vm3, %v2553_v13, %v2515_v1  ;;  %vm2329_vm8 = vcmp.lt.s32.totalorder %v2327_v54, %v2328_v39 }
0x2120   :  { %2567 = vperm.xlu1 %3364, %v4422_v29   ;;  %v2330_v33 = vsel %vm2329_vm8, %v2327_v54, %v2328_v39  ;;  %vm2576_vm3 = vcmask 32768   ;;  %vm2607_vm8 = vcmp.ge.s32.totalorder %v4409_v47, 6 }
0x2121   :  { %v2554_v30 = vrot.slane %v2550_v9, 7  ;;  %v2331_v14 = vrot.slane %v2330_v33, 1 }
0x2123   :  { %v4431_v24 = vsel %vm2552_vm15, %v2554_v30, %v2514_v5  ;;  %v4433_v25 = vsel %vm2563_vm1, %v2554_v30, %v2516_v15  ;;  %vm2336_vm1 = vcmp.lt.s32.totalorder %v2334_v2, %v2335_v53  ;;  %vm2332_vm5 = vcmp.lt.s32.totalorder %v2330_v33, %v2331_v14 }
0x2124   :  { %2570 = vperm.xlu0 %3365, %v4431_v24   ;;  %v2337_v52 = vsel %vm2336_vm1, %v2334_v2, %v2335_v53  ;;  %v2333_v38 = vsel %vm2332_vm5, %v2330_v33, %v2331_v14  ;;  %v2159_v53 = vsel %vm2157_vm13, %v3647_v20, 5 }
0x2125   :  { %v2338_v60 = vrot.slane %v2337_v52, 2  ;;  %v2170_v14 = vsel %vm1883_vm11, %v2159_v53, 2147483647 }
0x2127   :  { %vm2339_vm10 = vcmp.lt.s32.totalorder %v2337_v52, %v2338_v60 }
0x2128   :  { %v2340_v62 = vsel %vm2339_vm10, %v2337_v52, %v2338_v60  ;;  %vm2611_vm10 = vcmp.eq.s32.totalorder %v3635_v12, 5 }
0x2129   :  { %v2341_v34 = vrot.slane %v2340_v62, 1  ;;  %vm4454_vm5 = vmand %vm2607_vm8, %vm2611_vm10 }
0x212b   :  { %vm2342_vm4 = vcmp.lt.s32.totalorder %v2340_v62, %v2341_v34 }
0x212c   :  { %v2343_v48 = vsel %vm2342_vm4, %v2340_v62, %v2341_v34  ;;  %v2240_v34 = vsel %vm2238_vm2, %v3647_v20, 5 }
0x219f   :  { %v2568_v59 = vpop.permute.xlu1 %2567 }
0x21a0   :  { %vm2572_vm0 = vcmp.eq.s32.totalorder %v3635_v12, %v2568_v59  ;;  %v2242_v59 = vsel %vm1883_vm11, %v2240_v34, 2147483647 }
0x21a1   :  { %v2574_v0 = vsel %vm2572_vm0, %v2333_v38, 5  ;;  %vm2608_vm0 = vcmp.ge.s32.totalorder %v4411_v16, 6  ;;  %v2243_v38 = vrot.slane %v2242_v59, 4 }
0x21a2   :  { %v2577_v3 = vsel %vm2576_vm3, %v2574_v0, 2147483647  ;;  %vm4470_vm4 = vmand %vm2608_vm0, %vm2611_vm10 }
0x21a3   :  { %v2579_v41 = vshra.s32 %v2577_v3, 16  ;;  %v2571_v26 = vpop.permute.xlu0 %2570  ;;  %v2578_v21 = vand.u32 65535, %v2577_v3 }
0x21a4   :  { %vm2573_vm15 = vcmp.eq.s32.totalorder %v3635_v12, %v2571_v26 }
0x21a5   :  { %v2575_v27 = vsel %vm2573_vm15, %v2343_v48, 5  ;;  %v2581_v55 = vcvt.s32.f32 %v2579_v41  ;;  %v2580_v13 = vcvt.s32.f32 %v2578_v21  ;;  %vm2244_vm15 = vcmp.lt.s32.totalorder %v2242_v59, %v2243_v38 }
0x21a6   :  { %v2592_v28 = vsel %vm2576_vm3, %v2575_v27, 2147483647  ;;  %v2245_v41 = vsel %vm2244_vm15, %v2242_v59, %v2243_v38 }
0x21a7   :  { %v2594_v17 = vshra.s32 %v2592_v28, 16  ;;  %2582 = vmin.xlane.f32.xlu1 %v2581_v55  ;;  %v2593_v7 = vand.u32 65535, %v2592_v28  ;;  %v2246_v26 = vrot.slane %v2245_v41, 2 }
0x21a9   :  { %v2596_v43 = vcvt.s32.f32 %v2594_v17  ;;  %v2595_v9 = vcvt.s32.f32 %v2593_v7 }
0x21ab   :  { %2597 = vmin.xlane.f32.xlu0 %v2596_v43 }
0x2234   :  { %v2583_v44 = vpop.xlane.xlu1 %2582 }
0x2235   :  { %vm2584_vm14 = vcmp.eq.f32.partialorder %v2581_v55, %v2583_v44  ;;  %v2589_v30 = vcvt.f32.s32 %v2583_v44 }
0x2236   :  { %v2585_v22 = vsel %vm2584_vm14, %v2580_v13, inf }
0x2237   :  { %2586 = vmin.xlane.f32.xlu1 %v2585_v22  ;;  %v2590_v36 = vshll.u32 %v2589_v30, 16 }
0x2238   :  { %v2598_v1 = vpop.xlane.xlu0 %2597 }
0x2239   :  { %vm2599_vm1 = vcmp.eq.f32.partialorder %v2596_v43, %v2598_v1  ;;  %v2604_v32 = vcvt.f32.s32 %v2598_v1 }
0x223a   :  { %v2600_v5 = vsel %vm2599_vm1, %v2595_v9, inf  ;;  %vm2247_vm1 = vcmp.lt.s32.totalorder %v2245_v41, %v2246_v26 }
0x223b   :  { %2601 = vmin.xlane.f32.xlu1 %v2600_v5  ;;  %v2605_v54 = vshll.u32 %v2604_v32, 16  ;;  %v2248_v40 = vsel %vm2247_vm1, %v2245_v41, %v2246_v26  ;;  %vm2660_vm1 = vcmp.ge.s32.totalorder %v4409_v47, 5 }
0x223c   :  { %v2249_v11 = vrot.slane %v2248_v40, 1 }
0x22c4   :  { %v2587_v15 = vpop.xlane.xlu1 %2586 }
0x22c5   :  { %v2588_v37 = vcvt.f32.s32 %v2587_v15 }
0x22c7   :  { %v4452_v46 = vadd.s32 %v2590_v36, %v2588_v37 }
0x22c8   :  { %v2602_v2 = vpop.xlane.xlu1 %2601 }
0x22c9   :  { %v2603_v39 = vcvt.f32.s32 %v2602_v2  ;;  %v4461_v52 = vsel %vm2607_vm8, %v4452_v46, %v4422_v29  ;;  %v2618_v60 = vsel %vm4454_vm5, %v4452_v46, %v4424_v10  ;;  %vm2250_vm8 = vcmp.lt.s32.totalorder %v2248_v40, %v2249_v11 }
0x22ca   :  { %2621 = vperm.xlu1 %3364, %v4461_v52   ;;  %v2251_v56 = vsel %vm2250_vm8, %v2248_v40, %v2249_v11  ;;  %v2158_v10 = vsel %vm2156_vm12, %v3647_v20, 5 }
0x22cb   :  { %v4468_v33 = vadd.s32 %v2605_v54, %v2603_v39  ;;  %v2160_v46 = vsel %vm1883_vm11, %v2158_v10, 2147483647 }
0x22cd   :  { %v4476_v62 = vsel %vm2608_vm0, %v4468_v33, %v4431_v24  ;;  %v2619_v29 = vsel %vm4470_vm4, %v4468_v33, %v4433_v25  ;;  %v2241_v24 = vsel %vm2239_vm6, %v3647_v20, 5  ;;  %v2171_v25 = vrot.slane %v2170_v14, 4 }
0x22ce   :  { %2624 = vperm.xlu0 %3365, %v4476_v62   ;;  %v2252_v0 = vsel %vm1883_vm11, %v2241_v24, 2147483647 }
0x22cf   :  { %v2253_v3 = vrot.slane %v2252_v0, 4  ;;  %vm2172_vm4 = vcmp.lt.s32.totalorder %v2170_v14, %v2171_v25 }
0x22d1   :  { %vm2254_vm14 = vcmp.lt.s32.totalorder %v2252_v0, %v2253_v3 }
0x22d2   :  { %v2255_v48 = vsel %vm2254_vm14, %v2252_v0, %v2253_v3 }
0x22d3   :  { %v2256_v27 = vrot.slane %v2255_v48, 2 }
0x22d5   :  { %vm2257_vm2 = vcmp.lt.s32.totalorder %v2255_v48, %v2256_v27 }
0x22d6   :  { %v2258_v55 = vsel %vm2257_vm2, %v2255_v48, %v2256_v27  ;;  %vm2664_vm2 = vcmp.eq.s32.totalorder %v3635_v12, 4 }
0x22d7   :  { %v2259_v28 = vrot.slane %v2258_v55, 1  ;;  %vm2669_vm8 = vmand %vm2660_vm1, %vm2664_vm2 }
0x22d9   :  { %vm2260_vm10 = vcmp.lt.s32.totalorder %v2258_v55, %v2259_v28 }
0x22da   :  { %v2261_v44 = vsel %vm2260_vm10, %v2258_v55, %v2259_v28 }
0x2349   :  { %v2622_v17 = vpop.permute.xlu1 %2621 }
0x234a   :  { %vm2626_vm6 = vcmp.eq.s32.totalorder %v3635_v12, %v2622_v17 }
0x234b   :  { %v2628_v31 = vsel %vm2626_vm6, %v2251_v56, 5  ;;  %vm2661_vm6 = vcmp.ge.s32.totalorder %v4411_v16, 5 }
0x234c   :  { %v2630_v43 = vsel %vm2576_vm3, %v2628_v31, 2147483647  ;;  %vm2670_vm10 = vmand %vm2661_vm6, %vm2664_vm2 }
0x234d   :  { %v2632_v21 = vshra.s32 %v2630_v43, 16  ;;  %v2625_v7 = vpop.permute.xlu0 %2624  ;;  %v2631_v30 = vand.u32 65535, %v2630_v43 }
0x234e   :  { %vm2627_vm0 = vcmp.eq.s32.totalorder %v3635_v12, %v2625_v7 }
0x234f   :  { %v2629_v13 = vsel %vm2627_vm0, %v2261_v44, 5  ;;  %v2634_v22 = vcvt.s32.f32 %v2632_v21  ;;  %v2633_v32 = vcvt.s32.f32 %v2631_v30 }
0x2350   :  { %v2645_v1 = vsel %vm2576_vm3, %v2629_v13, 2147483647 }
0x2351   :  { %v2647_v9 = vshra.s32 %v2645_v1, 16  ;;  %2635 = vmin.xlane.f32.xlu1 %v2634_v22  ;;  %v2646_v15 = vand.u32 65535, %v2645_v1 }
0x2353   :  { %v2649_v5 = vcvt.s32.f32 %v2647_v9  ;;  %v2648_v54 = vcvt.s32.f32 %v2646_v15 }
0x2355   :  { %2650 = vmin.xlane.f32.xlu0 %v2649_v5 }
0x23de   :  { %v2636_v36 = vpop.xlane.xlu1 %2635 }
0x23df   :  { %vm2637_vm15 = vcmp.eq.f32.partialorder %v2634_v22, %v2636_v36  ;;  %v2642_v34 = vcvt.f32.s32 %v2636_v36 }
0x23e0   :  { %v2638_v37 = vsel %vm2637_vm15, %v2633_v32, inf }
0x23e1   :  { %2639 = vmin.xlane.f32.xlu1 %v2638_v37  ;;  %v2643_v24 = vshll.u32 %v2642_v34, 16 }
0x23e2   :  { %v2651_v2 = vpop.xlane.xlu0 %2650 }
0x23e3   :  { %vm2652_vm14 = vcmp.eq.f32.partialorder %v2649_v5, %v2651_v2  ;;  %v2657_v38 = vcvt.f32.s32 %v2651_v2 }
0x23e4   :  { %v2653_v39 = vsel %vm2652_vm14, %v2648_v54, inf }
0x23e5   :  { %2654 = vmin.xlane.f32.xlu1 %v2653_v39  ;;  %v2658_v26 = vshll.u32 %v2657_v38, 16 }
0x246e   :  { %v2640_v59 = vpop.xlane.xlu1 %2639 }
0x246f   :  { %v2641_v0 = vcvt.f32.s32 %v2640_v59 }
0x2471   :  { %v2644_v3 = vadd.s32 %v2643_v24, %v2641_v0 }
0x2472   :  { %v2655_v41 = vpop.xlane.xlu1 %2654 }
0x2473   :  { %v2656_v48 = vcvt.f32.s32 %v2655_v41  ;;  %v4501_v27 = vsel %vm2660_vm1, %v2644_v3, %v4461_v52  ;;  %v4508_v40 = vsel %vm2669_vm8, %v2644_v3, %v2618_v60  ;;  %v2161_v60 = vrot.slane %v2160_v46, 4 }
0x2474   :  { %2674 = vperm.xlu1 %3364, %v4501_v27  }
0x2475   :  { %v2659_v11 = vadd.s32 %v2658_v26, %v2656_v48  ;;  %vm2162_vm5 = vcmp.lt.s32.totalorder %v2160_v46, %v2161_v60 }
0x2476   :  { %v2163_v33 = vsel %vm2162_vm5, %v2160_v46, %v2161_v60 }
0x2477   :  { %v4512_v55 = vsel %vm2661_vm6, %v2659_v11, %v4476_v62  ;;  %v4519_v52 = vsel %vm2670_vm10, %v2659_v11, %v2619_v29  ;;  %v2164_v62 = vrot.slane %v2163_v33, 2  ;;  %v2173_v29 = vsel %vm2172_vm4, %v2170_v14, %v2171_v25 }
0x2478   :  { %2677 = vperm.xlu0 %3365, %v4512_v55   ;;  %v2174_v28 = vrot.slane %v2173_v29, 2  ;;  %vm2713_vm6 = vcmp.ge.s32.totalorder %v4409_v47, 4  ;;  %vm2717_vm10 = vcmp.eq.s32.totalorder %v3635_v12, 3  ;;  %vm2714_vm4 = vcmp.ge.s32.totalorder %v4411_v16, 4 }
0x2479   :  { %vm2165_vm0 = vcmp.lt.s32.totalorder %v2163_v33, %v2164_v62  ;;  %vm4540_vm5 = vmand %vm2713_vm6, %vm2717_vm10  ;;  %v2076_v25 = vsel %vm2074_vm7, %v3647_v20, 5 }
0x247a   :  { %v2166_v61 = vsel %vm2165_vm0, %v2163_v33, %v2164_v62  ;;  %vm2175_vm12 = vcmp.lt.s32.totalorder %v2173_v29, %v2174_v28  ;;  %vm4556_vm0 = vmand %vm2714_vm4, %vm2717_vm10  ;;  %v2078_v33 = vsel %vm1883_vm11, %v2076_v25, 2147483647  ;;  %vm2766_vm10 = vcmp.ge.s32.totalorder %v4409_v47, 3 }
0x247b   :  { %v2167_v58 = vrot.slane %v2166_v61, 1  ;;  %v2176_v17 = vsel %vm2175_vm12, %v2173_v29, %v2174_v28  ;;  %v2079_v62 = vrot.slane %v2078_v33, 4 }
0x247c   :  { %v2177_v56 = vrot.slane %v2176_v17, 1 }
0x247d   :  { %vm2168_vm15 = vcmp.lt.s32.totalorder %v2166_v61, %v2167_v58  ;;  %vm2080_vm12 = vcmp.lt.s32.totalorder %v2078_v33, %v2079_v62 }
0x247e   :  { %v2169_v63 = vsel %vm2168_vm15, %v2166_v61, %v2167_v58  ;;  %vm2178_vm14 = vcmp.lt.s32.totalorder %v2176_v17, %v2177_v56  ;;  %v2081_v61 = vsel %vm2080_vm12, %v2078_v33, %v2079_v62 }
0x247f   :  { %v2179_v44 = vsel %vm2178_vm14, %v2176_v17, %v2177_v56  ;;  %v2082_v58 = vrot.slane %v2081_v61, 2 }
0x24f3   :  { %v2675_v31 = vpop.permute.xlu1 %2674 }
0x24f4   :  { %vm2679_vm13 = vcmp.eq.s32.totalorder %v3635_v12, %v2675_v31 }
0x24f5   :  { %v2681_v18 = vsel %vm2679_vm13, %v2169_v63, 5  ;;  %vm2083_vm13 = vcmp.lt.s32.totalorder %v2081_v61, %v2082_v58 }
0x24f6   :  { %v2683_v43 = vsel %vm2576_vm3, %v2681_v18, 2147483647  ;;  %v2084_v19 = vsel %vm2083_vm13, %v2081_v61, %v2082_v58 }
0x24f7   :  { %v2685_v21 = vshra.s32 %v2683_v43, 16  ;;  %v2678_v7 = vpop.permute.xlu0 %2677  ;;  %v2684_v30 = vand.u32 65535, %v2683_v43  ;;  %v2085_v35 = vrot.slane %v2084_v19, 1 }
0x24f8   :  { %vm2680_vm1 = vcmp.eq.s32.totalorder %v3635_v12, %v2678_v7 }
0x24f9   :  { %v2682_v13 = vsel %vm2680_vm1, %v2179_v44, 5  ;;  %v2687_v22 = vcvt.s32.f32 %v2685_v21  ;;  %v2686_v32 = vcvt.s32.f32 %v2684_v30  ;;  %vm2086_vm14 = vcmp.lt.s32.totalorder %v2084_v19, %v2085_v35 }
0x24fa   :  { %v2698_v1 = vsel %vm2576_vm3, %v2682_v13, 2147483647  ;;  %v2087_v8 = vsel %vm2086_vm14, %v2084_v19, %v2085_v35 }
0x24fb   :  { %v2700_v9 = vshra.s32 %v2698_v1, 16  ;;  %2688 = vmin.xlane.f32.xlu1 %v2687_v22  ;;  %v2699_v15 = vand.u32 65535, %v2698_v1 }
0x24fd   :  { %v2702_v5 = vcvt.s32.f32 %v2700_v9  ;;  %v2701_v54 = vcvt.s32.f32 %v2699_v15 }
0x24ff   :  { %2703 = vmin.xlane.f32.xlu0 %v2702_v5 }
0x2588   :  { %v2689_v36 = vpop.xlane.xlu1 %2688 }
0x2589   :  { %vm2690_vm2 = vcmp.eq.f32.partialorder %v2687_v22, %v2689_v36  ;;  %v2695_v34 = vcvt.f32.s32 %v2689_v36 }
0x258a   :  { %v2691_v37 = vsel %vm2690_vm2, %v2686_v32, inf }
0x258b   :  { %2692 = vmin.xlane.f32.xlu1 %v2691_v37  ;;  %v2696_v24 = vshll.u32 %v2695_v34, 16 }
0x258c   :  { %v2704_v2 = vpop.xlane.xlu0 %2703 }
0x258d   :  { %vm2705_vm8 = vcmp.eq.f32.partialorder %v2702_v5, %v2704_v2  ;;  %v2710_v38 = vcvt.f32.s32 %v2704_v2 }
0x258e   :  { %v2706_v39 = vsel %vm2705_vm8, %v2701_v54, inf }
0x258f   :  { %2707 = vmin.xlane.f32.xlu1 %v2706_v39  ;;  %v2711_v48 = vshll.u32 %v2710_v38, 16 }
0x2618   :  { %v2693_v59 = vpop.xlane.xlu1 %2692 }
0x2619   :  { %v2694_v0 = vcvt.f32.s32 %v2693_v59 }
0x261b   :  { %v4538_v3 = vadd.s32 %v2696_v24, %v2694_v0 }
0x261c   :  { %v2708_v41 = vpop.xlane.xlu1 %2707 }
0x261d   :  { %v2709_v11 = vcvt.f32.s32 %v2708_v41  ;;  %v4547_v10 = vsel %vm2713_vm6, %v4538_v3, %v4501_v27  ;;  %v2724_v46 = vsel %vm4540_vm5, %v4538_v3, %v4508_v40  ;;  %vm4714_vm5 = vcmp.eq.f32.partialorder %v4206_v23, %v4216_v49 }
0x261e   :  { %2727 = vperm.xlu1 %3364, %v4547_v10   ;;  %v1994_v40 = vsel %vm4714_vm5, %v3647_v20, 5 }
0x261f   :  { %v4554_v53 = vadd.s32 %v2711_v48, %v2709_v11  ;;  %v1996_v3 = vsel %vm1883_vm11, %v1994_v40, 2147483647 }
0x2621   :  { %v4562_v14 = vsel %vm2714_vm4, %v4554_v53, %v4512_v55  ;;  %v2725_v27 = vsel %vm4556_vm0, %v4554_v53, %v4519_v52  ;;  %v2077_v55 = vsel %vm2075_vm9, %v3647_v20, 5  ;;  %vm2770_vm4 = vcmp.eq.s32.totalorder %v3635_v12, 2 }
0x2622   :  { %2730 = vperm.xlu0 %3365, %v4562_v14   ;;  %v2088_v29 = vsel %vm1883_vm11, %v2077_v55, 2147483647  ;;  %vm2775_vm12 = vmand %vm2766_vm10, %vm2770_vm4 }
0x2623   :  { %v2089_v28 = vrot.slane %v2088_v29, 4 }
0x2625   :  { %vm2090_vm15 = vcmp.lt.s32.totalorder %v2088_v29, %v2089_v28 }
0x2626   :  { %v2091_v17 = vsel %vm2090_vm15, %v2088_v29, %v2089_v28  ;;  %vm2767_vm15 = vcmp.ge.s32.totalorder %v4411_v16, 3 }
0x2627   :  { %v2092_v56 = vrot.slane %v2091_v17, 2  ;;  %vm2776_vm13 = vmand %vm2767_vm15, %vm2770_vm4 }
0x2629   :  { %vm2093_vm7 = vcmp.lt.s32.totalorder %v2091_v17, %v2092_v56 }
0x262a   :  { %v2094_v31 = vsel %vm2093_vm7, %v2091_v17, %v2092_v56  ;;  %vm4715_vm7 = vcmp.eq.f32.partialorder %v4209_v57, %v4218_v51 }
0x262b   :  { %v2095_v63 = vrot.slane %v2094_v31, 1  ;;  %v1995_v26 = vsel %vm4715_vm7, %v3647_v20, 5  ;;  %vm2820_vm7 = vcmp.ge.s32.totalorder %v4411_v16, 2 }
0x262c   :  { %v2006_v60 = vsel %vm1883_vm11, %v1995_v26, 2147483647 }
0x262d   :  { %vm2096_vm1 = vcmp.lt.s32.totalorder %v2094_v31, %v2095_v63  ;;  %v2007_v52 = vrot.slane %v2006_v60, 4 }
0x262e   :  { %v2097_v44 = vsel %vm2096_vm1, %v2094_v31, %v2095_v63 }
0x262f   :  { %vm2008_vm14 = vcmp.lt.s32.totalorder %v2006_v60, %v2007_v52 }
0x269d   :  { %v2728_v18 = vpop.permute.xlu1 %2727 }
0x269e   :  { %vm2732_vm9 = vcmp.eq.s32.totalorder %v3635_v12, %v2728_v18 }
0x269f   :  { %v2734_v42 = vsel %vm2732_vm9, %v2087_v8, 5 }
0x26a0   :  { %v2736_v43 = vsel %vm2576_vm3, %v2734_v42, 2147483647 }
0x26a1   :  { %v2738_v21 = vshra.s32 %v2736_v43, 16  ;;  %v2731_v7 = vpop.permute.xlu0 %2730  ;;  %v2737_v30 = vand.u32 65535, %v2736_v43 }
0x26a2   :  { %vm2733_vm2 = vcmp.eq.s32.totalorder %v3635_v12, %v2731_v7 }
0x26a3   :  { %v2735_v13 = vsel %vm2733_vm2, %v2097_v44, 5  ;;  %v2740_v22 = vcvt.s32.f32 %v2738_v21  ;;  %v2739_v32 = vcvt.s32.f32 %v2737_v30 }
0x26a4   :  { %v2751_v1 = vsel %vm2576_vm3, %v2735_v13, 2147483647 }
0x26a5   :  { %v2753_v9 = vshra.s32 %v2751_v1, 16  ;;  %2741 = vmin.xlane.f32.xlu1 %v2740_v22  ;;  %v2752_v15 = vand.u32 65535, %v2751_v1 }
0x26a7   :  { %v2755_v5 = vcvt.s32.f32 %v2753_v9  ;;  %v2754_v54 = vcvt.s32.f32 %v2752_v15 }
0x26a9   :  { %2756 = vmin.xlane.f32.xlu0 %v2755_v5 }
0x2732   :  { %v2742_v36 = vpop.xlane.xlu1 %2741 }
0x2733   :  { %vm2743_vm8 = vcmp.eq.f32.partialorder %v2740_v22, %v2742_v36  ;;  %v2748_v34 = vcvt.f32.s32 %v2742_v36 }
0x2734   :  { %v2744_v37 = vsel %vm2743_vm8, %v2739_v32, inf }
0x2735   :  { %2745 = vmin.xlane.f32.xlu1 %v2744_v37  ;;  %v2749_v24 = vshll.u32 %v2748_v34, 16 }
0x2736   :  { %v2757_v2 = vpop.xlane.xlu0 %2756 }
0x2737   :  { %vm2758_vm6 = vcmp.eq.f32.partialorder %v2755_v5, %v2757_v2  ;;  %v2763_v38 = vcvt.f32.s32 %v2757_v2 }
0x2738   :  { %v2759_v39 = vsel %vm2758_vm6, %v2754_v54, inf }
0x2739   :  { %2760 = vmin.xlane.f32.xlu0 %v2759_v39  ;;  %v2764_v11 = vshll.u32 %v2763_v38, 16 }
0x27c2   :  { %v2746_v59 = vpop.xlane.xlu1 %2745 }
0x27c3   :  { %v2747_v0 = vcvt.f32.s32 %v2746_v59 }
0x27c5   :  { %v2750_v41 = vadd.s32 %v2749_v24, %v2747_v0 }
0x27c6   :  { %v2761_v48 = vpop.xlane.xlu0 %2760 }
0x27c7   :  { %v2762_v25 = vcvt.f32.s32 %v2761_v48  ;;  %v4587_v33 = vsel %vm2766_vm10, %v2750_v41, %v4547_v10  ;;  %v4594_v55 = vsel %vm2775_vm12, %v2750_v41, %v2724_v46  ;;  %v1997_v46 = vrot.slane %v1996_v3, 4 }
0x27c8   :  { %2780 = vperm.xlu1 %3364, %v4587_v33  }
0x27c9   :  { %v2765_v62 = vadd.s32 %v2764_v11, %v2762_v25  ;;  %vm1998_vm0 = vcmp.lt.s32.totalorder %v1996_v3, %v1997_v46 }
0x27ca   :  { %v1999_v53 = vsel %vm1998_vm0, %v1996_v3, %v1997_v46 }
0x27cb   :  { %v4598_v29 = vsel %vm2767_vm15, %v2765_v62, %v4562_v14  ;;  %v4605_v10 = vsel %vm2776_vm13, %v2765_v62, %v2725_v27  ;;  %v2000_v14 = vrot.slane %v1999_v53, 2  ;;  %v2009_v27 = vsel %vm2008_vm14, %v2006_v60, %v2007_v52 }
0x27cc   :  { %2783 = vperm.xlu0 %3365, %v4598_v29   ;;  %v2010_v28 = vrot.slane %v2009_v27, 2  ;;  %vm2819_vm15 = vcmp.ge.s32.totalorder %v4409_v47, 2  ;;  %vm2823_vm13 = vcmp.eq.s32.totalorder %v3635_v12, 1  ;;  %vm4720_vm14 = vcmp.eq.f32.partialorder %v4174_v45, %v4185_v4 }
0x27cd   :  { %vm2001_vm9 = vcmp.lt.s32.totalorder %v1999_v53, %v2000_v14  ;;  %vm4626_vm5 = vmand %vm2819_vm15, %vm2823_vm13  ;;  %v1908_v25 = vsel %vm4720_vm14, %v3647_v20, 5 }
0x27ce   :  { %v2002_v23 = vsel %vm2001_vm9, %v1999_v53, %v2000_v14  ;;  %vm2011_vm1 = vcmp.lt.s32.totalorder %v2009_v27, %v2010_v28  ;;  %vm4639_vm0 = vmand %vm2820_vm7, %vm2823_vm13  ;;  %vm4721_vm9 = vcmp.eq.f32.partialorder %v4179_v50, %v4191_v6 }
0x27cf   :  { %v2003_v49 = vrot.slane %v2002_v23, 1  ;;  %v2012_v61 = vsel %vm2011_vm1, %v2009_v27, %v2010_v28  ;;  %v1909_v62 = vsel %vm4721_vm9, %v3647_v20, 5  ;;  %vm2873_vm9 = vcmp.ge.s32.totalorder %v4411_v16, 1 }
0x27d0   :  { %v2013_v58 = vrot.slane %v2012_v61, 1 }
0x27d1   :  { %vm2004_vm2 = vcmp.lt.s32.totalorder %v2002_v23, %v2003_v49 }
0x27d2   :  { %v2005_v57 = vsel %vm2004_vm2, %v2002_v23, %v2003_v49  ;;  %vm2014_vm6 = vcmp.lt.s32.totalorder %v2012_v61, %v2013_v58 }
0x27d3   :  { %v2015_v31 = vsel %vm2014_vm6, %v2012_v61, %v2013_v58 }
0x2847   :  { %v2781_v17 = vpop.permute.xlu1 %2780 }
0x2848   :  { %vm2785_vm8 = vcmp.eq.s32.totalorder %v3635_v12, %v2781_v17 }
0x2849   :  { %v2787_v51 = vsel %vm2785_vm8, %v2005_v57, 5 }
0x284a   :  { %v2789_v56 = vsel %vm2576_vm3, %v2787_v51, 2147483647 }
0x284b   :  { %v2791_v19 = vshra.s32 %v2789_v56, 16  ;;  %v2784_v35 = vpop.permute.xlu0 %2783  ;;  %v2790_v21 = vand.u32 65535, %v2789_v56 }
0x284c   :  { %vm2786_vm10 = vcmp.eq.s32.totalorder %v3635_v12, %v2784_v35 }
0x284d   :  { %v2788_v63 = vsel %vm2786_vm10, %v2015_v31, 5  ;;  %v2793_v18 = vcvt.s32.f32 %v2791_v19  ;;  %v2792_v13 = vcvt.s32.f32 %v2790_v21 }
0x284e   :  { %v2804_v8 = vsel %vm2576_vm3, %v2788_v63, 2147483647 }
0x284f   :  { %v2806_v42 = vshra.s32 %v2804_v8, 16  ;;  %2794 = vmin.xlane.f32.xlu1 %v2793_v18  ;;  %v2805_v7 = vand.u32 65535, %v2804_v8 }
0x2851   :  { %v2808_v43 = vcvt.s32.f32 %v2806_v42  ;;  %v2807_v9 = vcvt.s32.f32 %v2805_v7 }
0x2853   :  { %2809 = vmin.xlane.f32.xlu0 %v2808_v43 }
0x28dc   :  { %v2795_v44 = vpop.xlane.xlu1 %2794 }
0x28dd   :  { %vm2796_vm4 = vcmp.eq.f32.partialorder %v2793_v18, %v2795_v44  ;;  %v2801_v30 = vcvt.f32.s32 %v2795_v44 }
0x28de   :  { %v2797_v22 = vsel %vm2796_vm4, %v2792_v13, inf }
0x28df   :  { %2798 = vmin.xlane.f32.xlu1 %v2797_v22  ;;  %v2802_v36 = vshll.u32 %v2801_v30, 16 }
0x28e0   :  { %v2810_v1 = vpop.xlane.xlu0 %2809 }
0x28e1   :  { %vm2811_vm12 = vcmp.eq.f32.partialorder %v2808_v43, %v2810_v1  ;;  %v2816_v32 = vcvt.f32.s32 %v2810_v1 }
0x28e2   :  { %v2812_v5 = vsel %vm2811_vm12, %v2807_v9, inf }
0x28e3   :  { %2813 = vmin.xlane.f32.xlu0 %v2812_v5  ;;  %v2817_v34 = vshll.u32 %v2816_v32, 16 }
0x296c   :  { %v2799_v15 = vpop.xlane.xlu1 %2798 }
0x296d   :  { %v2800_v37 = vcvt.f32.s32 %v2799_v15 }
0x296f   :  { %v4624_v2 = vadd.s32 %v2802_v36, %v2800_v37 }
0x2970   :  { %v2814_v54 = vpop.xlane.xlu0 %2813 }
0x2971   :  { %v2815_v59 = vcvt.f32.s32 %v2814_v54  ;;  %v2821_v24 = vsel %vm2819_vm15, %v4624_v2, %v4587_v33  ;;  %v2830_v38 = vsel %vm4626_vm5, %v4624_v2, %v4594_v55  ;;  %v1910_v33 = vsel %vm1883_vm11, %v1908_v25, 2147483647 }
0x2972   :  { %2833 = vperm.xlu1 %3364, %v2821_v24   ;;  %v1911_v40 = vrot.slane %v1910_v33, 4 }
0x2973   :  { %v4637_v0 = vadd.s32 %v2817_v34, %v2815_v59 }
0x2974   :  { %vm1912_vm1 = vcmp.lt.s32.totalorder %v1910_v33, %v1911_v40 }
0x2975   :  { %v2822_v48 = vsel %vm2820_vm7, %v4637_v0, %v4598_v29  ;;  %v2831_v11 = vsel %vm4639_vm0, %v4637_v0, %v4605_v10  ;;  %v1920_v29 = vsel %vm1883_vm11, %v1909_v62, 2147483647  ;;  %v1913_v26 = vsel %vm1912_vm1, %v1910_v33, %v1911_v40 }
0x2976   :  { %2836 = vperm.xlu0 %3365, %v2822_v48   ;;  %v1921_v3 = vrot.slane %v1920_v29, 4  ;;  %v1914_v46 = vrot.slane %v1913_v26, 2  ;;  %vm2872_vm7 = vcmp.ge.s32.totalorder %v4409_v47, 1  ;;  %vm4722_vm1 = vcmask 57344  }
0x2978   :  { %vm1922_vm2 = vcmp.lt.s32.totalorder %v1920_v29, %v1921_v3  ;;  %vm1915_vm8 = vcmp.lt.s32.totalorder %v1913_v26, %v1914_v46 }
0x2979   :  { %v1923_v60 = vsel %vm1922_vm2, %v1920_v29, %v1921_v3  ;;  %v1916_v45 = vsel %vm1915_vm8, %v1913_v26, %v1914_v46  ;;  %vm4723_vm8 = vmmov %vm4722_vm1 }
0x297a   :  { %v1924_v52 = vrot.slane %v1923_v60, 2  ;;  %v1917_v4 = vrot.slane %v1916_v45, 1 }
0x297c   :  { %vm1925_vm6 = vcmp.lt.s32.totalorder %v1923_v60, %v1924_v52  ;;  %vm1918_vm10 = vcmp.lt.s32.totalorder %v1916_v45, %v1917_v4 }
0x297d   :  { %v1926_v53 = vsel %vm1925_vm6, %v1923_v60, %v1924_v52  ;;  %v1919_v50 = vsel %vm1918_vm10, %v1916_v45, %v1917_v4 }
0x297e   :  { %v1927_v14 = vrot.slane %v1926_v53, 1 }
0x2980   :  { %vm1928_vm11 = vcmp.lt.s32.totalorder %v1926_v53, %v1927_v14 }
0x2981   :  { %v1929_v49 = vsel %vm1928_vm11, %v1926_v53, %v1927_v14 }
0x29f1   :  { %v2834_v27 = vpop.permute.xlu1 %2833 }
0x29f2   :  { %vm2838_vm4 = vcmp.eq.s32.totalorder %v3635_v12, %v2834_v27 }
0x29f3   :  { %v2840_v20 = vsel %vm2838_vm4, %v1919_v50, 5 }
0x29f4   :  { %v2842_v6 = vsel %vm2576_vm3, %v2840_v20, 2147483647 }
0x29f5   :  { %v2844_v28 = vshra.s32 %v2842_v6, 16  ;;  %v2837_v23 = vpop.permute.xlu0 %2836  ;;  %v2843_v56 = vand.u32 65535, %v2842_v6 }
0x29f6   :  { %vm2839_vm12 = vcmp.eq.s32.totalorder %v3635_v12, %v2837_v23 }
0x29f7   :  { %v2841_v61 = vsel %vm2839_vm12, %v1929_v49, 5  ;;  %v2846_v58 = vcvt.s32.f32 %v2844_v28  ;;  %v2845_v31 = vcvt.s32.f32 %v2843_v56 }
0x29f8   :  { %v2857_v17 = vsel %vm2576_vm3, %v2841_v61, 2147483647  ;;  %vm2874_vm3 = vcmp.eq.s32.totalorder %v3635_v12, 0 }
0x29f9   :  { %v2859_v57 = vshra.s32 %v2857_v17, 16  ;;  %2847 = vmin.xlane.f32.xlu1 %v2846_v58  ;;  %v2858_v19 = vand.u32 65535, %v2857_v17  ;;  %vm2879_vm14 = vmand %vm2872_vm7, %vm2874_vm3 }
0x29fa   :  { %vm2880_vm2 = vmand %vm2873_vm9, %vm2874_vm3 }
0x29fb   :  { %v2861_v51 = vcvt.s32.f32 %v2859_v57  ;;  %v2860_v8 = vcvt.s32.f32 %v2858_v19 }
0x29fd   :  { %2862 = vmin.xlane.f32.xlu0 %v2861_v51 }
0x2a86   :  { %v2848_v35 = vpop.xlane.xlu1 %2847 }
0x2a87   :  { %vm2849_vm15 = vcmp.eq.f32.partialorder %v2846_v58, %v2848_v35  ;;  %v2854_v43 = vcvt.f32.s32 %v2848_v35 }
0x2a88   :  { %v2850_v63 = vsel %vm2849_vm15, %v2845_v31, inf }
0x2a89   :  { %2851 = vmin.xlane.f32.xlu1 %v2850_v63  ;;  %v2855_v7 = vshll.u32 %v2854_v43, 16 }
0x2a8a   :  { %v2863_v18 = vpop.xlane.xlu0 %2862 }
0x2a8b   :  { %vm2864_vm13 = vcmp.eq.f32.partialorder %v2861_v51, %v2863_v18  ;;  %v2869_v44 = vcvt.f32.s32 %v2863_v18 }
0x2a8c   :  { %v2865_v42 = vsel %vm2864_vm13, %v2860_v8, inf }
0x2a8d   :  { %2866 = vmin.xlane.f32.xlu0 %v2865_v42  ;;  %v2870_v9 = vshll.u32 %v2869_v44, 16 }
0x2b16   :  { %v2852_v21 = vpop.xlane.xlu1 %2851 }
0x2b17   :  { %v2853_v13 = vcvt.f32.s32 %v2852_v21 }
0x2b19   :  { %v2856_v22 = vadd.s32 %v2855_v7, %v2853_v13 }
0x2b1a   :  { %v2867_v1 = vpop.xlane.xlu0 %2866 }
0x2b1b   :  { %v2881_v5 = vsel %vm2879_vm14, %v2856_v22, %v2830_v38  ;;  %v2868_v30 = vcvt.f32.s32 %v2867_v1 }
0x2b1c   :  { %2883 = vst.msk [vmem:[#allocation3] sm:$0x1] %vm4722_vm1, %v2881_v5 }
0x2b1d   :  { %v2871_v47 = vadd.s32 %v2870_v9, %v2868_v30 }
0x2b1f   :  { %v2882_v12 = vsel %vm2880_vm2, %v2871_v47, %v2831_v11 }
0x2b20   :  { %2884 = vst.msk [vmem:[#allocation3 + $0x1] sm:$0x1] %vm4723_vm8, %v2882_v12 }
0x2b21   :  { %3511 = shalt.err (!%p3508_p4)
}
0x2b22   :  { %s3512_s2 = scalar_lea.hbm %s4704_s12, 32 }
0x2b23   :  { %p3513_p5 = scmp.ne.s32.totalorder %s4704_s12, %s3512_s2  ;;  %p3516_p6 = scmp.lt.u32.totalorder %s3512_s2, %s4704_s12 }
0x2b25   :  { %p3518_p7 = pnand %p3516_p6, %p3513_p5 }
0x2b27   :  { %3521 = shalt.err (!%p3518_p7)
}
0x2b28   :  { %s3543_s8 = smov 1  }
0x2b29   :  { %2896 = dma.vmem_to_hbm [thread:$0]  %s2891_s13, 32, %s4704_s12, [#allocation4], %s3535_s3, %s3535_s3, %s3543_s8  }
0x2b2a   :  { %3522 = dma.done.wait [#allocation4], 32  }
0x2b2b   :  { %3523 = vsyncadd [#allocation4], 4294967264 }
0x2b2c   :  { %2900 = vsyncpa [#allocation4], 1 }

</bundles_post_ra>
